<compile_context>
chip_gen: v7x
topology: tpu7x:2x2x1
jax: 0.10.0
libtpu: 0.0.40
codegen_flags: <defaults>
</compile_context>

<pallas_src>
import math

import jax
import jax.numpy as jnp
from jax.experimental import pallas as pl
from jax.experimental.pallas import tpu as pltpu

GROWTH = 12
NUM_BLOCKS = (2, 2, 2, 2)
REDUCTION = 0.5
NUM_CLASSES = 10
BN_EPS = 1e-5
BOTTLENECK_WIDTH = 4 * GROWTH          # 48
PAD_C = 48                             # max channel width anywhere in the net
NEG_LARGE = float(jnp.finfo(jnp.float32).min)


# ------------------------- in-kernel helper functions ----------------------- #

def _shift_rows(v, s, fill=0.0):
    """u[l] = v[l + s] within a single batch element; rows falling outside [0, L)
    take `fill` (0 for conv padding, -inf for the MaxPool path). Mask-free."""
    n, c = v.shape
    if s == 0:
        return v
    pad = jnp.full((abs(s), c), fill, dtype=v.dtype)
    if s > 0:
        return jnp.concatenate([v[s:, :], pad], axis=0)
    return jnp.concatenate([pad, v[: n + s, :]], axis=0)


# ------------------------------ fused kernel -------------------------------- #

def _make_forward_kernel(L_in, num_blocks):
    def kernel(x_ref, wstem_ref, bn_ref, w1_ref, w3_ref, wt_ref, head_ref,
               out_ref, scr_ref):
        f32 = jnp.float32
        C0 = 2 * GROWTH

        def decim2(v):
            # stride-2 row subsample via a scratch round-trip + strided load
            n, c = v.shape
            scr_ref[0:n, 0:c] = v
            return scr_ref[pl.ds(0, n // 2, stride=2), 0:c]

        def avgpool2(v):
            # AvgPool1d(kernel_size=2): mean of consecutive row pairs
            n, c = v.shape
            scr_ref[0:n, 0:c] = v
            ev = scr_ref[pl.ds(0, n // 2, stride=2), 0:c]
            od = scr_ref[pl.ds(1, n // 2, stride=2), 0:c]
            return 0.5 * (ev + od)

        # ---- stem: Conv1d(1, 24, k=7, s=2, p=3): 7 tap FMAs at full L, then decimate
        x = x_ref[0]                                   # (L_in, 1)
        L = L_in
        acc = jnp.zeros((L, C0), f32)
        for t in range(7):                             # taps at l + t - 3, zero padded
            acc = acc + _shift_rows(x, t - 3) * wstem_ref[t:t + 1, :]
        feat = decim2(acc)                             # (L/2, 24)
        L //= 2

        # ---- MaxPool1d(k=3, s=2, p=1) (keep -inf fill on the pooling path)
        m = jnp.maximum(jnp.maximum(_shift_rows(feat, -1, NEG_LARGE), feat),
                        _shift_rows(feat, 1, NEG_LARGE))
        feat = decim2(m)                               # (L/4, 24)
        L //= 2

        # ---- dense stages + transitions
        c = C0
        bn_i = 0
        blk = 0
        for stage, nb in enumerate(num_blocks):
            for _ in range(nb):
                s1 = bn_ref[2 * bn_i:2 * bn_i + 1, 0:c]
                t1 = bn_ref[2 * bn_i + 1:2 * bn_i + 2, 0:c]
                bn_i += 1
                s2 = bn_ref[2 * bn_i:2 * bn_i + 1, :]
                t2 = bn_ref[2 * bn_i + 1:2 * bn_i + 2, :]
                bn_i += 1
                w1 = w1_ref[blk * PAD_C:blk * PAD_C + c, :]
                # Bottleneck: BN -> ReLU -> 1x1 conv (4g) -> BN -> ReLU -> k3 conv (g)
                h = jnp.maximum(feat * s1 + t1, 0.0)
                h2 = jnp.maximum(
                    jnp.dot(h, w1, preferred_element_type=f32) * s2 + t2, 0.0)
                # k=3 (pad=1) conv as three accumulating K=48 matmuls (no 144-lane concat)
                base = blk * 3 * PAD_C
                new = jnp.dot(_shift_rows(h2, -1),
                              w3_ref[base:base + PAD_C, :],
                              preferred_element_type=f32)
                new = new + jnp.dot(h2,
                                    w3_ref[base + PAD_C:base + 2 * PAD_C, :],
                                    preferred_element_type=f32)
                new = new + jnp.dot(_shift_rows(h2, 1),
                                    w3_ref[base + 2 * PAD_C:base + 3 * PAD_C, :],
                                    preferred_element_type=f32)
                # Append the new channels (existing lanes stay in place); weights are
                # generated/packed for this channel order.
                feat = jnp.concatenate([feat, new], axis=-1)
                c += GROWTH
                blk += 1
            if stage < len(num_blocks) - 1:
                # Transition: BN -> ReLU -> 1x1 conv -> AvgPool1d(k=2)
                s = bn_ref[2 * bn_i:2 * bn_i + 1, 0:c]
                t = bn_ref[2 * bn_i + 1:2 * bn_i + 2, 0:c]
                bn_i += 1
                wtr = wt_ref[stage * PAD_C:stage * PAD_C + c, :]
                h = jnp.maximum(feat * s + t, 0.0)
                y = jnp.dot(h, wtr, preferred_element_type=f32)
                feat = avgpool2(y)
                L //= 2
                c = y.shape[1]

        # ---- head: BN -> ReLU -> AdaptiveAvgPool1d(1) -> Linear -> Softmax
        s = bn_ref[2 * bn_i:2 * bn_i + 1, 0:c]
        t = bn_ref[2 * bn_i + 1:2 * bn_i + 2, 0:c]
        h = jnp.maximum(feat * s + t, 0.0)                       # (L, c)
        pooled = jnp.mean(h, axis=0, keepdims=True)              # (1, c)
        logits = (jnp.dot(pooled, head_ref[0:c, :], preferred_element_type=f32)
                  + head_ref[c:c + 1, :])
        z = logits - jnp.max(logits, axis=-1, keepdims=True)
        e = jnp.exp(z)
        out_ref[0] = e / jnp.sum(e, axis=-1, keepdims=True)

    return kernel


# ------------------------------- parameters --------------------------------- #

def bn_params(c):
    # Inference-mode BN folded to per-channel scale/shift (weight=1, bias=0,
    # running_mean=0, running_var=1).
    scale = jnp.full((1, c), 1.0 / math.sqrt(1.0 + BN_EPS), dtype=jnp.float32)
    shift = jnp.zeros((1, c), dtype=jnp.float32)
    return scale, shift


def init_params(key):
    keys = iter(jax.random.split(key, 64))
    p = {}
    c = 2 * GROWTH                                   # 24
    # stem conv: Conv1d(1, 24, k=7, s=2, p=3), init normal(0, sqrt(2/(k*out)))
    p["w_stem"] = (math.sqrt(2.0 / (7 * c))
                   * jax.random.normal(next(keys), (7, c), dtype=jnp.float32))
    p["dense"], p["trans"] = [], []
    for stage, nb in enumerate(NUM_BLOCKS):
        blocks = []
        for _ in range(nb):
            s1, t1 = bn_params(c)
            w1 = (math.sqrt(2.0 / (1 * BOTTLENECK_WIDTH))
                  * jax.random.normal(next(keys), (c, BOTTLENECK_WIDTH),
                                      dtype=jnp.float32))
            s2, t2 = bn_params(BOTTLENECK_WIDTH)
            # w3 stacks the three k=3 taps: rows [0:48)=tap l-1, [48:96)=tap l,
            # [96:144)=tap l+1.
            w3 = (math.sqrt(2.0 / (3 * GROWTH))
                  * jax.random.normal(next(keys), (3 * BOTTLENECK_WIDTH, GROWTH),
                                      dtype=jnp.float32))
            blocks.append(dict(s1=s1, t1=t1, w1=w1, s2=s2, t2=t2, w3=w3))
            c += GROWTH
        p["dense"].append(blocks)
        if stage < len(NUM_BLOCKS) - 1:
            cout = int(math.floor(c * REDUCTION))
            s, t = bn_params(c)
            w = (math.sqrt(2.0 / (1 * cout))
                 * jax.random.normal(next(keys), (c, cout), dtype=jnp.float32))
            p["trans"].append(dict(s=s, t=t, w=w))
            c = cout
    s, t = bn_params(c)
    bound = 1.0 / math.sqrt(c)
    wlin = jax.random.uniform(next(keys), (c, NUM_CLASSES), jnp.float32, -bound, bound)
    blin = jnp.zeros((1, NUM_CLASSES), dtype=jnp.float32)
    p["head"] = dict(s=s, t=t, w=wlin, b=blin)
    return p


def _pad_cols(a, width):
    return jnp.pad(a, ((0, 0), (0, width - a.shape[1])))


def _pad_rows(a, rows):
    return jnp.pad(a, ((0, rows - a.shape[0]), (0, 0)))


def pack_params(p):
    """Pack all parameters into 6 contiguous buffers (few DMAs, static in-kernel
    slices). NOTE: feature channels are kept in append order ([carried, new]); to
    import PyTorch-trained weights (cat([out, x]) order) the input-channel rows of
    w1 / transition / head weights would have to be permuted here."""
    bn_rows, w1_slabs, w3_slabs = [], [], []
    for stage in range(len(NUM_BLOCKS)):
        for bp in p["dense"][stage]:
            bn_rows += [_pad_cols(bp["s1"], PAD_C), _pad_cols(bp["t1"], PAD_C),
                        _pad_cols(bp["s2"], PAD_C), _pad_cols(bp["t2"], PAD_C)]
            w1_slabs.append(_pad_rows(bp["w1"], PAD_C))        # (48, 48) each
            w3_slabs.append(bp["w3"])                          # (144, 12) each
        if stage < len(NUM_BLOCKS) - 1:
            tp = p["trans"][stage]
            bn_rows += [_pad_cols(tp["s"], PAD_C), _pad_cols(tp["t"], PAD_C)]
    hp = p["head"]
    bn_rows += [_pad_cols(hp["s"], PAD_C), _pad_cols(hp["t"], PAD_C)]
    return dict(
        w_stem=p["w_stem"],                                      # (7, 24)
        bn_tab=jnp.concatenate(bn_rows, axis=0),                 # (40, 48)
        w1_tab=jnp.concatenate(w1_slabs, axis=0),                # (384, 48)
        w3_tab=jnp.concatenate(w3_slabs, axis=0),                # (1152, 12)
        wt_tab=jnp.concatenate([tp["w"] for tp in p["trans"]], axis=0),  # (144, 24)
        head_tab=jnp.concatenate([hp["w"], hp["b"]], axis=0),    # (49, 10)
    )


# --------------------------------- forward ---------------------------------- #

@jax.jit
def densenet_forward(x, packed):
    # x: (B, 1, L) in PyTorch NCW layout; single input channel -> (B, L, 1).
    B, _, L = x.shape
    x3d = x.reshape(B, L, 1)
    kernel = _make_forward_kernel(L, NUM_BLOCKS)

    def bcast(shape):
        return pl.BlockSpec(shape, lambda b: (0, 0))

    out = pl.pallas_call(
        kernel,
        grid=(B,),
        in_specs=[
            pl.BlockSpec((1, L, 1), lambda b: (b, 0, 0)),
            bcast(packed["w_stem"].shape),
            bcast(packed["bn_tab"].shape),
            bcast(packed["w1_tab"].shape),
            bcast(packed["w3_tab"].shape),
            bcast(packed["wt_tab"].shape),
            bcast(packed["head_tab"].shape),
        ],
        out_specs=pl.BlockSpec((1, 1, NUM_CLASSES), lambda b: (b, 0, 0)),
        out_shape=jax.ShapeDtypeStruct((B, 1, NUM_CLASSES), jnp.float32),
        scratch_shapes=[pltpu.VMEM((L, PAD_C), jnp.float32)],
        compiler_params=pltpu.CompilerParams(dimension_semantics=("parallel",)),
    )(x3d, packed["w_stem"], packed["bn_tab"], packed["w1_tab"],
      packed["w3_tab"], packed["wt_tab"], packed["head_tab"])
    return out.reshape(B, NUM_CLASSES)


# ----------------------------------- main ------------------------------------ #

if __name__ == "__main__":
    key = jax.random.PRNGKey(0)
    pkey, xkey = jax.random.split(key)
    params = init_params(pkey)
    packed = pack_params(params)

    B, L = 2, 64
    x = jax.random.normal(xkey, (B, 1, L), dtype=jnp.float32)

    out = densenet_forward(x, packed)
    out = jax.block_until_ready(out)

    assert out.shape == (B, NUM_CLASSES), out.shape
    assert bool(jnp.all(jnp.isfinite(out)))
    assert bool(jnp.allclose(jnp.sum(out, axis=-1), 1.0, atol=1e-4))
    print("KERNEL_OK")
</pallas_src>

<mosaic_0001>
module attributes {stable_mosaic.version = 11 : i64} {
  func.func @kernel(%arg0: i32, %arg1: memref<1x64x1xf32, #tpu.memory_space<vmem>>, %arg2: memref<7x24xf32, #tpu.memory_space<vmem>>, %arg3: memref<40x48xf32, #tpu.memory_space<vmem>>, %arg4: memref<384x48xf32, #tpu.memory_space<vmem>>, %arg5: memref<1152x12xf32, #tpu.memory_space<vmem>>, %arg6: memref<144x24xf32, #tpu.memory_space<vmem>>, %arg7: memref<49x10xf32, #tpu.memory_space<vmem>>, %arg8: memref<1x1x10xf32, #tpu.memory_space<vmem>>, %arg9: memref<64x48xf32, #tpu.memory_space<vmem>>) attributes {dimension_semantics = [#tpu.dimension_semantics<parallel>], iteration_bounds = array<i64: 2>, scalar_prefetch = 0 : i64, scratch_operands = 1 : i64, tpu.core_type = #tpu.core_type<tc>, window_params = [{transform_indices = @transform_0, window_bounds = array<i64: 1, 64, 1>}, {pipeline_mode = #tpu.pipeline_mode<synchronous>, transform_indices = @transform_1, window_bounds = array<i64: 7, 24>}, {pipeline_mode = #tpu.pipeline_mode<synchronous>, transform_indices = @transform_2, window_bounds = array<i64: 40, 48>}, {pipeline_mode = #tpu.pipeline_mode<synchronous>, transform_indices = @transform_3, window_bounds = array<i64: 384, 48>}, {pipeline_mode = #tpu.pipeline_mode<synchronous>, transform_indices = @transform_4, window_bounds = array<i64: 1152, 12>}, {pipeline_mode = #tpu.pipeline_mode<synchronous>, transform_indices = @transform_5, window_bounds = array<i64: 144, 24>}, {pipeline_mode = #tpu.pipeline_mode<synchronous>, transform_indices = @transform_6, window_bounds = array<i64: 49, 10>}, {transform_indices = @transform_7, window_bounds = array<i64: 1, 1, 10>}]} {
    %c0 = arith.constant 0 : index
    %c0_0 = arith.constant 0 : index
    %c0_1 = arith.constant 0 : index
    %0 = vector.load %arg1[%c0, %c0_0, %c0_1] : memref<1x64x1xf32, #tpu.memory_space<vmem>>, vector<1x64x1xf32>
    %1 = vector.shape_cast %0 : vector<1x64x1xf32> to vector<64x1xf32>
    %cst = arith.constant 0.000000e+00 : f32
    %2 = vector.broadcast %cst : f32 to vector<64x24xf32>
    %cst_2 = arith.constant 0.000000e+00 : f32
    %3 = vector.broadcast %cst_2 : f32 to vector<3x1xf32>
    %4 = vector.extract_strided_slice %1 {offsets = [0, 0], sizes = [61, 1], strides = [1, 1]} : vector<64x1xf32> to vector<61x1xf32>
    %5 = tpu.concatenate %3, %4 in 0 : vector<3x1xf32>, vector<61x1xf32> -> vector<64x1xf32>
    %c0_3 = arith.constant 0 : index
    %c0_4 = arith.constant 0 : index
    %6 = vector.load %arg2[%c0_3, %c0_4] : memref<7x24xf32, #tpu.memory_space<vmem>>, vector<1x24xf32>
    %7 = vector.broadcast %5 : vector<64x1xf32> to vector<64x24xf32>
    %8 = vector.broadcast %6 : vector<1x24xf32> to vector<64x24xf32>
    %9 = arith.mulf %7, %8 : vector<64x24xf32>
    %10 = arith.addf %2, %9 : vector<64x24xf32>
    %cst_5 = arith.constant 0.000000e+00 : f32
    %11 = vector.broadcast %cst_5 : f32 to vector<2x1xf32>
    %12 = vector.extract_strided_slice %1 {offsets = [0, 0], sizes = [62, 1], strides = [1, 1]} : vector<64x1xf32> to vector<62x1xf32>
    %13 = tpu.concatenate %11, %12 in 0 : vector<2x1xf32>, vector<62x1xf32> -> vector<64x1xf32>
    %c1 = arith.constant 1 : index
    %c0_6 = arith.constant 0 : index
    %14 = vector.load %arg2[%c1, %c0_6] : memref<7x24xf32, #tpu.memory_space<vmem>>, vector<1x24xf32>
    %15 = vector.broadcast %13 : vector<64x1xf32> to vector<64x24xf32>
    %16 = vector.broadcast %14 : vector<1x24xf32> to vector<64x24xf32>
    %17 = arith.mulf %15, %16 : vector<64x24xf32>
    %18 = arith.addf %10, %17 : vector<64x24xf32>
    %cst_7 = arith.constant 0.000000e+00 : f32
    %19 = vector.broadcast %cst_7 : f32 to vector<1x1xf32>
    %20 = vector.extract_strided_slice %1 {offsets = [0, 0], sizes = [63, 1], strides = [1, 1]} : vector<64x1xf32> to vector<63x1xf32>
    %21 = tpu.concatenate %19, %20 in 0 : vector<1x1xf32>, vector<63x1xf32> -> vector<64x1xf32>
    %c2 = arith.constant 2 : index
    %c0_8 = arith.constant 0 : index
    %22 = vector.load %arg2[%c2, %c0_8] : memref<7x24xf32, #tpu.memory_space<vmem>>, vector<1x24xf32>
    %23 = vector.broadcast %21 : vector<64x1xf32> to vector<64x24xf32>
    %24 = vector.broadcast %22 : vector<1x24xf32> to vector<64x24xf32>
    %25 = arith.mulf %23, %24 : vector<64x24xf32>
    %26 = arith.addf %18, %25 : vector<64x24xf32>
    %c3 = arith.constant 3 : index
    %c0_9 = arith.constant 0 : index
    %27 = vector.load %arg2[%c3, %c0_9] : memref<7x24xf32, #tpu.memory_space<vmem>>, vector<1x24xf32>
    %28 = vector.broadcast %1 : vector<64x1xf32> to vector<64x24xf32>
    %29 = vector.broadcast %27 : vector<1x24xf32> to vector<64x24xf32>
    %30 = arith.mulf %28, %29 : vector<64x24xf32>
    %31 = arith.addf %26, %30 : vector<64x24xf32>
    %cst_10 = arith.constant 0.000000e+00 : f32
    %32 = vector.broadcast %cst_10 : f32 to vector<1x1xf32>
    %33 = vector.extract_strided_slice %1 {offsets = [1, 0], sizes = [63, 1], strides = [1, 1]} : vector<64x1xf32> to vector<63x1xf32>
    %34 = tpu.concatenate %33, %32 in 0 : vector<63x1xf32>, vector<1x1xf32> -> vector<64x1xf32>
    %c4 = arith.constant 4 : index
    %c0_11 = arith.constant 0 : index
    %35 = vector.load %arg2[%c4, %c0_11] : memref<7x24xf32, #tpu.memory_space<vmem>>, vector<1x24xf32>
    %36 = vector.broadcast %34 : vector<64x1xf32> to vector<64x24xf32>
    %37 = vector.broadcast %35 : vector<1x24xf32> to vector<64x24xf32>
    %38 = arith.mulf %36, %37 : vector<64x24xf32>
    %39 = arith.addf %31, %38 : vector<64x24xf32>
    %cst_12 = arith.constant 0.000000e+00 : f32
    %40 = vector.broadcast %cst_12 : f32 to vector<2x1xf32>
    %41 = vector.extract_strided_slice %1 {offsets = [2, 0], sizes = [62, 1], strides = [1, 1]} : vector<64x1xf32> to vector<62x1xf32>
    %42 = tpu.concatenate %41, %40 in 0 : vector<62x1xf32>, vector<2x1xf32> -> vector<64x1xf32>
    %c5 = arith.constant 5 : index
    %c0_13 = arith.constant 0 : index
    %43 = vector.load %arg2[%c5, %c0_13] : memref<7x24xf32, #tpu.memory_space<vmem>>, vector<1x24xf32>
    %44 = vector.broadcast %42 : vector<64x1xf32> to vector<64x24xf32>
    %45 = vector.broadcast %43 : vector<1x24xf32> to vector<64x24xf32>
    %46 = arith.mulf %44, %45 : vector<64x24xf32>
    %47 = arith.addf %39, %46 : vector<64x24xf32>
    %cst_14 = arith.constant 0.000000e+00 : f32
    %48 = vector.broadcast %cst_14 : f32 to vector<3x1xf32>
    %49 = vector.extract_strided_slice %1 {offsets = [3, 0], sizes = [61, 1], strides = [1, 1]} : vector<64x1xf32> to vector<61x1xf32>
    %50 = tpu.concatenate %49, %48 in 0 : vector<61x1xf32>, vector<3x1xf32> -> vector<64x1xf32>
    %c6 = arith.constant 6 : index
    %c0_15 = arith.constant 0 : index
    %51 = vector.load %arg2[%c6, %c0_15] : memref<7x24xf32, #tpu.memory_space<vmem>>, vector<1x24xf32>
    %52 = vector.broadcast %50 : vector<64x1xf32> to vector<64x24xf32>
    %53 = vector.broadcast %51 : vector<1x24xf32> to vector<64x24xf32>
    %54 = arith.mulf %52, %53 : vector<64x24xf32>
    %55 = arith.addf %47, %54 : vector<64x24xf32>
    %c0_16 = arith.constant 0 : index
    %c0_17 = arith.constant 0 : index
    %56 = vector.load %arg9[%c0_16, %c0_17] : memref<64x48xf32, #tpu.memory_space<vmem>>, vector<64x24xf32>
    tpu.vector_store %arg9[%c0_16, %c0_17], %55 {strides = array<i32>} : memref<64x48xf32, #tpu.memory_space<vmem>>, vector<64x24xf32>,
    %c0_18 = arith.constant 0 : index
    %c0_19 = arith.constant 0 : index
    %57 = tpu.strided_load %arg9[%c0_18, %c0_19] {strides = array<i32: 2, 1>} : memref<64x48xf32, #tpu.memory_space<vmem>>, vector<32x24xf32>
    %cst_20 = arith.constant -3.40282347E+38 : f32
    %58 = vector.broadcast %cst_20 : f32 to vector<1x24xf32>
    %59 = vector.extract_strided_slice %57 {offsets = [0, 0], sizes = [31, 24], strides = [1, 1]} : vector<32x24xf32> to vector<31x24xf32>
    %60 = tpu.concatenate %58, %59 in 0 : vector<1x24xf32>, vector<31x24xf32> -> vector<32x24xf32>
    %61 = arith.maximumf %60, %57 : vector<32x24xf32>
    %cst_21 = arith.constant -3.40282347E+38 : f32
    %62 = vector.broadcast %cst_21 : f32 to vector<1x24xf32>
    %63 = vector.extract_strided_slice %57 {offsets = [1, 0], sizes = [31, 24], strides = [1, 1]} : vector<32x24xf32> to vector<31x24xf32>
    %64 = tpu.concatenate %63, %62 in 0 : vector<31x24xf32>, vector<1x24xf32> -> vector<32x24xf32>
    %65 = arith.maximumf %61, %64 : vector<32x24xf32>
    %c0_22 = arith.constant 0 : index
    %c0_23 = arith.constant 0 : index
    %66 = vector.load %arg9[%c0_22, %c0_23] : memref<64x48xf32, #tpu.memory_space<vmem>>, vector<32x24xf32>
    tpu.vector_store %arg9[%c0_22, %c0_23], %65 {strides = array<i32>} : memref<64x48xf32, #tpu.memory_space<vmem>>, vector<32x24xf32>,
    %c0_24 = arith.constant 0 : index
    %c0_25 = arith.constant 0 : index
    %67 = tpu.strided_load %arg9[%c0_24, %c0_25] {strides = array<i32: 2, 1>} : memref<64x48xf32, #tpu.memory_space<vmem>>, vector<16x24xf32>
    %c0_26 = arith.constant 0 : index
    %c0_27 = arith.constant 0 : index
    %68 = vector.load %arg3[%c0_26, %c0_27] : memref<40x48xf32, #tpu.memory_space<vmem>>, vector<1x24xf32>
    %c1_28 = arith.constant 1 : index
    %c0_29 = arith.constant 0 : index
    %69 = vector.load %arg3[%c1_28, %c0_29] : memref<40x48xf32, #tpu.memory_space<vmem>>, vector<1x24xf32>
    %c2_30 = arith.constant 2 : index
    %c0_31 = arith.constant 0 : index
    %70 = vector.load %arg3[%c2_30, %c0_31] : memref<40x48xf32, #tpu.memory_space<vmem>>, vector<1x48xf32>
    %c3_32 = arith.constant 3 : index
    %c0_33 = arith.constant 0 : index
    %71 = vector.load %arg3[%c3_32, %c0_33] : memref<40x48xf32, #tpu.memory_space<vmem>>, vector<1x48xf32>
    %c0_34 = arith.constant 0 : index
    %c0_35 = arith.constant 0 : index
    %72 = vector.load %arg4[%c0_34, %c0_35] : memref<384x48xf32, #tpu.memory_space<vmem>>, vector<24x48xf32>
    %73 = vector.broadcast %68 : vector<1x24xf32> to vector<16x24xf32>
    %74 = arith.mulf %67, %73 : vector<16x24xf32>
    %75 = vector.broadcast %69 : vector<1x24xf32> to vector<16x24xf32>
    %76 = arith.addf %74, %75 : vector<16x24xf32>
    %cst_36 = arith.constant 0.000000e+00 : f32
    %77 = vector.broadcast %cst_36 : f32 to vector<16x24xf32>
    %78 = arith.maximumf %76, %77 : vector<16x24xf32>
    %cst_37 = arith.constant dense<0.000000e+00> : vector<16x48xf32>
    %79 = tpu.matmul %78, %72, %cst_37 {dimension_numbers = #tpu.dot_dimension_numbers<[1], [0], [0], [1], [0, 0, 1, 1], [], []>} : vector<16x24xf32>, vector<24x48xf32>, vector<16x48xf32> -> vector<16x48xf32>
    %80 = vector.broadcast %70 : vector<1x48xf32> to vector<16x48xf32>
    %81 = arith.mulf %79, %80 : vector<16x48xf32>
    %82 = vector.broadcast %71 : vector<1x48xf32> to vector<16x48xf32>
    %83 = arith.addf %81, %82 : vector<16x48xf32>
    %cst_38 = arith.constant 0.000000e+00 : f32
    %84 = vector.broadcast %cst_38 : f32 to vector<16x48xf32>
    %85 = arith.maximumf %83, %84 : vector<16x48xf32>
    %cst_39 = arith.constant 0.000000e+00 : f32
    %86 = vector.broadcast %cst_39 : f32 to vector<1x48xf32>
    %87 = vector.extract_strided_slice %85 {offsets = [0, 0], sizes = [15, 48], strides = [1, 1]} : vector<16x48xf32> to vector<15x48xf32>
    %88 = tpu.concatenate %86, %87 in 0 : vector<1x48xf32>, vector<15x48xf32> -> vector<16x48xf32>
    %c0_40 = arith.constant 0 : index
    %c0_41 = arith.constant 0 : index
    %89 = vector.load %arg5[%c0_40, %c0_41] : memref<1152x12xf32, #tpu.memory_space<vmem>>, vector<48x12xf32>
    %cst_42 = arith.constant dense<0.000000e+00> : vector<16x12xf32>
    %90 = tpu.matmul %88, %89, %cst_42 {dimension_numbers = #tpu.dot_dimension_numbers<[1], [0], [0], [1], [0, 0, 1, 1], [], []>} : vector<16x48xf32>, vector<48x12xf32>, vector<16x12xf32> -> vector<16x12xf32>
    %c48 = arith.constant 48 : index
    %c0_43 = arith.constant 0 : index
    %91 = vector.load %arg5[%c48, %c0_43] : memref<1152x12xf32, #tpu.memory_space<vmem>>, vector<48x12xf32>
    %cst_44 = arith.constant dense<0.000000e+00> : vector<16x12xf32>
    %92 = tpu.matmul %85, %91, %cst_44 {dimension_numbers = #tpu.dot_dimension_numbers<[1], [0], [0], [1], [0, 0, 1, 1], [], []>} : vector<16x48xf32>, vector<48x12xf32>, vector<16x12xf32> -> vector<16x12xf32>
    %93 = arith.addf %90, %92 : vector<16x12xf32>
    %cst_45 = arith.constant 0.000000e+00 : f32
    %94 = vector.broadcast %cst_45 : f32 to vector<1x48xf32>
    %95 = vector.extract_strided_slice %85 {offsets = [1, 0], sizes = [15, 48], strides = [1, 1]} : vector<16x48xf32> to vector<15x48xf32>
    %96 = tpu.concatenate %95, %94 in 0 : vector<15x48xf32>, vector<1x48xf32> -> vector<16x48xf32>
    %c96 = arith.constant 96 : index
    %c0_46 = arith.constant 0 : index
    %97 = vector.load %arg5[%c96, %c0_46] : memref<1152x12xf32, #tpu.memory_space<vmem>>, vector<48x12xf32>
    %cst_47 = arith.constant dense<0.000000e+00> : vector<16x12xf32>
    %98 = tpu.matmul %96, %97, %cst_47 {dimension_numbers = #tpu.dot_dimension_numbers<[1], [0], [0], [1], [0, 0, 1, 1], [], []>} : vector<16x48xf32>, vector<48x12xf32>, vector<16x12xf32> -> vector<16x12xf32>
    %99 = arith.addf %93, %98 : vector<16x12xf32>
    %100 = tpu.concatenate %67, %99 in 1 : vector<16x24xf32>, vector<16x12xf32> -> vector<16x36xf32>
    %c4_48 = arith.constant 4 : index
    %c0_49 = arith.constant 0 : index
    %101 = vector.load %arg3[%c4_48, %c0_49] : memref<40x48xf32, #tpu.memory_space<vmem>>, vector<1x36xf32>
    %c5_50 = arith.constant 5 : index
    %c0_51 = arith.constant 0 : index
    %102 = vector.load %arg3[%c5_50, %c0_51] : memref<40x48xf32, #tpu.memory_space<vmem>>, vector<1x36xf32>
    %c6_52 = arith.constant 6 : index
    %c0_53 = arith.constant 0 : index
    %103 = vector.load %arg3[%c6_52, %c0_53] : memref<40x48xf32, #tpu.memory_space<vmem>>, vector<1x48xf32>
    %c7 = arith.constant 7 : index
    %c0_54 = arith.constant 0 : index
    %104 = vector.load %arg3[%c7, %c0_54] : memref<40x48xf32, #tpu.memory_space<vmem>>, vector<1x48xf32>
    %c48_55 = arith.constant 48 : index
    %c0_56 = arith.constant 0 : index
    %105 = vector.load %arg4[%c48_55, %c0_56] : memref<384x48xf32, #tpu.memory_space<vmem>>, vector<36x48xf32>
    %106 = vector.broadcast %101 : vector<1x36xf32> to vector<16x36xf32>
    %107 = arith.mulf %100, %106 : vector<16x36xf32>
    %108 = vector.broadcast %102 : vector<1x36xf32> to vector<16x36xf32>
    %109 = arith.addf %107, %108 : vector<16x36xf32>
    %cst_57 = arith.constant 0.000000e+00 : f32
    %110 = vector.broadcast %cst_57 : f32 to vector<16x36xf32>
    %111 = arith.maximumf %109, %110 : vector<16x36xf32>
    %cst_58 = arith.constant dense<0.000000e+00> : vector<16x48xf32>
    %112 = tpu.matmul %111, %105, %cst_58 {dimension_numbers = #tpu.dot_dimension_numbers<[1], [0], [0], [1], [0, 0, 1, 1], [], []>} : vector<16x36xf32>, vector<36x48xf32>, vector<16x48xf32> -> vector<16x48xf32>
    %113 = vector.broadcast %103 : vector<1x48xf32> to vector<16x48xf32>
    %114 = arith.mulf %112, %113 : vector<16x48xf32>
    %115 = vector.broadcast %104 : vector<1x48xf32> to vector<16x48xf32>
    %116 = arith.addf %114, %115 : vector<16x48xf32>
    %cst_59 = arith.constant 0.000000e+00 : f32
    %117 = vector.broadcast %cst_59 : f32 to vector<16x48xf32>
    %118 = arith.maximumf %116, %117 : vector<16x48xf32>
    %cst_60 = arith.constant 0.000000e+00 : f32
    %119 = vector.broadcast %cst_60 : f32 to vector<1x48xf32>
    %120 = vector.extract_strided_slice %118 {offsets = [0, 0], sizes = [15, 48], strides = [1, 1]} : vector<16x48xf32> to vector<15x48xf32>
    %121 = tpu.concatenate %119, %120 in 0 : vector<1x48xf32>, vector<15x48xf32> -> vector<16x48xf32>
    %c144 = arith.constant 144 : index
    %c0_61 = arith.constant 0 : index
    %122 = vector.load %arg5[%c144, %c0_61] : memref<1152x12xf32, #tpu.memory_space<vmem>>, vector<48x12xf32>
    %cst_62 = arith.constant dense<0.000000e+00> : vector<16x12xf32>
    %123 = tpu.matmul %121, %122, %cst_62 {dimension_numbers = #tpu.dot_dimension_numbers<[1], [0], [0], [1], [0, 0, 1, 1], [], []>} : vector<16x48xf32>, vector<48x12xf32>, vector<16x12xf32> -> vector<16x12xf32>
    %c192 = arith.constant 192 : index
    %c0_63 = arith.constant 0 : index
    %124 = vector.load %arg5[%c192, %c0_63] : memref<1152x12xf32, #tpu.memory_space<vmem>>, vector<48x12xf32>
    %cst_64 = arith.constant dense<0.000000e+00> : vector<16x12xf32>
    %125 = tpu.matmul %118, %124, %cst_64 {dimension_numbers = #tpu.dot_dimension_numbers<[1], [0], [0], [1], [0, 0, 1, 1], [], []>} : vector<16x48xf32>, vector<48x12xf32>, vector<16x12xf32> -> vector<16x12xf32>
    %126 = arith.addf %123, %125 : vector<16x12xf32>
    %cst_65 = arith.constant 0.000000e+00 : f32
    %127 = vector.broadcast %cst_65 : f32 to vector<1x48xf32>
    %128 = vector.extract_strided_slice %118 {offsets = [1, 0], sizes = [15, 48], strides = [1, 1]} : vector<16x48xf32> to vector<15x48xf32>
    %129 = tpu.concatenate %128, %127 in 0 : vector<15x48xf32>, vector<1x48xf32> -> vector<16x48xf32>
    %c240 = arith.constant 240 : index
    %c0_66 = arith.constant 0 : index
    %130 = vector.load %arg5[%c240, %c0_66] : memref<1152x12xf32, #tpu.memory_space<vmem>>, vector<48x12xf32>
    %cst_67 = arith.constant dense<0.000000e+00> : vector<16x12xf32>
    %131 = tpu.matmul %129, %130, %cst_67 {dimension_numbers = #tpu.dot_dimension_numbers<[1], [0], [0], [1], [0, 0, 1, 1], [], []>} : vector<16x48xf32>, vector<48x12xf32>, vector<16x12xf32> -> vector<16x12xf32>
    %132 = arith.addf %126, %131 : vector<16x12xf32>
    %133 = tpu.concatenate %100, %132 in 1 : vector<16x36xf32>, vector<16x12xf32> -> vector<16x48xf32>
    %c8 = arith.constant 8 : index
    %c0_68 = arith.constant 0 : index
    %134 = vector.load %arg3[%c8, %c0_68] : memref<40x48xf32, #tpu.memory_space<vmem>>, vector<1x48xf32>
    %c9 = arith.constant 9 : index
    %c0_69 = arith.constant 0 : index
    %135 = vector.load %arg3[%c9, %c0_69] : memref<40x48xf32, #tpu.memory_space<vmem>>, vector<1x48xf32>
    %c0_70 = arith.constant 0 : index
    %c0_71 = arith.constant 0 : index
    %136 = vector.load %arg6[%c0_70, %c0_71] : memref<144x24xf32, #tpu.memory_space<vmem>>, vector<48x24xf32>
    %137 = vector.broadcast %134 : vector<1x48xf32> to vector<16x48xf32>
    %138 = arith.mulf %133, %137 : vector<16x48xf32>
    %139 = vector.broadcast %135 : vector<1x48xf32> to vector<16x48xf32>
    %140 = arith.addf %138, %139 : vector<16x48xf32>
    %cst_72 = arith.constant 0.000000e+00 : f32
    %141 = vector.broadcast %cst_72 : f32 to vector<16x48xf32>
    %142 = arith.maximumf %140, %141 : vector<16x48xf32>
    %cst_73 = arith.constant dense<0.000000e+00> : vector<16x24xf32>
    %143 = tpu.matmul %142, %136, %cst_73 {dimension_numbers = #tpu.dot_dimension_numbers<[1], [0], [0], [1], [0, 0, 1, 1], [], []>} : vector<16x48xf32>, vector<48x24xf32>, vector<16x24xf32> -> vector<16x24xf32>
    %c0_74 = arith.constant 0 : index
    %c0_75 = arith.constant 0 : index
    %144 = vector.load %arg9[%c0_74, %c0_75] : memref<64x48xf32, #tpu.memory_space<vmem>>, vector<16x24xf32>
    tpu.vector_store %arg9[%c0_74, %c0_75], %143 {strides = array<i32>} : memref<64x48xf32, #tpu.memory_space<vmem>>, vector<16x24xf32>,
    %c0_76 = arith.constant 0 : index
    %c0_77 = arith.constant 0 : index
    %145 = tpu.strided_load %arg9[%c0_76, %c0_77] {strides = array<i32: 2, 1>} : memref<64x48xf32, #tpu.memory_space<vmem>>, vector<8x24xf32>
    %c1_78 = arith.constant 1 : index
    %c0_79 = arith.constant 0 : index
    %146 = tpu.strided_load %arg9[%c1_78, %c0_79] {strides = array<i32: 2, 1>} : memref<64x48xf32, #tpu.memory_space<vmem>>, vector<8x24xf32>
    %147 = arith.addf %145, %146 : vector<8x24xf32>
    %cst_80 = arith.constant 5.000000e-01 : f32
    %148 = vector.broadcast %cst_80 : f32 to vector<8x24xf32>
    %149 = arith.mulf %148, %147 : vector<8x24xf32>
    %c10 = arith.constant 10 : index
    %c0_81 = arith.constant 0 : index
    %150 = vector.load %arg3[%c10, %c0_81] : memref<40x48xf32, #tpu.memory_space<vmem>>, vector<1x24xf32>
    %c11 = arith.constant 11 : index
    %c0_82 = arith.constant 0 : index
    %151 = vector.load %arg3[%c11, %c0_82] : memref<40x48xf32, #tpu.memory_space<vmem>>, vector<1x24xf32>
    %c12 = arith.constant 12 : index
    %c0_83 = arith.constant 0 : index
    %152 = vector.load %arg3[%c12, %c0_83] : memref<40x48xf32, #tpu.memory_space<vmem>>, vector<1x48xf32>
    %c13 = arith.constant 13 : index
    %c0_84 = arith.constant 0 : index
    %153 = vector.load %arg3[%c13, %c0_84] : memref<40x48xf32, #tpu.memory_space<vmem>>, vector<1x48xf32>
    %c96_85 = arith.constant 96 : index
    %c0_86 = arith.constant 0 : index
    %154 = vector.load %arg4[%c96_85, %c0_86] : memref<384x48xf32, #tpu.memory_space<vmem>>, vector<24x48xf32>
    %155 = vector.broadcast %150 : vector<1x24xf32> to vector<8x24xf32>
    %156 = arith.mulf %149, %155 : vector<8x24xf32>
    %157 = vector.broadcast %151 : vector<1x24xf32> to vector<8x24xf32>
    %158 = arith.addf %156, %157 : vector<8x24xf32>
    %cst_87 = arith.constant 0.000000e+00 : f32
    %159 = vector.broadcast %cst_87 : f32 to vector<8x24xf32>
    %160 = arith.maximumf %158, %159 : vector<8x24xf32>
    %cst_88 = arith.constant dense<0.000000e+00> : vector<8x48xf32>
    %161 = tpu.matmul %160, %154, %cst_88 {dimension_numbers = #tpu.dot_dimension_numbers<[1], [0], [0], [1], [0, 0, 1, 1], [], []>} : vector<8x24xf32>, vector<24x48xf32>, vector<8x48xf32> -> vector<8x48xf32>
    %162 = vector.broadcast %152 : vector<1x48xf32> to vector<8x48xf32>
    %163 = arith.mulf %161, %162 : vector<8x48xf32>
    %164 = vector.broadcast %153 : vector<1x48xf32> to vector<8x48xf32>
    %165 = arith.addf %163, %164 : vector<8x48xf32>
    %cst_89 = arith.constant 0.000000e+00 : f32
    %166 = vector.broadcast %cst_89 : f32 to vector<8x48xf32>
    %167 = arith.maximumf %165, %166 : vector<8x48xf32>
    %cst_90 = arith.constant 0.000000e+00 : f32
    %168 = vector.broadcast %cst_90 : f32 to vector<1x48xf32>
    %169 = vector.extract_strided_slice %167 {offsets = [0, 0], sizes = [7, 48], strides = [1, 1]} : vector<8x48xf32> to vector<7x48xf32>
    %170 = tpu.concatenate %168, %169 in 0 : vector<1x48xf32>, vector<7x48xf32> -> vector<8x48xf32>
    %c288 = arith.constant 288 : index
    %c0_91 = arith.constant 0 : index
    %171 = vector.load %arg5[%c288, %c0_91] : memref<1152x12xf32, #tpu.memory_space<vmem>>, vector<48x12xf32>
    %cst_92 = arith.constant dense<0.000000e+00> : vector<8x12xf32>
    %172 = tpu.matmul %170, %171, %cst_92 {dimension_numbers = #tpu.dot_dimension_numbers<[1], [0], [0], [1], [0, 0, 1, 1], [], []>} : vector<8x48xf32>, vector<48x12xf32>, vector<8x12xf32> -> vector<8x12xf32>
    %c336 = arith.constant 336 : index
    %c0_93 = arith.constant 0 : index
    %173 = vector.load %arg5[%c336, %c0_93] : memref<1152x12xf32, #tpu.memory_space<vmem>>, vector<48x12xf32>
    %cst_94 = arith.constant dense<0.000000e+00> : vector<8x12xf32>
    %174 = tpu.matmul %167, %173, %cst_94 {dimension_numbers = #tpu.dot_dimension_numbers<[1], [0], [0], [1], [0, 0, 1, 1], [], []>} : vector<8x48xf32>, vector<48x12xf32>, vector<8x12xf32> -> vector<8x12xf32>
    %175 = arith.addf %172, %174 : vector<8x12xf32>
    %cst_95 = arith.constant 0.000000e+00 : f32
    %176 = vector.broadcast %cst_95 : f32 to vector<1x48xf32>
    %177 = vector.extract_strided_slice %167 {offsets = [1, 0], sizes = [7, 48], strides = [1, 1]} : vector<8x48xf32> to vector<7x48xf32>
    %178 = tpu.concatenate %177, %176 in 0 : vector<7x48xf32>, vector<1x48xf32> -> vector<8x48xf32>
    %c384 = arith.constant 384 : index
    %c0_96 = arith.constant 0 : index
    %179 = vector.load %arg5[%c384, %c0_96] : memref<1152x12xf32, #tpu.memory_space<vmem>>, vector<48x12xf32>
    %cst_97 = arith.constant dense<0.000000e+00> : vector<8x12xf32>
    %180 = tpu.matmul %178, %179, %cst_97 {dimension_numbers = #tpu.dot_dimension_numbers<[1], [0], [0], [1], [0, 0, 1, 1], [], []>} : vector<8x48xf32>, vector<48x12xf32>, vector<8x12xf32> -> vector<8x12xf32>
    %181 = arith.addf %175, %180 : vector<8x12xf32>
    %182 = tpu.concatenate %149, %181 in 1 : vector<8x24xf32>, vector<8x12xf32> -> vector<8x36xf32>
    %c14 = arith.constant 14 : index
    %c0_98 = arith.constant 0 : index
    %183 = vector.load %arg3[%c14, %c0_98] : memref<40x48xf32, #tpu.memory_space<vmem>>, vector<1x36xf32>
    %c15 = arith.constant 15 : index
    %c0_99 = arith.constant 0 : index
    %184 = vector.load %arg3[%c15, %c0_99] : memref<40x48xf32, #tpu.memory_space<vmem>>, vector<1x36xf32>
    %c16 = arith.constant 16 : index
    %c0_100 = arith.constant 0 : index
    %185 = vector.load %arg3[%c16, %c0_100] : memref<40x48xf32, #tpu.memory_space<vmem>>, vector<1x48xf32>
    %c17 = arith.constant 17 : index
    %c0_101 = arith.constant 0 : index
    %186 = vector.load %arg3[%c17, %c0_101] : memref<40x48xf32, #tpu.memory_space<vmem>>, vector<1x48xf32>
    %c144_102 = arith.constant 144 : index
    %c0_103 = arith.constant 0 : index
    %187 = vector.load %arg4[%c144_102, %c0_103] : memref<384x48xf32, #tpu.memory_space<vmem>>, vector<36x48xf32>
    %188 = vector.broadcast %183 : vector<1x36xf32> to vector<8x36xf32>
    %189 = arith.mulf %182, %188 : vector<8x36xf32>
    %190 = vector.broadcast %184 : vector<1x36xf32> to vector<8x36xf32>
    %191 = arith.addf %189, %190 : vector<8x36xf32>
    %cst_104 = arith.constant 0.000000e+00 : f32
    %192 = vector.broadcast %cst_104 : f32 to vector<8x36xf32>
    %193 = arith.maximumf %191, %192 : vector<8x36xf32>
    %cst_105 = arith.constant dense<0.000000e+00> : vector<8x48xf32>
    %194 = tpu.matmul %193, %187, %cst_105 {dimension_numbers = #tpu.dot_dimension_numbers<[1], [0], [0], [1], [0, 0, 1, 1], [], []>} : vector<8x36xf32>, vector<36x48xf32>, vector<8x48xf32> -> vector<8x48xf32>
    %195 = vector.broadcast %185 : vector<1x48xf32> to vector<8x48xf32>
    %196 = arith.mulf %194, %195 : vector<8x48xf32>
    %197 = vector.broadcast %186 : vector<1x48xf32> to vector<8x48xf32>
    %198 = arith.addf %196, %197 : vector<8x48xf32>
    %cst_106 = arith.constant 0.000000e+00 : f32
    %199 = vector.broadcast %cst_106 : f32 to vector<8x48xf32>
    %200 = arith.maximumf %198, %199 : vector<8x48xf32>
    %cst_107 = arith.constant 0.000000e+00 : f32
    %201 = vector.broadcast %cst_107 : f32 to vector<1x48xf32>
    %202 = vector.extract_strided_slice %200 {offsets = [0, 0], sizes = [7, 48], strides = [1, 1]} : vector<8x48xf32> to vector<7x48xf32>
    %203 = tpu.concatenate %201, %202 in 0 : vector<1x48xf32>, vector<7x48xf32> -> vector<8x48xf32>
    %c432 = arith.constant 432 : index
    %c0_108 = arith.constant 0 : index
    %204 = vector.load %arg5[%c432, %c0_108] : memref<1152x12xf32, #tpu.memory_space<vmem>>, vector<48x12xf32>
    %cst_109 = arith.constant dense<0.000000e+00> : vector<8x12xf32>
    %205 = tpu.matmul %203, %204, %cst_109 {dimension_numbers = #tpu.dot_dimension_numbers<[1], [0], [0], [1], [0, 0, 1, 1], [], []>} : vector<8x48xf32>, vector<48x12xf32>, vector<8x12xf32> -> vector<8x12xf32>
    %c480 = arith.constant 480 : index
    %c0_110 = arith.constant 0 : index
    %206 = vector.load %arg5[%c480, %c0_110] : memref<1152x12xf32, #tpu.memory_space<vmem>>, vector<48x12xf32>
    %cst_111 = arith.constant dense<0.000000e+00> : vector<8x12xf32>
    %207 = tpu.matmul %200, %206, %cst_111 {dimension_numbers = #tpu.dot_dimension_numbers<[1], [0], [0], [1], [0, 0, 1, 1], [], []>} : vector<8x48xf32>, vector<48x12xf32>, vector<8x12xf32> -> vector<8x12xf32>
    %208 = arith.addf %205, %207 : vector<8x12xf32>
    %cst_112 = arith.constant 0.000000e+00 : f32
    %209 = vector.broadcast %cst_112 : f32 to vector<1x48xf32>
    %210 = vector.extract_strided_slice %200 {offsets = [1, 0], sizes = [7, 48], strides = [1, 1]} : vector<8x48xf32> to vector<7x48xf32>
    %211 = tpu.concatenate %210, %209 in 0 : vector<7x48xf32>, vector<1x48xf32> -> vector<8x48xf32>
    %c528 = arith.constant 528 : index
    %c0_113 = arith.constant 0 : index
    %212 = vector.load %arg5[%c528, %c0_113] : memref<1152x12xf32, #tpu.memory_space<vmem>>, vector<48x12xf32>
    %cst_114 = arith.constant dense<0.000000e+00> : vector<8x12xf32>
    %213 = tpu.matmul %211, %212, %cst_114 {dimension_numbers = #tpu.dot_dimension_numbers<[1], [0], [0], [1], [0, 0, 1, 1], [], []>} : vector<8x48xf32>, vector<48x12xf32>, vector<8x12xf32> -> vector<8x12xf32>
    %214 = arith.addf %208, %213 : vector<8x12xf32>
    %215 = tpu.concatenate %182, %214 in 1 : vector<8x36xf32>, vector<8x12xf32> -> vector<8x48xf32>
    %c18 = arith.constant 18 : index
    %c0_115 = arith.constant 0 : index
    %216 = vector.load %arg3[%c18, %c0_115] : memref<40x48xf32, #tpu.memory_space<vmem>>, vector<1x48xf32>
    %c19 = arith.constant 19 : index
    %c0_116 = arith.constant 0 : index
    %217 = vector.load %arg3[%c19, %c0_116] : memref<40x48xf32, #tpu.memory_space<vmem>>, vector<1x48xf32>
    %c48_117 = arith.constant 48 : index
    %c0_118 = arith.constant 0 : index
    %218 = vector.load %arg6[%c48_117, %c0_118] : memref<144x24xf32, #tpu.memory_space<vmem>>, vector<48x24xf32>
    %219 = vector.broadcast %216 : vector<1x48xf32> to vector<8x48xf32>
    %220 = arith.mulf %215, %219 : vector<8x48xf32>
    %221 = vector.broadcast %217 : vector<1x48xf32> to vector<8x48xf32>
    %222 = arith.addf %220, %221 : vector<8x48xf32>
    %cst_119 = arith.constant 0.000000e+00 : f32
    %223 = vector.broadcast %cst_119 : f32 to vector<8x48xf32>
    %224 = arith.maximumf %222, %223 : vector<8x48xf32>
    %cst_120 = arith.constant dense<0.000000e+00> : vector<8x24xf32>
    %225 = tpu.matmul %224, %218, %cst_120 {dimension_numbers = #tpu.dot_dimension_numbers<[1], [0], [0], [1], [0, 0, 1, 1], [], []>} : vector<8x48xf32>, vector<48x24xf32>, vector<8x24xf32> -> vector<8x24xf32>
    %c0_121 = arith.constant 0 : index
    %c0_122 = arith.constant 0 : index
    %226 = vector.load %arg9[%c0_121, %c0_122] : memref<64x48xf32, #tpu.memory_space<vmem>>, vector<8x24xf32>
    tpu.vector_store %arg9[%c0_121, %c0_122], %225 {strides = array<i32>} : memref<64x48xf32, #tpu.memory_space<vmem>>, vector<8x24xf32>,
    %c0_123 = arith.constant 0 : index
    %c0_124 = arith.constant 0 : index
    %227 = tpu.strided_load %arg9[%c0_123, %c0_124] {strides = array<i32: 2, 1>} : memref<64x48xf32, #tpu.memory_space<vmem>>, vector<4x24xf32>
    %c1_125 = arith.constant 1 : index
    %c0_126 = arith.constant 0 : index
    %228 = tpu.strided_load %arg9[%c1_125, %c0_126] {strides = array<i32: 2, 1>} : memref<64x48xf32, #tpu.memory_space<vmem>>, vector<4x24xf32>
    %229 = arith.addf %227, %228 : vector<4x24xf32>
    %cst_127 = arith.constant 5.000000e-01 : f32
    %230 = vector.broadcast %cst_127 : f32 to vector<4x24xf32>
    %231 = arith.mulf %230, %229 : vector<4x24xf32>
    %c20 = arith.constant 20 : index
    %c0_128 = arith.constant 0 : index
    %232 = vector.load %arg3[%c20, %c0_128] : memref<40x48xf32, #tpu.memory_space<vmem>>, vector<1x24xf32>
    %c21 = arith.constant 21 : index
    %c0_129 = arith.constant 0 : index
    %233 = vector.load %arg3[%c21, %c0_129] : memref<40x48xf32, #tpu.memory_space<vmem>>, vector<1x24xf32>
    %c22 = arith.constant 22 : index
    %c0_130 = arith.constant 0 : index
    %234 = vector.load %arg3[%c22, %c0_130] : memref<40x48xf32, #tpu.memory_space<vmem>>, vector<1x48xf32>
    %c23 = arith.constant 23 : index
    %c0_131 = arith.constant 0 : index
    %235 = vector.load %arg3[%c23, %c0_131] : memref<40x48xf32, #tpu.memory_space<vmem>>, vector<1x48xf32>
    %c192_132 = arith.constant 192 : index
    %c0_133 = arith.constant 0 : index
    %236 = vector.load %arg4[%c192_132, %c0_133] : memref<384x48xf32, #tpu.memory_space<vmem>>, vector<24x48xf32>
    %237 = vector.broadcast %232 : vector<1x24xf32> to vector<4x24xf32>
    %238 = arith.mulf %231, %237 : vector<4x24xf32>
    %239 = vector.broadcast %233 : vector<1x24xf32> to vector<4x24xf32>
    %240 = arith.addf %238, %239 : vector<4x24xf32>
    %cst_134 = arith.constant 0.000000e+00 : f32
    %241 = vector.broadcast %cst_134 : f32 to vector<4x24xf32>
    %242 = arith.maximumf %240, %241 : vector<4x24xf32>
    %cst_135 = arith.constant dense<0.000000e+00> : vector<4x48xf32>
    %243 = tpu.matmul %242, %236, %cst_135 {dimension_numbers = #tpu.dot_dimension_numbers<[1], [0], [0], [1], [0, 0, 1, 1], [], []>} : vector<4x24xf32>, vector<24x48xf32>, vector<4x48xf32> -> vector<4x48xf32>
    %244 = vector.broadcast %234 : vector<1x48xf32> to vector<4x48xf32>
    %245 = arith.mulf %243, %244 : vector<4x48xf32>
    %246 = vector.broadcast %235 : vector<1x48xf32> to vector<4x48xf32>
    %247 = arith.addf %245, %246 : vector<4x48xf32>
    %cst_136 = arith.constant 0.000000e+00 : f32
    %248 = vector.broadcast %cst_136 : f32 to vector<4x48xf32>
    %249 = arith.maximumf %247, %248 : vector<4x48xf32>
    %cst_137 = arith.constant 0.000000e+00 : f32
    %250 = vector.broadcast %cst_137 : f32 to vector<1x48xf32>
    %251 = vector.extract_strided_slice %249 {offsets = [0, 0], sizes = [3, 48], strides = [1, 1]} : vector<4x48xf32> to vector<3x48xf32>
    %252 = tpu.concatenate %250, %251 in 0 : vector<1x48xf32>, vector<3x48xf32> -> vector<4x48xf32>
    %c576 = arith.constant 576 : index
    %c0_138 = arith.constant 0 : index
    %253 = vector.load %arg5[%c576, %c0_138] : memref<1152x12xf32, #tpu.memory_space<vmem>>, vector<48x12xf32>
    %cst_139 = arith.constant dense<0.000000e+00> : vector<4x12xf32>
    %254 = tpu.matmul %252, %253, %cst_139 {dimension_numbers = #tpu.dot_dimension_numbers<[1], [0], [0], [1], [0, 0, 1, 1], [], []>} : vector<4x48xf32>, vector<48x12xf32>, vector<4x12xf32> -> vector<4x12xf32>
    %c624 = arith.constant 624 : index
    %c0_140 = arith.constant 0 : index
    %255 = vector.load %arg5[%c624, %c0_140] : memref<1152x12xf32, #tpu.memory_space<vmem>>, vector<48x12xf32>
    %cst_141 = arith.constant dense<0.000000e+00> : vector<4x12xf32>
    %256 = tpu.matmul %249, %255, %cst_141 {dimension_numbers = #tpu.dot_dimension_numbers<[1], [0], [0], [1], [0, 0, 1, 1], [], []>} : vector<4x48xf32>, vector<48x12xf32>, vector<4x12xf32> -> vector<4x12xf32>
    %257 = arith.addf %254, %256 : vector<4x12xf32>
    %cst_142 = arith.constant 0.000000e+00 : f32
    %258 = vector.broadcast %cst_142 : f32 to vector<1x48xf32>
    %259 = vector.extract_strided_slice %249 {offsets = [1, 0], sizes = [3, 48], strides = [1, 1]} : vector<4x48xf32> to vector<3x48xf32>
    %260 = tpu.concatenate %259, %258 in 0 : vector<3x48xf32>, vector<1x48xf32> -> vector<4x48xf32>
    %c672 = arith.constant 672 : index
    %c0_143 = arith.constant 0 : index
    %261 = vector.load %arg5[%c672, %c0_143] : memref<1152x12xf32, #tpu.memory_space<vmem>>, vector<48x12xf32>
    %cst_144 = arith.constant dense<0.000000e+00> : vector<4x12xf32>
    %262 = tpu.matmul %260, %261, %cst_144 {dimension_numbers = #tpu.dot_dimension_numbers<[1], [0], [0], [1], [0, 0, 1, 1], [], []>} : vector<4x48xf32>, vector<48x12xf32>, vector<4x12xf32> -> vector<4x12xf32>
    %263 = arith.addf %257, %262 : vector<4x12xf32>
    %264 = tpu.concatenate %231, %263 in 1 : vector<4x24xf32>, vector<4x12xf32> -> vector<4x36xf32>
    %c24 = arith.constant 24 : index
    %c0_145 = arith.constant 0 : index
    %265 = vector.load %arg3[%c24, %c0_145] : memref<40x48xf32, #tpu.memory_space<vmem>>, vector<1x36xf32>
    %c25 = arith.constant 25 : index
    %c0_146 = arith.constant 0 : index
    %266 = vector.load %arg3[%c25, %c0_146] : memref<40x48xf32, #tpu.memory_space<vmem>>, vector<1x36xf32>
    %c26 = arith.constant 26 : index
    %c0_147 = arith.constant 0 : index
    %267 = vector.load %arg3[%c26, %c0_147] : memref<40x48xf32, #tpu.memory_space<vmem>>, vector<1x48xf32>
    %c27 = arith.constant 27 : index
    %c0_148 = arith.constant 0 : index
    %268 = vector.load %arg3[%c27, %c0_148] : memref<40x48xf32, #tpu.memory_space<vmem>>, vector<1x48xf32>
    %c240_149 = arith.constant 240 : index
    %c0_150 = arith.constant 0 : index
    %269 = vector.load %arg4[%c240_149, %c0_150] : memref<384x48xf32, #tpu.memory_space<vmem>>, vector<36x48xf32>
    %270 = vector.broadcast %265 : vector<1x36xf32> to vector<4x36xf32>
    %271 = arith.mulf %264, %270 : vector<4x36xf32>
    %272 = vector.broadcast %266 : vector<1x36xf32> to vector<4x36xf32>
    %273 = arith.addf %271, %272 : vector<4x36xf32>
    %cst_151 = arith.constant 0.000000e+00 : f32
    %274 = vector.broadcast %cst_151 : f32 to vector<4x36xf32>
    %275 = arith.maximumf %273, %274 : vector<4x36xf32>
    %cst_152 = arith.constant dense<0.000000e+00> : vector<4x48xf32>
    %276 = tpu.matmul %275, %269, %cst_152 {dimension_numbers = #tpu.dot_dimension_numbers<[1], [0], [0], [1], [0, 0, 1, 1], [], []>} : vector<4x36xf32>, vector<36x48xf32>, vector<4x48xf32> -> vector<4x48xf32>
    %277 = vector.broadcast %267 : vector<1x48xf32> to vector<4x48xf32>
    %278 = arith.mulf %276, %277 : vector<4x48xf32>
    %279 = vector.broadcast %268 : vector<1x48xf32> to vector<4x48xf32>
    %280 = arith.addf %278, %279 : vector<4x48xf32>
    %cst_153 = arith.constant 0.000000e+00 : f32
    %281 = vector.broadcast %cst_153 : f32 to vector<4x48xf32>
    %282 = arith.maximumf %280, %281 : vector<4x48xf32>
    %cst_154 = arith.constant 0.000000e+00 : f32
    %283 = vector.broadcast %cst_154 : f32 to vector<1x48xf32>
    %284 = vector.extract_strided_slice %282 {offsets = [0, 0], sizes = [3, 48], strides = [1, 1]} : vector<4x48xf32> to vector<3x48xf32>
    %285 = tpu.concatenate %283, %284 in 0 : vector<1x48xf32>, vector<3x48xf32> -> vector<4x48xf32>
    %c720 = arith.constant 720 : index
    %c0_155 = arith.constant 0 : index
    %286 = vector.load %arg5[%c720, %c0_155] : memref<1152x12xf32, #tpu.memory_space<vmem>>, vector<48x12xf32>
    %cst_156 = arith.constant dense<0.000000e+00> : vector<4x12xf32>
    %287 = tpu.matmul %285, %286, %cst_156 {dimension_numbers = #tpu.dot_dimension_numbers<[1], [0], [0], [1], [0, 0, 1, 1], [], []>} : vector<4x48xf32>, vector<48x12xf32>, vector<4x12xf32> -> vector<4x12xf32>
    %c768 = arith.constant 768 : index
    %c0_157 = arith.constant 0 : index
    %288 = vector.load %arg5[%c768, %c0_157] : memref<1152x12xf32, #tpu.memory_space<vmem>>, vector<48x12xf32>
    %cst_158 = arith.constant dense<0.000000e+00> : vector<4x12xf32>
    %289 = tpu.matmul %282, %288, %cst_158 {dimension_numbers = #tpu.dot_dimension_numbers<[1], [0], [0], [1], [0, 0, 1, 1], [], []>} : vector<4x48xf32>, vector<48x12xf32>, vector<4x12xf32> -> vector<4x12xf32>
    %290 = arith.addf %287, %289 : vector<4x12xf32>
    %cst_159 = arith.constant 0.000000e+00 : f32
    %291 = vector.broadcast %cst_159 : f32 to vector<1x48xf32>
    %292 = vector.extract_strided_slice %282 {offsets = [1, 0], sizes = [3, 48], strides = [1, 1]} : vector<4x48xf32> to vector<3x48xf32>
    %293 = tpu.concatenate %292, %291 in 0 : vector<3x48xf32>, vector<1x48xf32> -> vector<4x48xf32>
    %c816 = arith.constant 816 : index
    %c0_160 = arith.constant 0 : index
    %294 = vector.load %arg5[%c816, %c0_160] : memref<1152x12xf32, #tpu.memory_space<vmem>>, vector<48x12xf32>
    %cst_161 = arith.constant dense<0.000000e+00> : vector<4x12xf32>
    %295 = tpu.matmul %293, %294, %cst_161 {dimension_numbers = #tpu.dot_dimension_numbers<[1], [0], [0], [1], [0, 0, 1, 1], [], []>} : vector<4x48xf32>, vector<48x12xf32>, vector<4x12xf32> -> vector<4x12xf32>
    %296 = arith.addf %290, %295 : vector<4x12xf32>
    %297 = tpu.concatenate %264, %296 in 1 : vector<4x36xf32>, vector<4x12xf32> -> vector<4x48xf32>
    %c28 = arith.constant 28 : index
    %c0_162 = arith.constant 0 : index
    %298 = vector.load %arg3[%c28, %c0_162] : memref<40x48xf32, #tpu.memory_space<vmem>>, vector<1x48xf32>
    %c29 = arith.constant 29 : index
    %c0_163 = arith.constant 0 : index
    %299 = vector.load %arg3[%c29, %c0_163] : memref<40x48xf32, #tpu.memory_space<vmem>>, vector<1x48xf32>
    %c96_164 = arith.constant 96 : index
    %c0_165 = arith.constant 0 : index
    %300 = vector.load %arg6[%c96_164, %c0_165] : memref<144x24xf32, #tpu.memory_space<vmem>>, vector<48x24xf32>
    %301 = vector.broadcast %298 : vector<1x48xf32> to vector<4x48xf32>
    %302 = arith.mulf %297, %301 : vector<4x48xf32>
    %303 = vector.broadcast %299 : vector<1x48xf32> to vector<4x48xf32>
    %304 = arith.addf %302, %303 : vector<4x48xf32>
    %cst_166 = arith.constant 0.000000e+00 : f32
    %305 = vector.broadcast %cst_166 : f32 to vector<4x48xf32>
    %306 = arith.maximumf %304, %305 : vector<4x48xf32>
    %cst_167 = arith.constant dense<0.000000e+00> : vector<4x24xf32>
    %307 = tpu.matmul %306, %300, %cst_167 {dimension_numbers = #tpu.dot_dimension_numbers<[1], [0], [0], [1], [0, 0, 1, 1], [], []>} : vector<4x48xf32>, vector<48x24xf32>, vector<4x24xf32> -> vector<4x24xf32>
    %c0_168 = arith.constant 0 : index
    %c0_169 = arith.constant 0 : index
    %308 = vector.load %arg9[%c0_168, %c0_169] : memref<64x48xf32, #tpu.memory_space<vmem>>, vector<4x24xf32>
    tpu.vector_store %arg9[%c0_168, %c0_169], %307 {strides = array<i32>} : memref<64x48xf32, #tpu.memory_space<vmem>>, vector<4x24xf32>,
    %c0_170 = arith.constant 0 : index
    %c0_171 = arith.constant 0 : index
    %309 = tpu.strided_load %arg9[%c0_170, %c0_171] {strides = array<i32: 2, 1>} : memref<64x48xf32, #tpu.memory_space<vmem>>, vector<2x24xf32>
    %c1_172 = arith.constant 1 : index
    %c0_173 = arith.constant 0 : index
    %310 = tpu.strided_load %arg9[%c1_172, %c0_173] {strides = array<i32: 2, 1>} : memref<64x48xf32, #tpu.memory_space<vmem>>, vector<2x24xf32>
    %311 = arith.addf %309, %310 : vector<2x24xf32>
    %cst_174 = arith.constant 5.000000e-01 : f32
    %312 = vector.broadcast %cst_174 : f32 to vector<2x24xf32>
    %313 = arith.mulf %312, %311 : vector<2x24xf32>
    %c30 = arith.constant 30 : index
    %c0_175 = arith.constant 0 : index
    %314 = vector.load %arg3[%c30, %c0_175] : memref<40x48xf32, #tpu.memory_space<vmem>>, vector<1x24xf32>
    %c31 = arith.constant 31 : index
    %c0_176 = arith.constant 0 : index
    %315 = vector.load %arg3[%c31, %c0_176] : memref<40x48xf32, #tpu.memory_space<vmem>>, vector<1x24xf32>
    %c32 = arith.constant 32 : index
    %c0_177 = arith.constant 0 : index
    %316 = vector.load %arg3[%c32, %c0_177] : memref<40x48xf32, #tpu.memory_space<vmem>>, vector<1x48xf32>
    %c33 = arith.constant 33 : index
    %c0_178 = arith.constant 0 : index
    %317 = vector.load %arg3[%c33, %c0_178] : memref<40x48xf32, #tpu.memory_space<vmem>>, vector<1x48xf32>
    %c288_179 = arith.constant 288 : index
    %c0_180 = arith.constant 0 : index
    %318 = vector.load %arg4[%c288_179, %c0_180] : memref<384x48xf32, #tpu.memory_space<vmem>>, vector<24x48xf32>
    %319 = vector.broadcast %314 : vector<1x24xf32> to vector<2x24xf32>
    %320 = arith.mulf %313, %319 : vector<2x24xf32>
    %321 = vector.broadcast %315 : vector<1x24xf32> to vector<2x24xf32>
    %322 = arith.addf %320, %321 : vector<2x24xf32>
    %cst_181 = arith.constant 0.000000e+00 : f32
    %323 = vector.broadcast %cst_181 : f32 to vector<2x24xf32>
    %324 = arith.maximumf %322, %323 : vector<2x24xf32>
    %cst_182 = arith.constant dense<0.000000e+00> : vector<2x48xf32>
    %325 = tpu.matmul %324, %318, %cst_182 {dimension_numbers = #tpu.dot_dimension_numbers<[1], [0], [0], [1], [0, 0, 1, 1], [], []>} : vector<2x24xf32>, vector<24x48xf32>, vector<2x48xf32> -> vector<2x48xf32>
    %326 = vector.broadcast %316 : vector<1x48xf32> to vector<2x48xf32>
    %327 = arith.mulf %325, %326 : vector<2x48xf32>
    %328 = vector.broadcast %317 : vector<1x48xf32> to vector<2x48xf32>
    %329 = arith.addf %327, %328 : vector<2x48xf32>
    %cst_183 = arith.constant 0.000000e+00 : f32
    %330 = vector.broadcast %cst_183 : f32 to vector<2x48xf32>
    %331 = arith.maximumf %329, %330 : vector<2x48xf32>
    %cst_184 = arith.constant 0.000000e+00 : f32
    %332 = vector.broadcast %cst_184 : f32 to vector<1x48xf32>
    %333 = vector.extract_strided_slice %331 {offsets = [0, 0], sizes = [1, 48], strides = [1, 1]} : vector<2x48xf32> to vector<1x48xf32>
    %334 = tpu.concatenate %332, %333 in 0 : vector<1x48xf32>, vector<1x48xf32> -> vector<2x48xf32>
    %c864 = arith.constant 864 : index
    %c0_185 = arith.constant 0 : index
    %335 = vector.load %arg5[%c864, %c0_185] : memref<1152x12xf32, #tpu.memory_space<vmem>>, vector<48x12xf32>
    %cst_186 = arith.constant dense<0.000000e+00> : vector<2x12xf32>
    %336 = tpu.matmul %334, %335, %cst_186 {dimension_numbers = #tpu.dot_dimension_numbers<[1], [0], [0], [1], [0, 0, 1, 1], [], []>} : vector<2x48xf32>, vector<48x12xf32>, vector<2x12xf32> -> vector<2x12xf32>
    %c912 = arith.constant 912 : index
    %c0_187 = arith.constant 0 : index
    %337 = vector.load %arg5[%c912, %c0_187] : memref<1152x12xf32, #tpu.memory_space<vmem>>, vector<48x12xf32>
    %cst_188 = arith.constant dense<0.000000e+00> : vector<2x12xf32>
    %338 = tpu.matmul %331, %337, %cst_188 {dimension_numbers = #tpu.dot_dimension_numbers<[1], [0], [0], [1], [0, 0, 1, 1], [], []>} : vector<2x48xf32>, vector<48x12xf32>, vector<2x12xf32> -> vector<2x12xf32>
    %339 = arith.addf %336, %338 : vector<2x12xf32>
    %cst_189 = arith.constant 0.000000e+00 : f32
    %340 = vector.broadcast %cst_189 : f32 to vector<1x48xf32>
    %341 = vector.extract_strided_slice %331 {offsets = [1, 0], sizes = [1, 48], strides = [1, 1]} : vector<2x48xf32> to vector<1x48xf32>
    %342 = tpu.concatenate %341, %340 in 0 : vector<1x48xf32>, vector<1x48xf32> -> vector<2x48xf32>
    %c960 = arith.constant 960 : index
    %c0_190 = arith.constant 0 : index
    %343 = vector.load %arg5[%c960, %c0_190] : memref<1152x12xf32, #tpu.memory_space<vmem>>, vector<48x12xf32>
    %cst_191 = arith.constant dense<0.000000e+00> : vector<2x12xf32>
    %344 = tpu.matmul %342, %343, %cst_191 {dimension_numbers = #tpu.dot_dimension_numbers<[1], [0], [0], [1], [0, 0, 1, 1], [], []>} : vector<2x48xf32>, vector<48x12xf32>, vector<2x12xf32> -> vector<2x12xf32>
    %345 = arith.addf %339, %344 : vector<2x12xf32>
    %346 = tpu.concatenate %313, %345 in 1 : vector<2x24xf32>, vector<2x12xf32> -> vector<2x36xf32>
    %c34 = arith.constant 34 : index
    %c0_192 = arith.constant 0 : index
    %347 = vector.load %arg3[%c34, %c0_192] : memref<40x48xf32, #tpu.memory_space<vmem>>, vector<1x36xf32>
    %c35 = arith.constant 35 : index
    %c0_193 = arith.constant 0 : index
    %348 = vector.load %arg3[%c35, %c0_193] : memref<40x48xf32, #tpu.memory_space<vmem>>, vector<1x36xf32>
    %c36 = arith.constant 36 : index
    %c0_194 = arith.constant 0 : index
    %349 = vector.load %arg3[%c36, %c0_194] : memref<40x48xf32, #tpu.memory_space<vmem>>, vector<1x48xf32>
    %c37 = arith.constant 37 : index
    %c0_195 = arith.constant 0 : index
    %350 = vector.load %arg3[%c37, %c0_195] : memref<40x48xf32, #tpu.memory_space<vmem>>, vector<1x48xf32>
    %c336_196 = arith.constant 336 : index
    %c0_197 = arith.constant 0 : index
    %351 = vector.load %arg4[%c336_196, %c0_197] : memref<384x48xf32, #tpu.memory_space<vmem>>, vector<36x48xf32>
    %352 = vector.broadcast %347 : vector<1x36xf32> to vector<2x36xf32>
    %353 = arith.mulf %346, %352 : vector<2x36xf32>
    %354 = vector.broadcast %348 : vector<1x36xf32> to vector<2x36xf32>
    %355 = arith.addf %353, %354 : vector<2x36xf32>
    %cst_198 = arith.constant 0.000000e+00 : f32
    %356 = vector.broadcast %cst_198 : f32 to vector<2x36xf32>
    %357 = arith.maximumf %355, %356 : vector<2x36xf32>
    %cst_199 = arith.constant dense<0.000000e+00> : vector<2x48xf32>
    %358 = tpu.matmul %357, %351, %cst_199 {dimension_numbers = #tpu.dot_dimension_numbers<[1], [0], [0], [1], [0, 0, 1, 1], [], []>} : vector<2x36xf32>, vector<36x48xf32>, vector<2x48xf32> -> vector<2x48xf32>
    %359 = vector.broadcast %349 : vector<1x48xf32> to vector<2x48xf32>
    %360 = arith.mulf %358, %359 : vector<2x48xf32>
    %361 = vector.broadcast %350 : vector<1x48xf32> to vector<2x48xf32>
    %362 = arith.addf %360, %361 : vector<2x48xf32>
    %cst_200 = arith.constant 0.000000e+00 : f32
    %363 = vector.broadcast %cst_200 : f32 to vector<2x48xf32>
    %364 = arith.maximumf %362, %363 : vector<2x48xf32>
    %cst_201 = arith.constant 0.000000e+00 : f32
    %365 = vector.broadcast %cst_201 : f32 to vector<1x48xf32>
    %366 = vector.extract_strided_slice %364 {offsets = [0, 0], sizes = [1, 48], strides = [1, 1]} : vector<2x48xf32> to vector<1x48xf32>
    %367 = tpu.concatenate %365, %366 in 0 : vector<1x48xf32>, vector<1x48xf32> -> vector<2x48xf32>
    %c1008 = arith.constant 1008 : index
    %c0_202 = arith.constant 0 : index
    %368 = vector.load %arg5[%c1008, %c0_202] : memref<1152x12xf32, #tpu.memory_space<vmem>>, vector<48x12xf32>
    %cst_203 = arith.constant dense<0.000000e+00> : vector<2x12xf32>
    %369 = tpu.matmul %367, %368, %cst_203 {dimension_numbers = #tpu.dot_dimension_numbers<[1], [0], [0], [1], [0, 0, 1, 1], [], []>} : vector<2x48xf32>, vector<48x12xf32>, vector<2x12xf32> -> vector<2x12xf32>
    %c1056 = arith.constant 1056 : index
    %c0_204 = arith.constant 0 : index
    %370 = vector.load %arg5[%c1056, %c0_204] : memref<1152x12xf32, #tpu.memory_space<vmem>>, vector<48x12xf32>
    %cst_205 = arith.constant dense<0.000000e+00> : vector<2x12xf32>
    %371 = tpu.matmul %364, %370, %cst_205 {dimension_numbers = #tpu.dot_dimension_numbers<[1], [0], [0], [1], [0, 0, 1, 1], [], []>} : vector<2x48xf32>, vector<48x12xf32>, vector<2x12xf32> -> vector<2x12xf32>
    %372 = arith.addf %369, %371 : vector<2x12xf32>
    %cst_206 = arith.constant 0.000000e+00 : f32
    %373 = vector.broadcast %cst_206 : f32 to vector<1x48xf32>
    %374 = vector.extract_strided_slice %364 {offsets = [1, 0], sizes = [1, 48], strides = [1, 1]} : vector<2x48xf32> to vector<1x48xf32>
    %375 = tpu.concatenate %374, %373 in 0 : vector<1x48xf32>, vector<1x48xf32> -> vector<2x48xf32>
    %c1104 = arith.constant 1104 : index
    %c0_207 = arith.constant 0 : index
    %376 = vector.load %arg5[%c1104, %c0_207] : memref<1152x12xf32, #tpu.memory_space<vmem>>, vector<48x12xf32>
    %cst_208 = arith.constant dense<0.000000e+00> : vector<2x12xf32>
    %377 = tpu.matmul %375, %376, %cst_208 {dimension_numbers = #tpu.dot_dimension_numbers<[1], [0], [0], [1], [0, 0, 1, 1], [], []>} : vector<2x48xf32>, vector<48x12xf32>, vector<2x12xf32> -> vector<2x12xf32>
    %378 = arith.addf %372, %377 : vector<2x12xf32>
    %379 = tpu.concatenate %346, %378 in 1 : vector<2x36xf32>, vector<2x12xf32> -> vector<2x48xf32>
    %c38 = arith.constant 38 : index
    %c0_209 = arith.constant 0 : index
    %380 = vector.load %arg3[%c38, %c0_209] : memref<40x48xf32, #tpu.memory_space<vmem>>, vector<1x48xf32>
    %c39 = arith.constant 39 : index
    %c0_210 = arith.constant 0 : index
    %381 = vector.load %arg3[%c39, %c0_210] : memref<40x48xf32, #tpu.memory_space<vmem>>, vector<1x48xf32>
    %382 = vector.broadcast %380 : vector<1x48xf32> to vector<2x48xf32>
    %383 = arith.mulf %379, %382 : vector<2x48xf32>
    %384 = vector.broadcast %381 : vector<1x48xf32> to vector<2x48xf32>
    %385 = arith.addf %383, %384 : vector<2x48xf32>
    %cst_211 = arith.constant 0.000000e+00 : f32
    %386 = vector.broadcast %cst_211 : f32 to vector<2x48xf32>
    %387 = arith.maximumf %385, %386 : vector<2x48xf32>
    %cst_212 = arith.constant dense<0.000000e+00> : vector<48xf32>
    %388 = vector.multi_reduction <add>, %387, %cst_212 [0] : vector<2x48xf32> to vector<48xf32>
    %389 = vector.shape_cast %388 : vector<48xf32> to vector<1x48xf32>
    %cst_213 = arith.constant 2.000000e+00 : f32
    %390 = vector.broadcast %cst_213 : f32 to vector<1x48xf32>
    %391 = arith.divf %389, %390 : vector<1x48xf32>
    %c0_214 = arith.constant 0 : index
    %c0_215 = arith.constant 0 : index
    %392 = vector.load %arg7[%c0_214, %c0_215] : memref<49x10xf32, #tpu.memory_space<vmem>>, vector<48x10xf32>
    %cst_216 = arith.constant dense<0.000000e+00> : vector<1x10xf32>
    %393 = tpu.matmul %391, %392, %cst_216 {dimension_numbers = #tpu.dot_dimension_numbers<[1], [0], [0], [1], [0, 0, 1, 1], [], []>} : vector<1x48xf32>, vector<48x10xf32>, vector<1x10xf32> -> vector<1x10xf32>
    %c48_217 = arith.constant 48 : index
    %c0_218 = arith.constant 0 : index
    %394 = vector.load %arg7[%c48_217, %c0_218] : memref<49x10xf32, #tpu.memory_space<vmem>>, vector<1x10xf32>
    %395 = arith.addf %393, %394 : vector<1x10xf32>
    %cst_219 = arith.constant dense<0xFF800000> : vector<1xf32>
    %396 = vector.multi_reduction <maximumf>, %395, %cst_219 [1] : vector<1x10xf32> to vector<1xf32>
    %397 = vector.shape_cast %396 : vector<1xf32> to vector<1x1xf32>
    %398 = vector.broadcast %397 : vector<1x1xf32> to vector<1x10xf32>
    %399 = arith.subf %395, %398 : vector<1x10xf32>
    %400 = math.exp %399 : vector<1x10xf32>
    %cst_220 = arith.constant dense<0.000000e+00> : vector<1xf32>
    %401 = vector.multi_reduction <add>, %400, %cst_220 [1] : vector<1x10xf32> to vector<1xf32>
    %402 = vector.shape_cast %401 : vector<1xf32> to vector<1x1xf32>
    %403 = vector.broadcast %402 : vector<1x1xf32> to vector<1x10xf32>
    %404 = arith.divf %400, %403 : vector<1x10xf32>
    %c0_221 = arith.constant 0 : index
    %c0_222 = arith.constant 0 : index
    %c0_223 = arith.constant 0 : index
    %405 = vector.load %arg8[%c0_221, %c0_222, %c0_223] : memref<1x1x10xf32, #tpu.memory_space<vmem>>, vector<1x1x10xf32>
    %406 = vector.shape_cast %405 : vector<1x1x10xf32> to vector<1x10xf32>
    %407 = vector.shape_cast %404 : vector<1x10xf32> to vector<1x1x10xf32>
    tpu.vector_store %arg8[%c0_221, %c0_222, %c0_223], %407 {strides = array<i32>} : memref<1x1x10xf32, #tpu.memory_space<vmem>>, vector<1x1x10xf32>,
    return
  }
  func.func @transform_0(%arg0: i32) -> (i32, i32, i32) {
    %c0_i32 = arith.constant 0 : i32
    %c0_i32_0 = arith.constant 0 : i32
    %c0_i32_1 = arith.constant 0 : i32
    return %arg0, %c0_i32, %c0_i32_0 : i32, i32, i32
  }
  func.func @transform_1(%arg0: i32) -> (i32, i32) {
    %c0_i32 = arith.constant 0 : i32
    %c0_i32_0 = arith.constant 0 : i32
    %c0_i32_1 = arith.constant 0 : i32
    return %c0_i32, %c0_i32_0 : i32, i32
  }
  func.func @transform_2(%arg0: i32) -> (i32, i32) {
    %c0_i32 = arith.constant 0 : i32
    %c0_i32_0 = arith.constant 0 : i32
    %c0_i32_1 = arith.constant 0 : i32
    return %c0_i32, %c0_i32_0 : i32, i32
  }
  func.func @transform_3(%arg0: i32) -> (i32, i32) {
    %c0_i32 = arith.constant 0 : i32
    %c0_i32_0 = arith.constant 0 : i32
    %c0_i32_1 = arith.constant 0 : i32
    return %c0_i32, %c0_i32_0 : i32, i32
  }
  func.func @transform_4(%arg0: i32) -> (i32, i32) {
    %c0_i32 = arith.constant 0 : i32
    %c0_i32_0 = arith.constant 0 : i32
    %c0_i32_1 = arith.constant 0 : i32
    return %c0_i32, %c0_i32_0 : i32, i32
  }
  func.func @transform_5(%arg0: i32) -> (i32, i32) {
    %c0_i32 = arith.constant 0 : i32
    %c0_i32_0 = arith.constant 0 : i32
    %c0_i32_1 = arith.constant 0 : i32
    return %c0_i32, %c0_i32_0 : i32, i32
  }
  func.func @transform_6(%arg0: i32) -> (i32, i32) {
    %c0_i32 = arith.constant 0 : i32
    %c0_i32_0 = arith.constant 0 : i32
    %c0_i32_1 = arith.constant 0 : i32
    return %c0_i32, %c0_i32_0 : i32, i32
  }
  func.func @transform_7(%arg0: i32) -> (i32, i32, i32) {
    %c0_i32 = arith.constant 0 : i32
    %c0_i32_0 = arith.constant 0 : i32
    %c0_i32_1 = arith.constant 0 : i32
    return %arg0, %c0_i32, %c0_i32_0 : i32, i32, i32
  }
}

</mosaic_0001>

<bundles_post_ra>
// kernel: densenet_forward.1
= control target key start
LH: loop header
LB: loop body
LE: loop exit
PB: predicated region body
PF: predicated region fallthrough
CT: control target
= control target key end

     0   :  { %12 = vsyncpa [#allocation4], 0  ;;  %s6997_s0 = inlined_call_operand.vmem [shape: f32[2,64,1], index: 0, kind: input, shape index: {}]   ;;  %s6998_s1 = inlined_call_operand.vmem [shape: f32[7,24], index: 1, kind: input, shape index: {}]   ;;  %s6999_s2 = inlined_call_operand.vmem [shape: f32[40,48], index: 2, kind: input, shape index: {}]   ;;  %s7000_s3 = inlined_call_operand.vmem [shape: f32[384,48], index: 3, kind: input, shape index: {}]   ;;  %s7001_s4 = inlined_call_operand.vmem [shape: f32[1152,12], index: 4, kind: input, shape index: {}]   ;;  %s7002_s5 = inlined_call_operand.vmem [shape: f32[144,24], index: 5, kind: input, shape index: {}]   ;;  %s7003_s6 = inlined_call_operand.vmem [shape: f32[49,10], index: 6, kind: input, shape index: {}]   ;;  %s7004_s7 = inlined_call_operand.hbm [shape: f32[2,1,10], index: 7, kind: output, shape index: {}]  }
   0x1   :  { %14 = vsyncpa [#allocation4 + $0x1], 0  ;;  %s5612_s24 = smov 0   ;;  %s5614_s25 = smov 0  }
   0x2   :  { %s5616_s26 = smov 0   ;;  %s5618_s27 = smov 0  }
   0x3 LB: > { %s5633_s28 = sadd.s32 4294967295, %s5563_s27   ;;  %s4247_s29 = sadd.s32 4294967294, %s5563_s27   ;;  %s5563_s27 = sphi %s5618_s27, %s7010_s27   ;;  %s5559_s26 = sphi %s5616_s26, %s7009_s26   ;;  %s5555_s25 = sphi %s5614_s25, %s7008_s25   ;;  %s5551_s24 = sphi %s5612_s24, %s7007_s24  }
   0x4   : > { %s5637_s30 = sadd.s32 1, %s5563_s27   ;;  %s179_s8 = sadd.s32 1, %s5559_s26 }
   0x5   : > { %s176_s9 = ssub.s32 %s5563_s27, %s5637_s30  ;;  %p189_p0 = scmp.ne.s32.totalorder %s5559_s26, %s5555_s25 }
   0x6   : > { %p177_p1 = scmp.eq.s32.totalorder %s176_s9, 0  ;;  %p190_p2 = scmp.eq.s32.totalorder %s5633_s28, 1 }
   0x7   : > { %p195_p3 = scmp.ne.s32.totalorder %s5555_s25, %s5551_s24  ;;  %p196_p4 = scmp.eq.s32.totalorder %s4247_s29, 1 }
   0x8   : > { %s5648_s10 = scalar_select %p177_p1, %s5559_s26, %s179_s8  }
   0x9   : > { %p5650_p5 = por %p190_p2, %p189_p0  ;;  %p5654_p6 = por %p196_p4, %p195_p3 }
   0xa   : > { %p4250_p7 = scmp.ge.s32.totalorder %s5563_s27, 1  ;;  %p240_p8 = scmp.lt.s32.totalorder %s5563_s27, 3 }
   0xc   : > { %p241_p9 = pnand %p4250_p7, %p240_p8 }
   0xd   : > { %p271_p10 = scmp.lt.s32.totalorder (!%p241_p9), %s5633_s28, 1  ;;  %v5565_v0 = vmov (!%p241_p9), 0   ;;  %vm292_vm0 = vcmask (!%p241_p9), 1042432   ;;  %vm364_vm1 = vcmask (!%p241_p9), 1041408   ;;  %vm561_vm2 = vcmask (!%p241_p9), 1046528   ;;  %s5566_s9 = smov (!%p241_p9), 24  }
   0xe   : > { %244 = sbr.rel (%p241_p9) target bundleno = 6162 (0x1812), region = 48  ;;  %5496 = vset.pattern.permute.xlu1 (!%p241_p9), %v5565_v0  ;;  %5495 = vset.pattern.permute.xlu0 (!%p241_p9), %v5565_v0  ;;  %vm633_vm3 = vcmask (!%p241_p9), 1045504   ;;  %vm705_vm4 = vcmask (!%p241_p9), 1044480   ;;  %vm436_vm5 = vcmask (!%p241_p9), 1040384   ;;  %vm777_vm6 = vcmask (!%p241_p9), 195584   ;;  %s4349_s15 = sshll.u32 (!%p241_p9), %s5633_s28, 4 }
   0xf   : > { %vm970_vm7 = vcmask (!%p241_p9), 392192   ;;  %vm1263_vm8 = vcmask (!%p241_p9), 1043456   ;;  %vm1256_vm9 = vcmask (!%p241_p9), 293888   ;;  %vm5569_vm10 = vmmov (!%p241_p9), 0   ;;  %s6954_s20 = scalar_lea.hbm (!%p241_p9), %s7004_s7, %s4349_s15 }
  0x10   : > { %vm3350_vm11 = vcmask (!%p241_p9), 191488   ;;  %vm4076_vm12 = vcmask (!%p241_p9), 386048   ;;  %vm4166_vm13 = vcmask (!%p241_p9), 73728  }
  0x15   : > { %s272_s13 = scalar_select %p271_p10, %s5633_s28, 1 }
  0x16   : > { %s5571_s28 = smov [#allocation3]  }
  0x17   : > { %s4352_s14 = sshll.u32 %s272_s13, 6  ;;  %s5567_s13 = smov 36  }
  0x18   : > { %s275_s17 = scalar_lea.vmem %s6997_s0, %s4352_s14  ;;  %s269_s14 = sand.u32 1, %s5555_s25  }
  0x19   : > { %v5665_v1 = vld [vmem:[%s275_s17 + $0x8] sm:$0xff]  ;;  %v5667_v2 = vld [vmem:[%s275_s17 + $0x10] sm:$0xff]  ;;  %v5669_v3 = vld [vmem:[%s275_s17] sm:$0xff]  ;;  %s270_s16 = scalar_lea.vmem [#allocation3], %s269_s14  ;;  %s4180_s21 = scalar_lea.sflag [#allocation4], %s269_s14 }
  0x1a   : > { %v294_v4 = vrot.slane %v5665_v1, 5  ;;  %v296_v5 = vrot.slane %v5667_v2, 5  ;;  %v293_v6 = vrot.slane %v5669_v3, 5  ;;  %v5674_v7 = vld [vmem:[%s275_s17 + $0x18] sm:$0xff]  ;;  %v365_v13 = vrot.slane %v5669_v3, 6  ;;  %v5685_v17 = vld [vmem:[%s275_s17 + $0x20] sm:$0xff] }
  0x1b   : > { %v298_v8 = vrot.slane %v5674_v7, 5  ;;  %v366_v14 = vrot.slane %v5665_v1, 6  ;;  %v368_v15 = vrot.slane %v5667_v2, 6  ;;  %v370_v16 = vrot.slane %v5674_v7, 6  ;;  %v5689_v20 = vld [vmem:[%s275_s17 + $0x28] sm:$0xff]  ;;  %v5691_v21 = vld [vmem:[%s275_s17 + $0x30] sm:$0xff] }
  0x1c   : > { %v297_v9 = vsel %vm292_vm0, %v294_v4, %v296_v5  ;;  %v309_v10 = vsel %vm292_vm0, 0.0, %v293_v6  ;;  %v295_v12 = vsel %vm292_vm0, %v293_v6, %v294_v4  ;;  %v381_v19 = vsel %vm364_vm1, 0.0, %v365_v13  ;;  %v5693_v22 = vld [vmem:[%s275_s17 + $0x38] sm:$0xff]  ;;  %s4192_s17 = sshll.u32 %s270_s16, 4  ;;  %s5505_s23 = sshll.u32 %s5571_s28, 4  ;;  %s6956_s17 = int_to_ptr.vmem [resolvable:$true] %s4192_s17  ;;  %s5506_s23 = int_to_ptr.vmem [resolvable:$false] %s5505_s23 }
  0x1d   : > { %321 = vperm.xlu1 %5496, %v297_v9   ;;  %313 = vperm.xlu0 %5495, %v309_v10   ;;  %v299_v11 = vsel %vm292_vm0, %v296_v5, %v298_v8  ;;  %v367_v18 = vsel %vm364_vm1, %v365_v13, %v366_v14  ;;  %v371_v23 = vsel %vm364_vm1, %v368_v15, %v370_v16  ;;  %v300_v24 = vrot.slane %v5685_v17, 5  ;;  %s5501_s22 = scalar_lea.vmem %s6956_s17, 16  ;;  %p5508_p0 = scmp.lt.s32.totalorder %s6956_s17, %s5506_s23 }
  0x1e   : > { %v302_v25 = vrot.slane %v5689_v20, 5  ;;  %v304_v26 = vrot.slane %v5691_v21, 5  ;;  %v306_v27 = vrot.slane %v5693_v22, 5  ;;  %v563_v28 = vrot.slane %v5665_v1, 1  ;;  %p5502_p11 = scmp.ne.s32.totalorder %s6956_s17, %s5501_s22 }
  0x1f   : > { %v369_v29 = vsel %vm364_vm1, %v366_v14, %v368_v15  ;;  %v565_v30 = vrot.slane %v5667_v2, 1  ;;  %v562_v31 = vrot.slane %v5669_v3, 1  ;;  %v567_v32 = vrot.slane %v5674_v7, 1 }
  0x20   : > { %v635_v36 = vrot.slane %v5665_v1, 2  ;;  %v303_v37 = vsel %vm292_vm0, %v300_v24, %v302_v25  ;;  %v301_v38 = vsel %vm292_vm0, %v298_v8, %v300_v24  ;;  %v307_v39 = vsel %vm292_vm0, %v304_v26, %v306_v27  ;;  %p5503_p12 = pnand %p5502_p11, %p5650_p5 }
  0x21   : > { %325 = vperm.xlu1 %5496, %v299_v11   ;;  %317 = vperm.xlu0 %5495, %v295_v12   ;;  %v5708_v33 = vsel %vm561_vm2, %v563_v28, %v565_v30  ;;  %v5711_v34 = vsel %vm561_vm2, %v562_v31, %v563_v28  ;;  %v5716_v35 = vsel %vm561_vm2, %v565_v30, %v567_v32  ;;  %v372_v40 = vrot.slane %v5685_v17, 6 }
  0x22   : > { %v305_v41 = vsel %vm292_vm0, %v302_v25, %v304_v26  ;;  %v637_v42 = vrot.slane %v5667_v2, 2  ;;  %v634_v43 = vrot.slane %v5669_v3, 2  ;;  %v639_v44 = vrot.slane %v5674_v7, 2  ;;  %p5504_p13 = pneg %p5503_p12 }
  0x23   : > { %v641_v45 = vrot.slane %v5685_v17, 2  ;;  %v643_v46 = vrot.slane %v5689_v20, 2  ;;  %v645_v47 = vrot.slane %v5691_v21, 2  ;;  %v647_v48 = vrot.slane %v5693_v22, 2 }
  0x24   : > { %v5732_v49 = vsel %vm633_vm3, %v635_v36, %v637_v42  ;;  %v5735_v50 = vsel %vm633_vm3, %v634_v43, %v635_v36  ;;  %v5738_v51 = vsel %vm633_vm3, %v637_v42, %v639_v44  ;;  %v707_v52 = vrot.slane %v5665_v1, 3 }
  0x25   : > { %389 = vperm.xlu1 %5496, %v367_v18   ;;  %385 = vperm.xlu0 %5495, %v381_v19   ;;  %v374_v53 = vrot.slane %v5689_v20, 6  ;;  %v5743_v54 = vsel %vm633_vm3, %v639_v44, %v641_v45  ;;  %v5746_v55 = vsel %vm633_vm3, %v643_v46, %v645_v47  ;;  %v5749_v56 = vsel %vm633_vm3, %v641_v45, %v643_v46  ;;  %v840_v45 = vld [vmem:[%s7000_s3 + $0x8] sm:$0xff] }
  0x26   : > { %v5754_v57 = vsel %vm633_vm3, %v645_v47, %v647_v48  ;;  %v709_v58 = vrot.slane %v5667_v2, 3  ;;  %v706_v59 = vrot.slane %v5669_v3, 3  ;;  %v711_v60 = vrot.slane %v5674_v7, 3 }
  0x27   : > { %v713_v61 = vrot.slane %v5685_v17, 3  ;;  %v715_v62 = vrot.slane %v5689_v20, 3  ;;  %v717_v63 = vrot.slane %v5691_v21, 3  ;;  %v719_v0 = vrot.slane %v5693_v22, 3 }
  0x28   : > { %v5764_v4 = vsel %vm705_vm4, %v707_v52, %v709_v58  ;;  %v5767_v5 = vsel %vm705_vm4, %v706_v59, %v707_v52  ;;  %v5770_v6 = vsel %vm705_vm4, %v709_v58, %v711_v60  ;;  %v376_v8 = vrot.slane %v5691_v21, 6  ;;  %v841_v58 = vld [vmem:[%s7000_s3 + $0x10] sm:$0xff] }
  0x29   : > { %397 = vperm.xlu1 %5496, %v371_v23   ;;  %393 = vperm.xlu0 %5495, %v369_v29   ;;  %v5774_v9 = vsel %vm705_vm4, %v711_v60, %v713_v61  ;;  %v5777_v10 = vsel %vm705_vm4, %v715_v62, %v717_v63  ;;  %v5780_v11 = vsel %vm705_vm4, %v713_v61, %v715_v62  ;;  %v378_v14 = vrot.slane %v5693_v22, 6 }
  0x2a   : > { %v375_v12 = vsel %vm364_vm1, %v372_v40, %v374_v53  ;;  %v373_v13 = vsel %vm364_vm1, %v370_v16, %v372_v40  ;;  %v5790_v15 = vsel %vm705_vm4, %v717_v63, %v719_v0  ;;  %v377_v19 = vsel %vm364_vm1, %v374_v53, %v376_v8 }
  0x2b   : > { %v379_v18 = vsel %vm364_vm1, %v376_v8, %v378_v14  ;;  %v437_v23 = vrot.slane %v5669_v3, 7  ;;  %v438_v24 = vrot.slane %v5665_v1, 7  ;;  %v440_v26 = vrot.slane %v5667_v2, 7 }
  0x2c   : > { %v442_v27 = vrot.slane %v5674_v7, 7  ;;  %v444_v30 = vrot.slane %v5685_v17, 7  ;;  %v446_v31 = vrot.slane %v5689_v20, 7  ;;  %v569_v42 = vrot.slane %v5685_v17, 1 }
  0x2d   : > { %333 = vperm.xlu1 %5496, %v303_v37   ;;  %329 = vperm.xlu0 %5495, %v301_v38   ;;  %v439_v16 = vsel %vm436_vm5, %v437_v23, %v438_v24  ;;  %v453_v25 = vsel %vm436_vm5, 0.0, %v437_v23  ;;  %v441_v29 = vsel %vm436_vm5, %v438_v24, %v440_v26  ;;  %v448_v38 = vrot.slane %v5691_v21, 7 }
  0x2e   : > { %v443_v28 = vsel %vm436_vm5, %v440_v26, %v442_v27  ;;  %v447_v36 = vsel %vm436_vm5, %v444_v30, %v446_v31  ;;  %v445_v37 = vsel %vm436_vm5, %v442_v27, %v444_v30 }
  0x31   : > { %341 = vperm.xlu1 %5496, %v307_v39   ;;  %337 = vperm.xlu0 %5495, %v305_v41   ;;  %v450_v39 = vrot.slane %v5693_v22, 7  ;;  %v449_v41 = vsel %vm436_vm5, %v446_v31, %v448_v38 }
  0x33   : > { %v451_v40 = vsel %vm436_vm5, %v448_v38, %v450_v39 }
  0x35   : > { %405 = vperm.xlu1 %5496, %v375_v12   ;;  %401 = vperm.xlu0 %5495, %v373_v13  }
  0x39   : > { %413 = vperm.xlu1 %5496, %v379_v18   ;;  %409 = vperm.xlu0 %5495, %v377_v19  }
  0x3d   : > { %461 = vperm.xlu1 %5496, %v439_v16   ;;  %457 = vperm.xlu0 %5495, %v453_v25  }
  0x41   : > { %469 = vperm.xlu1 %5496, %v443_v28   ;;  %465 = vperm.xlu0 %5495, %v441_v29  }
  0x45   : > { %477 = vperm.xlu1 %5496, %v447_v36   ;;  %473 = vperm.xlu0 %5495, %v445_v37  }
  0x49   : > { %485 = vperm.xlu1 %5496, %v451_v40   ;;  %481 = vperm.xlu0 %5495, %v449_v41  }
  0x4d   : > { %514 = vperm.xlu1 %5496, %v5665_v1   ;;  %510 = vperm.xlu0 %5495, %v5669_v3   ;;  %v570_v1 = vsel %vm561_vm2, %v567_v32, %v569_v42  ;;  %v573_v3 = vrot.slane %v5691_v21, 1 }
  0x51   : > { %522 = vperm.xlu1 %5496, %v5674_v7   ;;  %518 = vperm.xlu0 %5495, %v5667_v2   ;;  %v571_v2 = vrot.slane %v5689_v20, 1 }
  0x53   : > { %v574_v43 = vsel %vm561_vm2, %v571_v2, %v573_v3  ;;  %v572_v44 = vsel %vm561_vm2, %v569_v42, %v571_v2 }
  0x55   : > { %530 = vperm.xlu1 %5496, %v5689_v20   ;;  %526 = vperm.xlu0 %5495, %v5685_v17   ;;  %v575_v17 = vrot.slane %v5693_v22, 1  ;;  %v650_v20 = vsel %vm633_vm3, %v647_v48, 0.0 }
  0x57   : > { %v576_v7 = vsel %vm561_vm2, %v573_v3, %v575_v17 }
  0x59   : > { %538 = vperm.xlu1 %5496, %v5693_v22   ;;  %534 = vperm.xlu0 %5495, %v5691_v21   ;;  %v722_v21 = vsel %vm705_vm4, %v719_v0, 0.0  ;;  %v4253_v22 = vld [vmem:[%s6998_s1] ss:$0 sm:$0xff] }
  0x5d   : > { %585 = vperm.xlu1 %5496, %v5708_v33   ;;  %581 = vperm.xlu0 %5495, %v5711_v34   ;;  %v578_v33 = vsel %vm561_vm2, %v575_v17, 0.0 }
  0x61   : > { %593 = vperm.xlu1 %5496, %v570_v1   ;;  %589 = vperm.xlu0 %5495, %v5716_v35   ;;  %v839_v35 = vld [vmem:[%s7000_s3] sm:$0xff] }
  0x62   : > { %v5106_v46 = vpack.c.bf16 %v840_v45, %v839_v35 }
  0x64   : > { %5107 = vmatprep.subr.bf16.mxu0 %v5106_v46 }
  0x65   : > { %601 = vperm.xlu1 %5496, %v574_v43   ;;  %597 = vperm.xlu0 %5495, %v572_v44  }
  0x66   : > { %5109 = vmatpush3.bf16.msra.mxu0 %v5106_v46 }
  0x67   : > { %4602 = vmatprep.subr.mxu0 %v841_v58 }
  0x69   : > { %610 = vperm.xlu1 %5496, %v578_v33   ;;  %605 = vperm.xlu0 %5495, %v576_v7  }
  0x6a   : > { %4603 = vmatpush3.msra.mxu0 %v841_v58 }
  0x6d   : > { %657 = vperm.xlu1 %5496, %v5732_v49   ;;  %653 = vperm.xlu0 %5495, %v5735_v50   ;;  %v4254_v49 = vld [vmem:[%s6998_s1 + $0x1] ss:$0 sm:$0xff] }
  0x71   : > { %665 = vperm.xlu1 %5496, %v5743_v54   ;;  %661 = vperm.xlu0 %5495, %v5738_v51  }
  0x75   : > { %673 = vperm.xlu1 %5496, %v5746_v55   ;;  %669 = vperm.xlu0 %5495, %v5749_v56  }
  0x79   : > { %682 = vperm.xlu1 %5496, %v650_v20   ;;  %677 = vperm.xlu0 %5495, %v5754_v57  }
  0x7d   : > { %729 = vperm.xlu1 %5496, %v5764_v4   ;;  %725 = vperm.xlu0 %5495, %v5767_v5   ;;  %v964_v4 = vld [vmem:[%s7001_s4 + $0x30] sm:$0xff]  ;;  %v965_v5 = vld [vmem:[%s7001_s4 + $0x38] sm:$0xff] }
  0x81   : > { %737 = vperm.xlu1 %5496, %v5774_v9   ;;  %733 = vperm.xlu0 %5495, %v5770_v6   ;;  %v5110_v9 = vpack.c.bf16 %v965_v5, %v964_v4 }
  0x83   : > { %5111 = vmatprep.subr.bf16.mxu1 %v5110_v9 }
  0x84   : > { %5113 = vmatpush3.bf16.msra.mxu1 %v5110_v9 }
  0x85   : > { %745 = vperm.xlu1 %5496, %v5777_v10   ;;  %741 = vperm.xlu0 %5495, %v5780_v11  }
  0x89   : > { %754 = vperm.xlu1 %5496, %v722_v21   ;;  %749 = vperm.xlu0 %5495, %v5790_v15  }
  0x9c   : > { %v322_v32 = vpop.permute.xlu1 %321  ;;  %v314_v34 = vpop.permute.xlu0 %313 }
  0x9d   : > { %v348_v52 = vmul.f32 %v4253_v22, %v314_v34  ;;  %v350_v61 = vmul.f32 %v4253_v22, %v322_v32 }
  0xa0   : > { %v326_v47 = vpop.permute.xlu1 %325  ;;  %v318_v48 = vpop.permute.xlu0 %317 }
  0xa1   : > { %v349_v53 = vmul.f32 %v4253_v22, %v318_v48  ;;  %v351_v62 = vmul.f32 %v4253_v22, %v326_v47 }
  0xa4   : > { %v390_v50 = vpop.permute.xlu1 %389  ;;  %v386_v51 = vpop.permute.xlu0 %385 }
  0xa5   : > { %v421_v54 = vmul.f32 %v4254_v49, %v390_v50  ;;  %v420_v55 = vmul.f32 %v4254_v49, %v386_v51 }
  0xa7   : > { %v5864_v56 = vadd.f32 %v421_v54, %v349_v53  ;;  %v5866_v57 = vadd.f32 %v420_v55, %v348_v52  ;;  %v4255_v52 = vld [vmem:[%s6998_s1 + $0x2] ss:$0 sm:$0xff]  ;;  %v4256_v55 = vld [vmem:[%s6998_s1 + $0x3] ss:$0 sm:$0xff] }
  0xa8   : > { %v398_v59 = vpop.permute.xlu1 %397  ;;  %v394_v60 = vpop.permute.xlu0 %393 }
  0xa9   : > { %v423_v63 = vmul.f32 %v4254_v49, %v398_v59  ;;  %v422_v0 = vmul.f32 %v4254_v49, %v394_v60 }
  0xab   : > { %v5877_v6 = vadd.f32 %v423_v63, %v351_v62  ;;  %v5879_v8 = vadd.f32 %v422_v0, %v350_v61  ;;  %v5906_v62 = vld [vmem:[%s6998_s1 + $0x4] ss:$0 sm:$0xff] }
  0xac   : > { %v334_v10 = vpop.permute.xlu1 %333  ;;  %v330_v11 = vpop.permute.xlu0 %329 }
  0xad   : > { %v353_v18 = vmul.f32 %v4253_v22, %v334_v10  ;;  %v352_v19 = vmul.f32 %v4253_v22, %v330_v11  ;;  %v5911_v11 = vld [vmem:[%s6998_s1 + $0x5] ss:$0 sm:$0xff] }
  0xb0   : > { %v342_v12 = vpop.permute.xlu1 %341  ;;  %v338_v13 = vpop.permute.xlu0 %337 }
  0xb1   : > { %v355_v28 = vmul.f32 %v4253_v22, %v342_v12  ;;  %v354_v29 = vmul.f32 %v4253_v22, %v338_v13 }
  0xb4   : > { %v406_v14 = vpop.permute.xlu1 %405  ;;  %v402_v15 = vpop.permute.xlu0 %401 }
  0xb5   : > { %v425_v23 = vmul.f32 %v4254_v49, %v406_v14  ;;  %v424_v24 = vmul.f32 %v4254_v49, %v402_v15 }
  0xb7   : > { %v5881_v16 = vadd.f32 %v425_v23, %v353_v18  ;;  %v5883_v25 = vadd.f32 %v424_v24, %v352_v19 }
  0xb8   : > { %v414_v26 = vpop.permute.xlu1 %413  ;;  %v410_v27 = vpop.permute.xlu0 %409 }
  0xb9   : > { %v427_v30 = vmul.f32 %v4254_v49, %v414_v26  ;;  %v426_v31 = vmul.f32 %v4254_v49, %v410_v27 }
  0xbb   : > { %v5885_v36 = vadd.f32 %v427_v30, %v355_v28  ;;  %v5887_v37 = vadd.f32 %v426_v31, %v354_v29 }
  0xbc   : > { %v462_v38 = vpop.permute.xlu1 %461  ;;  %v458_v39 = vpop.permute.xlu0 %457 }
  0xbd   : > { %v493_v58 = vmul.f32 %v4255_v52, %v462_v38  ;;  %v492_v59 = vmul.f32 %v4255_v52, %v458_v39 }
  0xbf   : > { %v501_v12 = vadd.f32 %v493_v58, %v5864_v56  ;;  %v500_v14 = vadd.f32 %v492_v59, %v5866_v57 }
  0xc0   : > { %v470_v40 = vpop.permute.xlu1 %469  ;;  %v466_v41 = vpop.permute.xlu0 %465 }
  0xc1   : > { %v495_v60 = vmul.f32 %v4255_v52, %v470_v40  ;;  %v494_v61 = vmul.f32 %v4255_v52, %v466_v41  ;;  %v5927_v40 = vld [vmem:[%s6998_s1 + $0x6] ss:$0 sm:$0xff] }
  0xc3   : > { %v503_v15 = vadd.f32 %v495_v60, %v5877_v6  ;;  %v502_v18 = vadd.f32 %v494_v61, %v5879_v8 }
  0xc4   : > { %v478_v42 = vpop.permute.xlu1 %477  ;;  %v474_v1 = vpop.permute.xlu0 %473 }
  0xc5   : > { %v497_v5 = vmul.f32 %v4255_v52, %v478_v42  ;;  %v496_v9 = vmul.f32 %v4255_v52, %v474_v1 }
  0xc7   : > { %v505_v56 = vadd.f32 %v497_v5, %v5881_v16  ;;  %v504_v30 = vadd.f32 %v496_v9, %v5883_v25 }
  0xc8   : > { %v486_v2 = vpop.permute.xlu1 %485  ;;  %v482_v3 = vpop.permute.xlu0 %481 }
  0xc9   : > { %v499_v41 = vmul.f32 %v4255_v52, %v486_v2  ;;  %v498_v42 = vmul.f32 %v4255_v52, %v482_v3 }
  0xcc   : > { %v515_v43 = vpop.permute.xlu1 %514  ;;  %v511_v44 = vpop.permute.xlu0 %510 }
  0xcd   : > { %v546_v63 = vmul.f32 %v4256_v55, %v515_v43  ;;  %v545_v10 = vmul.f32 %v4256_v55, %v511_v44 }
  0xcf   : > { %v554_v23 = vadd.f32 %v546_v63, %v501_v12  ;;  %v553_v31 = vadd.f32 %v545_v10, %v500_v14 }
  0xd0   : > { %v523_v17 = vpop.permute.xlu1 %522  ;;  %v519_v33 = vpop.permute.xlu0 %518 }
  0xd1   : > { %v548_v24 = vmul.f32 %v4256_v55, %v523_v17  ;;  %v547_v26 = vmul.f32 %v4256_v55, %v519_v33 }
  0xd3   : > { %v556_v43 = vadd.f32 %v548_v24, %v503_v15  ;;  %v555_v25 = vadd.f32 %v547_v26, %v502_v18 }
  0xd4   : > { %v531_v7 = vpop.permute.xlu1 %530  ;;  %v527_v20 = vpop.permute.xlu0 %526 }
  0xd5   : > { %v550_v38 = vmul.f32 %v4256_v55, %v531_v7  ;;  %v549_v6 = vmul.f32 %v4256_v55, %v527_v20 }
  0xd7   : > { %v557_v2 = vadd.f32 %v549_v6, %v504_v30 }
  0xd8   : > { %v5889_v21 = vpop.permute.xlu1 %538  ;;  %v5891_v32 = vpop.permute.xlu0 %534 }
  0xd9   : > { %v551_v60 = vmul.f32 %v4256_v55, %v5891_v32  ;;  %v506_v32 = vadd.f32 %v498_v42, %v5887_v37 }
  0xdb   : > { %v559_v18 = vadd.f32 %v551_v60, %v506_v32 }
  0xdc   : > { %v586_v34 = vpop.permute.xlu1 %585  ;;  %v582_v35 = vpop.permute.xlu0 %581 }
  0xdd   : > { %v618_v13 = vmul.f32 %v5906_v62, %v586_v34  ;;  %v617_v19 = vmul.f32 %v5906_v62, %v582_v35 }
  0xdf   : > { %v626_v39 = vadd.f32 %v618_v13, %v554_v23  ;;  %v625_v1 = vadd.f32 %v617_v19, %v553_v31 }
  0xe0   : > { %v594_v45 = vpop.permute.xlu1 %593  ;;  %v590_v46 = vpop.permute.xlu0 %589 }
  0xe1   : > { %v620_v8 = vmul.f32 %v5906_v62, %v594_v45  ;;  %v619_v16 = vmul.f32 %v5906_v62, %v590_v46 }
  0xe3   : > { %v628_v3 = vadd.f32 %v620_v8, %v556_v43  ;;  %v627_v46 = vadd.f32 %v619_v16, %v555_v25 }
  0xe4   : > { %v602_v47 = vpop.permute.xlu1 %601  ;;  %v598_v48 = vpop.permute.xlu0 %597 }
  0xe5   : > { %v621_v52 = vmul.f32 %v5906_v62, %v598_v48 }
  0xe7   : > { %v629_v12 = vadd.f32 %v621_v52, %v557_v2 }
  0xe8   : > { %v5893_v22 = vpop.permute.xlu1 %610  ;;  %v5895_v49 = vpop.permute.xlu0 %605 }
  0xec   : > { %v658_v50 = vpop.permute.xlu1 %657  ;;  %v654_v51 = vpop.permute.xlu0 %653 }
  0xed   : > { %v690_v27 = vmul.f32 %v5911_v11, %v658_v50  ;;  %v689_v57 = vmul.f32 %v5911_v11, %v654_v51  ;;  %v558_v50 = vadd.f32 %v550_v38, %v505_v56  ;;  %v622_v51 = vmul.f32 %v5906_v62, %v602_v47 }
  0xef   : > { %v698_v44 = vadd.f32 %v690_v27, %v626_v39  ;;  %v697_v20 = vadd.f32 %v689_v57, %v625_v1 }
  0xf0   : > { %v666_v53 = vpop.permute.xlu1 %665  ;;  %v662_v54 = vpop.permute.xlu0 %661 }
  0xf1   : > { %v692_v17 = vmul.f32 %v5911_v11, %v666_v53  ;;  %v691_v34 = vmul.f32 %v5911_v11, %v662_v54  ;;  %v552_v53 = vmul.f32 %v4256_v55, %v5889_v21  ;;  %v507_v21 = vadd.f32 %v499_v41, %v5885_v36 }
  0xf2   : > { %v630_v55 = vadd.f32 %v622_v51, %v558_v50 }
  0xf3   : > { %v700_v61 = vadd.f32 %v692_v17, %v628_v3  ;;  %v699_v9 = vadd.f32 %v691_v34, %v627_v46  ;;  %v560_v15 = vadd.f32 %v552_v53, %v507_v21 }
  0xf4   : > { %v674_v0 = vpop.permute.xlu1 %673  ;;  %v670_v4 = vpop.permute.xlu0 %669 }
  0xf5   : > { %v694_v54 = vmul.f32 %v5911_v11, %v674_v0  ;;  %v693_v10 = vmul.f32 %v5911_v11, %v670_v4  ;;  %v624_v0 = vmul.f32 %v5906_v62, %v5893_v22  ;;  %v623_v4 = vmul.f32 %v5906_v62, %v5895_v49 }
  0xf7   : > { %v702_v19 = vadd.f32 %v694_v54, %v630_v55  ;;  %v701_v36 = vadd.f32 %v693_v10, %v629_v12  ;;  %v632_v62 = vadd.f32 %v624_v0, %v560_v15  ;;  %v631_v27 = vadd.f32 %v623_v4, %v559_v18  ;;  %v966_v12 = vld [vmem:[%s7001_s4 + $0x40] sm:$0xff]  ;;  %v967_v4 = vld [vmem:[%s7001_s4 + $0x48] sm:$0xff]  ;;  %v969_v15 = vld [vmem:[%s7001_s4 + $0x58] sm:$0xff] }
  0xf8   : > { %v683_v28 = vpop.permute.xlu1 %682  ;;  %v678_v29 = vpop.permute.xlu0 %677 }
  0xf9   : > { %v696_v23 = vmul.f32 %v5911_v11, %v683_v28  ;;  %v695_v37 = vmul.f32 %v5911_v11, %v678_v29 }
  0xfb   : > { %v704_v31 = vadd.f32 %v696_v23, %v632_v62  ;;  %v703_v6 = vadd.f32 %v695_v37, %v631_v27  ;;  %v959_v23 = vld [vmem:[%s7001_s4 + $0x8] sm:$0xff] }
  0xfc   : > { %v730_v33 = vpop.permute.xlu1 %729  ;;  %v726_v7 = vpop.permute.xlu0 %725 }
  0xfd   : > { %v762_v35 = vmul.f32 %v5927_v40, %v730_v33  ;;  %v761_v45 = vmul.f32 %v5927_v40, %v726_v7 }
  0xff   : > { %v770_v58 = vadd.f32 %v762_v35, %v698_v44  ;;  %v769_v59 = vadd.f32 %v761_v45, %v697_v20 }
 0x100   : > { %v738_v63 = vpop.permute.xlu1 %737  ;;  %v734_v5 = vpop.permute.xlu0 %733 }
 0x101   : > { %779 = vst.msk [vmem:[#allocation2 + $0x8] sm:$0xff] %vm777_vm6, %v770_v58  ;;  %778 = vst.msk [vmem:[#allocation2] sm:$0xff] %vm777_vm6, %v769_v59  ;;  %v764_v47 = vmul.f32 %v5927_v40, %v738_v63  ;;  %v763_v48 = vmul.f32 %v5927_v40, %v734_v5  ;;  %v4260_v63 = vld [vmem:[%s6999_s2] ss:$0 sm:$0xff] }
 0x103   : > { %v772_v13 = vadd.f32 %v764_v47, %v700_v61  ;;  %v771_v14 = vadd.f32 %v763_v48, %v699_v9  ;;  %v4261_v9 = vld [vmem:[%s6999_s2 + $0x1] ss:$0 sm:$0xff] }
 0x104   : > { %v746_v24 = vpop.permute.xlu1 %745  ;;  %v742_v26 = vpop.permute.xlu0 %741 }
 0x105   : > { %781 = vst.msk [vmem:[#allocation2 + $0x18] sm:$0xff] %vm777_vm6, %v772_v13  ;;  %780 = vst.msk [vmem:[#allocation2 + $0x10] sm:$0xff] %vm777_vm6, %v771_v14  ;;  %v766_v22 = vmul.f32 %v5927_v40, %v746_v24  ;;  %v765_v49 = vmul.f32 %v5927_v40, %v742_v26  ;;  %v5114_v13 = vpack.c.bf16 %v967_v4, %v966_v12  ;;  %v968_v14 = vld [vmem:[%s7001_s4 + $0x50] sm:$0xff]  ;;  %v4264_v26 = vld [vmem:[%s6999_s2 + $0x2] ss:$0 sm:$0xff] }
 0x106   : > { %v5118_v18 = vpack.c.bf16 %v969_v15, %v968_v14 }
 0x107   : > { %v774_v56 = vadd.f32 %v766_v22, %v702_v19  ;;  %v773_v30 = vadd.f32 %v765_v49, %v701_v36  ;;  %5115 = vmatprep.subr.bf16.mxu1 %v5114_v13  ;;  %v958_v19 = vld [vmem:[%s7001_s4] sm:$0xff] }
 0x108   : > { %v786_v57 = vld [vmem:[#allocation2] ss:$2 sm:$0xff]  ;;  %v755_v28 = vpop.permute.xlu1 %754  ;;  %v750_v38 = vpop.permute.xlu0 %749  ;;  %5117 = vmatpush3.bf16.msra.mxu1 %v5114_v13  ;;  %v5122_v24 = vpack.c.bf16 %v959_v23, %v958_v19  ;;  %v4265_v36 = vld [vmem:[%s6999_s2 + $0x3] ss:$0 sm:$0xff] }
 0x109   : > { %v797_v39 = vrot.slane %v786_v57, 7  ;;  %783 = vst.msk [vmem:[#allocation2 + $0x28] sm:$0xff] %vm777_vm6, %v774_v56  ;;  %782 = vst.msk [vmem:[#allocation2 + $0x20] sm:$0xff] %vm777_vm6, %v773_v30  ;;  %v768_v11 = vmul.f32 %v5927_v40, %v755_v28  ;;  %v767_v29 = vmul.f32 %v5927_v40, %v750_v38  ;;  %v813_v16 = vrot.slane %v786_v57, 1  ;;  %5119 = vmatprep.subr.bf16.mxu1 %v5118_v18  ;;  %v960_v30 = vld [vmem:[%s7001_s4 + $0x10] sm:$0xff]  ;;  %v1374_v19 = vld [vmem:[%s7001_s4 + $0xe8] sm:$0xff] }
 0x10b   : > { %v808_v8 = vsel %vm436_vm5, -3.4028235e+38, %v797_v39  ;;  %v776_v41 = vadd.f32 %v768_v11, %v704_v31  ;;  %v775_v42 = vadd.f32 %v767_v29, %v703_v6  ;;  %v961_v31 = vld [vmem:[%s7001_s4 + $0x18] sm:$0xff] }
 0x10c   : > { %v788_v1 = vld [vmem:[#allocation2 + $0x10] ss:$2 sm:$0xff]  ;;  %v809_v44 = vmax.f32 %v808_v8, %v786_v57  ;;  %5121 = vmatpush3.bf16.msra.mxu1 %v5118_v18  ;;  %v962_v8 = vld [vmem:[%s7001_s4 + $0x20] sm:$0xff] }
 0x10d   : > { %v798_v43 = vrot.slane %v788_v1, 7  ;;  %v814_v25 = vrot.slane %v788_v1, 1  ;;  %785 = vst.msk [vmem:[#allocation2 + $0x38] sm:$0xff] %vm777_vm6, %v776_v41  ;;  %784 = vst.msk [vmem:[#allocation2 + $0x30] sm:$0xff] %vm777_vm6, %v775_v42  ;;  %5123 = vmatprep.subr.bf16.mxu1 %v5122_v24  ;;  %v963_v41 = vld [vmem:[%s7001_s4 + $0x28] sm:$0xff]  ;;  %v1373_v18 = vld [vmem:[%s7001_s4 + $0xe0] sm:$0xff] }
 0x10e   : > { %v5162_v23 = vpack.c.bf16 %v1374_v19, %v1373_v18  ;;  %v1751_v18 = vld [vmem:[%s7000_s3 + $0x60] sm:$0xff]  ;;  %v5568_v19 = vmov 0.0|0.0  }
 0x10f   : > { %v799_v17 = vsel %vm436_vm5, %v797_v39, %v798_v43  ;;  %v815_v33 = vsel %vm561_vm2, %v813_v16, %v814_v25  ;;  %v5126_v39 = vpack.c.bf16 %v961_v31, %v960_v30 }
 0x110   : > { %v825_v7 = vmax.f32 %v809_v44, %v815_v33  ;;  %v790_v20 = vld [vmem:[#allocation2 + $0x20] ss:$2 sm:$0xff]  ;;  %v810_v35 = vmax.f32 %v799_v17, %v788_v1  ;;  %v1137_v33 = vld [vmem:[%s7001_s4 + $0x70] sm:$0xff] }
 0x111   : > { %v800_v40 = vrot.slane %v790_v20, 7  ;;  %v816_v34 = vrot.slane %v790_v20, 1  ;;  %v1136_v44 = vld [vmem:[%s7001_s4 + $0x68] sm:$0xff] }
 0x112   : > { %829 = vst.msk [vmem:[#allocation2] sm:$0xff] %vm777_vm6, %v825_v7  ;;  %v1138_v7 = vld [vmem:[%s7001_s4 + $0x78] sm:$0xff] }
 0x113   : > { %v801_v45 = vsel %vm436_vm5, %v798_v43, %v800_v40  ;;  %v817_v50 = vsel %vm561_vm2, %v814_v25, %v816_v34  ;;  %v5130_v43 = vpack.c.bf16 %v963_v41, %v962_v8  ;;  %v1135_v25 = vld [vmem:[%s7001_s4 + $0x60] sm:$0xff] }
 0x114   : > { %v826_v2 = vmax.f32 %v810_v35, %v817_v50  ;;  %v792_v3 = vld [vmem:[#allocation2 + $0x30] ss:$2 sm:$0xff]  ;;  %v811_v52 = vmax.f32 %v801_v45, %v790_v20  ;;  %v5134_v17 = vpack.c.bf16 %v1136_v44, %v1135_v25  ;;  %v5138_v20 = vpack.c.bf16 %v1138_v7, %v1137_v33 }
 0x115   : > { %v802_v51 = vrot.slane %v792_v3, 7  ;;  %v818_v46 = vrot.slane %v792_v3, 1  ;;  %v1237_v50 = vld [vmem:[%s7000_s3 + $0x30] sm:$0xff]  ;;  %v1540_v33 = vld [vmem:[%s7001_s4 + $0xf8] sm:$0xff] }
 0x116   : > { %830 = vst.msk [vmem:[#allocation2 + $0x8] sm:$0xff] %vm777_vm6, %v826_v2  ;;  %v1238_v2 = vld [vmem:[%s7000_s3 + $0x38] sm:$0xff] }
 0x117   : > { %v803_v58 = vsel %vm436_vm5, %v800_v40, %v802_v51  ;;  %v819_v59 = vsel %vm561_vm2, %v816_v34, %v818_v46  ;;  %v824_v61 = vsel %vm561_vm2, %v818_v46, -3.4028235e+38  ;;  %v1139_v40 = vld [vmem:[%s7001_s4 + $0x80] sm:$0xff]  ;;  %v1140_v34 = vld [vmem:[%s7001_s4 + $0x88] sm:$0xff] }
 0x118   : > { %v812_v53 = vmax.f32 %v803_v58, %v792_v3  ;;  %v827_v60 = vmax.f32 %v811_v52, %v819_v59  ;;  %v5142_v35 = vpack.c.bf16 %v1140_v34, %v1139_v40  ;;  %v5146_v3 = vpack.c.bf16 %v1238_v2, %v1237_v50  ;;  %v1239_v51 = vld [vmem:[%s7000_s3 + $0x40] sm:$0xff]  ;;  %v1240_v46 = vld [vmem:[%s7000_s3 + $0x48] sm:$0xff]  ;;  %v1241_v58 = vld [vmem:[%s7000_s3 + $0x50] sm:$0xf] }
 0x119   : > { %v5150_v52 = vpack.c.bf16 %v1240_v46, %v1239_v51  ;;  %v1369_v59 = vld [vmem:[%s7001_s4 + $0xc0] sm:$0xff]  ;;  %v1542_v40 = vld [vmem:[%s7001_s4 + $0x108] sm:$0xff] }
 0x11a   : > { %v828_v54 = vmax.f32 %v812_v53, %v824_v61  ;;  %831 = vst.msk [vmem:[#allocation2 + $0x10] sm:$0xff] %vm777_vm6, %v827_v60  ;;  %5147 = vmatprep.subr.bf16.mxu0 %v5146_v3  ;;  %v1370_v53 = vld [vmem:[%s7001_s4 + $0xc8] sm:$0xff] }
 0x11b   : > { %v5154_v60 = vpack.c.bf16 %v1370_v53, %v1369_v59  ;;  %v1640_v51 = vld [vmem:[%s7002_s5 + $0x8] sm:$0xff]  ;;  %v1643_v53 = vld [vmem:[%s7002_s5 + $0x20] sm:$0xff] }
 0x11c   : > { %832 = vst.msk [vmem:[#allocation2 + $0x18] sm:$0xff] %vm777_vm6, %v828_v54 }
 0x11d   : > { %v5977_v5 = vld [vmem:[#allocation2] ss:$2 sm:$0xff] }
 0x11e   : > { %v846_v10 = vmul.f32 %v4260_v63, %v5977_v5 }
 0x120   : > { %v852_v47 = vadd.f32 %v4261_v9, %v846_v10  ;;  %v4273_v10 = vld [vmem:[%s6999_s2 + $0x5] ss:$0 sm:$0xff] }
 0x122   : > { %v854_v48 = vmax.f32 %v852_v47, 0.0 }
 0x123   : > { %v5983_v21 = vld [vmem:[#allocation2 + $0x10] ss:$2 sm:$0xff] }
 0x124   : > { %v847_v32 = vmul.f32 %v4260_v63, %v5983_v21  ;;  %4604 = vmatprep.mubr.msk.f32.mxu0 %vm777_vm6, %v854_v48  ;;  %v4272_v63 = vld [vmem:[%s6999_s2 + $0x4] ss:$0 sm:$0xff] }
 0x126   : > { %v853_v55 = vadd.f32 %v4261_v9, %v847_v32 }
 0x128   : > { %v855_v0 = vmax.f32 %v853_v55, 0.0 }
 0x12a   : > { %4605 = vmatmul.mubr.msk.f32.vlgmr.msra.gmra.mrb[0].mxu0 %vm777_vm6, %v855_v0 }
 0x12b   : > { %5149 = vmatpush3.bf16.msra.mxu0 %v5146_v3  ;;  %v1639_v3 = vld [vmem:[%s7002_s5] sm:$0xff] }
 0x12c   : > { %5151 = vmatprep.subr.bf16.mxu0 %v5150_v52  ;;  %v5190_v46 = vpack.c.bf16 %v1640_v51, %v1639_v3  ;;  %v2013_v51 = vld [vmem:[%s7001_s4 + $0x180] sm:$0xff] }
 0x12f   : > { %5153 = vmatpush3.bf16.msra.mxu0 %v5150_v52  ;;  %v1641_v52 = vld [vmem:[%s7002_s5 + $0x10] sm:$0xff] }
 0x130   : > { %4660 = vmatprep.subr.msk.mxu0 %vm1263_vm8, %v1241_v58 }
 0x133   : > { %4661 = vmatpush3.msk.msra.mxu0 %vm1263_vm8, %v1241_v58  ;;  %v1642_v58 = vld [vmem:[%s7002_s5 + $0x18] sm:$0xff] }
 0x134   : > { %5155 = vmatprep.subr.bf16.mxu0 %v5154_v60  ;;  %v5194_v59 = vpack.c.bf16 %v1642_v58, %v1641_v52 }
 0x1fd   : > { %v4606_v37 = vpop.f32.mrb[0].mxu0 }
 0x1fe   : > { %v942_v22 = vmul.f32 %v4606_v37, %v4264_v26  ;;  %v928_v49 = vpop.f32.mrb[1].mxu0  ;;  %v4277_v37 = vld [vmem:[%s6999_s2 + $0x6] ss:$0 sm:$0xff] }
 0x1ff   : > { %v941_v62 = vmul.f32 %v4264_v26, %v928_v49  ;;  %v1364_v26 = vld [vmem:[%s7001_s4 + $0x98] sm:$0xff] }
 0x200   : > { %v948_v27 = vadd.f32 %v4265_v36, %v942_v22  ;;  %v4278_v22 = vld [vmem:[%s6999_s2 + $0x7] ss:$0 sm:$0xff] }
 0x201   : > { %v947_v56 = vadd.f32 %v4265_v36, %v941_v62 }
 0x202   : > { %v950_v57 = vmax.f32 %v948_v27, 0.0 }
 0x203   : > { %v949_v28 = vmax.f32 %v947_v56, 0.0 }
 0x204   : > { %v954_v38 = vrot.slane %v950_v57, 7  ;;  %v1131_v6 = vrot.slane %v950_v57, 1 }
 0x205   : > { %v1130_v11 = vrot.slane %v949_v28, 1  ;;  %4619 = vmatprep.mubr.msk.f32.mxu1 %vm970_vm7, %v949_v28  ;;  %v953_v29 = vrot.slane %v949_v28, 7  ;;  %v1366_v28 = vld [vmem:[%s7001_s4 + $0xa8] sm:$0xff] }
 0x206   : > { %4620 = vmatmul.mubr.msk.f32.vlgmr.msra.gmra.mrb[0].mxu1 %vm970_vm7, %v950_v57  ;;  %v1134_v45 = vsel %vm561_vm2, %v1131_v6, 0.0  ;;  %v1365_v57 = vld [vmem:[%s7001_s4 + $0xa0] sm:$0xff] }
 0x207   : > { %5125 = vmatpush3.bf16.msra.mxu1 %v5122_v24  ;;  %v957_v42 = vsel %vm436_vm5, 0.0, %v953_v29  ;;  %v955_v1 = vsel %vm436_vm5, %v953_v29, %v954_v38  ;;  %v1132_v16 = vsel %vm561_vm2, %v1130_v11, %v1131_v6  ;;  %v1363_v24 = vld [vmem:[%s7001_s4 + $0x90] sm:$0xff]  ;;  %v5170_v29 = vpack.c.bf16 %v1366_v28, %v1365_v57  ;;  %v4289_v28 = vld [vmem:[%s6999_s2 + $0xa] ss:$0 sm:$0xff] }
 0x208   : > { %4634 = vmatprep.mubr.msk.f32.mxu1 %vm970_vm7, %v957_v42  ;;  %5127 = vmatprep.subr.bf16.mxu1 %v5126_v39  ;;  %v5166_v36 = vpack.c.bf16 %v1364_v26, %v1363_v24  ;;  %v1367_v42 = vld [vmem:[%s7001_s4 + $0xb0] sm:$0xff] }
 0x209   : > { %v1753_v24 = vld [vmem:[%s7000_s3 + $0x70] sm:$0xff] }
 0x20a   : > { %v1859_v26 = vld [vmem:[%s7001_s4 + $0x150] sm:$0xff] }
 0x20b   : > { %5129 = vmatpush3.bf16.msra.mxu1 %v5126_v39 }
 0x20c   : > { %5131 = vmatprep.subr.bf16.mxu1 %v5130_v43 }
 0x20f   : > { %5133 = vmatpush3.bf16.msra.mxu1 %v5130_v43 }
 0x210   : > { %5135 = vmatprep.subr.bf16.mxu1 %v5134_v17 }
 0x212   : > { %4635 = vmatmul.mubr.msk.f32.vlgmr.msra.gmra.mrb[0].mxu1 %vm970_vm7, %v955_v1  ;;  %v1368_v1 = vld [vmem:[%s7001_s4 + $0xb8] sm:$0xff] }
 0x213   : > { %5137 = vmatpush3.bf16.msra.mxu1 %v5134_v17  ;;  %4649 = vmatprep.mubr.msk.f32.mxu1 %vm970_vm7, %v1132_v16  ;;  %v5174_v44 = vpack.c.bf16 %v1368_v1, %v1367_v42  ;;  %v1539_v17 = vld [vmem:[%s7001_s4 + $0xf0] sm:$0xff]  ;;  %v4292_v1 = vld [vmem:[%s6999_s2 + $0xc] ss:$0 sm:$0xff] }
 0x214   : > { %5139 = vmatprep.subr.bf16.mxu1 %v5138_v20  ;;  %v5178_v7 = vpack.c.bf16 %v1540_v33, %v1539_v17  ;;  %v1853_v17 = vld [vmem:[%s7001_s4 + $0x120] sm:$0xff]  ;;  %v1854_v33 = vld [vmem:[%s7001_s4 + $0x128] sm:$0xff] }
 0x217   : > { %5141 = vmatpush3.bf16.msra.mxu1 %v5138_v20  ;;  %v1541_v20 = vld [vmem:[%s7001_s4 + $0x100] sm:$0xff] }
 0x218   : > { %5143 = vmatprep.subr.bf16.mxu1 %v5142_v35  ;;  %v5182_v34 = vpack.c.bf16 %v1542_v40, %v1541_v20  ;;  %v5215_v20 = vpack.c.bf16 %v1854_v33, %v1853_v17  ;;  %v2213_v17 = vld [vmem:[%s7001_s4 + $0x1d0] sm:$0xff]  ;;  %v2214_v33 = vld [vmem:[%s7001_s4 + $0x1d8] sm:$0xff] }
 0x21b   : > { %5145 = vmatpush3.bf16.msra.mxu1 %v5142_v35  ;;  %v1543_v35 = vld [vmem:[%s7001_s4 + $0x110] sm:$0xff] }
 0x21c   : > { %5191 = vmatprep.subr.bf16.mxu1 %v5190_v46 }
 0x21e   : > { %4650 = vmatmul.mubr.msk.f32.vlgmr.msra.gmra.mrb[0].mxu1 %vm970_vm7, %v1134_v45  ;;  %v1544_v45 = vld [vmem:[%s7001_s4 + $0x118] sm:$0xff] }
 0x21f   : > { %v5186_v50 = vpack.c.bf16 %v1544_v45, %v1543_v35  ;;  %5193 = vmatpush3.bf16.msra.mxu1 %v5190_v46  ;;  %v1856_v35 = vld [vmem:[%s7001_s4 + $0x138] sm:$0xff]  ;;  %v2014_v46 = vld [vmem:[%s7001_s4 + $0x188] sm:$0xff] }
 0x220   : > { %5195 = vmatprep.subr.bf16.mxu1 %v5194_v59  ;;  %v5224_v58 = vpack.c.bf16 %v2014_v46, %v2013_v51  ;;  %v2373_v51 = vld [vmem:[%s7001_s4 + $0x230] sm:$0xff]  ;;  %v2374_v46 = vld [vmem:[%s7001_s4 + $0x238] sm:$0xff] }
 0x223   : > { %5197 = vmatpush3.bf16.msra.mxu1 %v5194_v59  ;;  %v2015_v59 = vld [vmem:[%s7001_s4 + $0x190] sm:$0xff] }
 0x2f1   : > { %v4651_v61 = vpop.f32.mrb[0].mxu1 }
 0x2f2   : > { %1227 = vrot.lane.b32.xlu1 %v4651_v61, %s5566_s9  ;;  %v1212_v54 = vpop.f32.mrb[1].mxu1 }
 0x2f3   : > { %1225 = vrot.lane.b32.xlu0 %v1212_v54, %s5566_s9 }
 0x364   : > { %v1228_v9 = vpop.permute.xlu1 %1227 }
 0x365   : > { %v6085_v47 = vsel %vm777_vm6, %v5983_v21, %v1228_v9  ;;  %v1226_v48 = vpop.permute.xlu0 %1225  ;;  %v1371_v21 = vld [vmem:[%s7001_s4 + $0xd0] sm:$0xff]  ;;  %v4285_v9 = vld [vmem:[%s6999_s2 + $0x8] ss:$0 sm:$0xff] }
 0x366   : > { %v1247_v32 = vmul.f32 %v4272_v63, %v6085_v47  ;;  %v6090_v55 = vsel %vm777_vm6, %v5977_v5, %v1226_v48  ;;  %v1372_v5 = vld [vmem:[%s7001_s4 + $0xd8] sm:$0xff]  ;;  %v4286_v48 = vld [vmem:[%s6999_s2 + $0x9] ss:$0 sm:$0xff] }
 0x367   : > { %v1246_v0 = vmul.f32 %v4272_v63, %v6090_v55  ;;  %v5158_v15 = vpack.c.bf16 %v1372_v5, %v1371_v21 }
 0x368   : > { %v1253_v12 = vadd.f32 %v4273_v10, %v1247_v32 }
 0x369   : > { %v1252_v4 = vadd.f32 %v4273_v10, %v1246_v0 }
 0x36a   : > { %v1255_v14 = vmax.f32 %v1253_v12, 0.0 }
 0x36b   : > { %v1254_v13 = vmax.f32 %v1252_v4, 0.0 }
 0x36d   : > { %4662 = vmatprep.mubr.msk.f32.mxu0 %vm1256_vm9, %v1254_v13 }
 0x36e   : > { %4663 = vmatmul.mubr.msk.f32.vlgmr.msra.gmra.mrb[2].mxu0 %vm1256_vm9, %v1255_v14 }
 0x36f   : > { %5157 = vmatpush3.bf16.msra.mxu0 %v5154_v60  ;;  %v1644_v60 = vld [vmem:[%s7002_s5 + $0x28] sm:$0xff] }
 0x370   : > { %5159 = vmatprep.subr.bf16.mxu0 %v5158_v15  ;;  %v5198_v61 = vpack.c.bf16 %v1644_v60, %v1643_v53  ;;  %v2016_v53 = vld [vmem:[%s7001_s4 + $0x198] sm:$0xff] }
 0x372   : > { %5199 = vmatprep.subr.bf16.mxu1 %v5198_v61 }
 0x373   : > { %5161 = vmatpush3.bf16.msra.mxu0 %v5158_v15  ;;  %5201 = vmatpush3.bf16.msra.mxu1 %v5198_v61  ;;  %v5227_v61 = vpack.c.bf16 %v2016_v53, %v2015_v59  ;;  %v2456_v53 = vld [vmem:[%s7002_s5 + $0x30] sm:$0xff] }
 0x374   : > { %5163 = vmatprep.subr.bf16.mxu0 %v5162_v23  ;;  %5202 = vmatprep.subr.bf16.mxu1 %v5568_v19 }
 0x377   : > { %5165 = vmatpush3.bf16.msra.mxu0 %v5162_v23  ;;  %v5570_v23 = vmov 0.0  }
 0x378   : > { %5167 = vmatprep.subr.bf16.mxu0 %v5166_v36 }
 0x441   : > { %v4664_v49 = vpop.f32.mrb[2].mxu0 }
 0x442   : > { %v1347_v62 = vmul.f32 %v4664_v49, %v4277_v37  ;;  %v1333_v27 = vpop.f32.mrb[3].mxu0  ;;  %v1862_v49 = vld [vmem:[%s7001_s4 + $0x168] sm:$0xff] }
 0x443   : > { %v1346_v56 = vmul.f32 %v4277_v37, %v1333_v27  ;;  %v1861_v37 = vld [vmem:[%s7001_s4 + $0x160] sm:$0xff] }
 0x444   : > { %v1353_v30 = vadd.f32 %v4278_v22, %v1347_v62  ;;  %v5209_v62 = vpack.c.bf16 %v1862_v49, %v1861_v37  ;;  %v2216_v37 = vld [vmem:[%s7001_s4 + $0x1e8] sm:$0xff] }
 0x445   : > { %v1352_v31 = vadd.f32 %v4278_v22, %v1346_v56 }
 0x446   : > { %v1355_v38 = vmax.f32 %v1353_v30, 0.0 }
 0x447   : > { %v1354_v6 = vmax.f32 %v1352_v31, 0.0 }
 0x448   : > { %v1359_v39 = vrot.slane %v1355_v38, 7  ;;  %v1535_v11 = vrot.slane %v1355_v38, 1 }
 0x449   : > { %v1534_v8 = vrot.slane %v1354_v6, 1  ;;  %4677 = vmatprep.mubr.msk.f32.mxu0 %vm970_vm7, %v1354_v6  ;;  %v1358_v41 = vrot.slane %v1354_v6, 7  ;;  %v4290_v6 = vld [vmem:[%s6999_s2 + $0xb] ss:$0 sm:$0xff] }
 0x44a   : > { %4678 = vmatmul.mubr.msk.f32.vlgmr.msra.gmra.mrb[4].mxu0 %vm970_vm7, %v1355_v38  ;;  %v1538_v2 = vsel %vm561_vm2, %v1535_v11, 0.0 }
 0x44b   : > { %5169 = vmatpush3.bf16.msra.mxu0 %v5166_v36  ;;  %v1362_v16 = vsel %vm436_vm5, 0.0, %v1358_v41  ;;  %v1360_v43 = vsel %vm436_vm5, %v1358_v41, %v1359_v39  ;;  %v1536_v25 = vsel %vm561_vm2, %v1534_v8, %v1535_v11  ;;  %v1860_v36 = vld [vmem:[%s7001_s4 + $0x158] sm:$0xff]  ;;  %v1863_v8 = vld [vmem:[%s7001_s4 + $0x170] sm:$0xff] }
 0x44c   : > { %4692 = vmatprep.mubr.msk.f32.mxu0 %vm970_vm7, %v1362_v16  ;;  %5171 = vmatprep.subr.bf16.mxu0 %v5170_v29  ;;  %v5206_v22 = vpack.c.bf16 %v1860_v36, %v1859_v26  ;;  %v1864_v41 = vld [vmem:[%s7001_s4 + $0x178] sm:$0xff]  ;;  %v4293_v16 = vld [vmem:[%s6999_s2 + $0xd] ss:$0 sm:$0xff]  ;;  %v2215_v36 = vld [vmem:[%s7001_s4 + $0x1e0] sm:$0xff] }
 0x44d   : > { %v5212_v42 = vpack.c.bf16 %v1864_v41, %v1863_v8  ;;  %v5239_v49 = vpack.c.bf16 %v2216_v37, %v2215_v36  ;;  %v2209_v8 = vld [vmem:[%s7001_s4 + $0x1b0] sm:$0xff]  ;;  %v2210_v41 = vld [vmem:[%s7001_s4 + $0x1b8] sm:$0xff] }
 0x44e   : > { %v2663_v36 = vld [vmem:[%s7001_s4 + $0x270] sm:$0xff]  ;;  %v2664_v37 = vld [vmem:[%s7001_s4 + $0x278] sm:$0xff] }
 0x44f   : > { %5173 = vmatpush3.bf16.msra.mxu0 %v5170_v29 }
 0x450   : > { %5175 = vmatprep.subr.bf16.mxu0 %v5174_v44 }
 0x453   : > { %5177 = vmatpush3.bf16.msra.mxu0 %v5174_v44 }
 0x454   : > { %5179 = vmatprep.subr.bf16.mxu0 %v5178_v7 }
 0x456   : > { %4693 = vmatmul.mubr.msk.f32.vlgmr.msra.gmra.mrb[4].mxu0 %vm970_vm7, %v1360_v43 }
 0x457   : > { %5181 = vmatpush3.bf16.msra.mxu0 %v5178_v7  ;;  %4707 = vmatprep.mubr.msk.f32.mxu0 %vm970_vm7, %v1536_v25 }
 0x458   : > { %5183 = vmatprep.subr.bf16.mxu0 %v5182_v34 }
 0x45b   : > { %5185 = vmatpush3.bf16.msra.mxu0 %v5182_v34  ;;  %v1855_v34 = vld [vmem:[%s7001_s4 + $0x130] sm:$0xff] }
 0x45c   : > { %5187 = vmatprep.subr.bf16.mxu0 %v5186_v50  ;;  %v5218_v45 = vpack.c.bf16 %v1856_v35, %v1855_v34 }
 0x45f   : > { %5189 = vmatpush3.bf16.msra.mxu0 %v5186_v50  ;;  %v1857_v50 = vld [vmem:[%s7001_s4 + $0x140] sm:$0xff] }
 0x460   : > { %5205 = vmatprep.subr.bf16.mxu0 %v5568_v19 }
 0x462   : > { %4708 = vmatmul.mubr.msk.f32.vlgmr.msra.gmra.mrb[4].mxu0 %vm970_vm7, %v1538_v2  ;;  %v1858_v2 = vld [vmem:[%s7001_s4 + $0x148] sm:$0xff] }
 0x463   : > { %4746 = vmatprep.mubr.msk.f32.mxu0 %vm5569_vm10, %v5570_v23  ;;  %5207 = vmatpush3.bf16.msra.mxu0 %v5206_v22  ;;  %v5221_v3 = vpack.c.bf16 %v1858_v2, %v1857_v50  ;;  %v2372_v50 = vld [vmem:[%s7001_s4 + $0x228] sm:$0xff] }
 0x464   : > { %5208 = vmatprep.subr.bf16.mxu0 %v5568_v19 }
 0x467   : > { %5210 = vmatpush3.bf16.msra.mxu0 %v5209_v62 }
 0x468   : > { %5211 = vmatprep.subr.bf16.mxu0 %v5568_v19 }
 0x46b   : > { %5213 = vmatpush3.bf16.msra.mxu0 %v5212_v42 }
 0x46c   : > { %5214 = vmatprep.subr.bf16.mxu0 %v5568_v19 }
 0x535   : > { %v4709_v54 = vpop.f32.mrb[4].mxu0 }
 0x536   : > { %1631 = vrot.lane.b32.xlu1 %v4709_v54, %s5567_s13  ;;  %v1616_v63 = vpop.f32.mrb[5].mxu0  ;;  %v2017_v54 = vld [vmem:[%s7001_s4 + $0x1a0] sm:$0xff] }
 0x537   : > { %1629 = vrot.lane.b32.xlu0 %v1616_v63, %s5567_s13  ;;  %v2018_v63 = vld [vmem:[%s7001_s4 + $0x1a8] sm:$0xff] }
 0x5a8   : > { %v1632_v10 = vpop.permute.xlu1 %1631 }
 0x5a9   : > { %v1636_v32 = vsel %vm1256_vm9, %v6085_v47, %v1632_v10  ;;  %v1630_v0 = vpop.permute.xlu0 %1629  ;;  %v1752_v47 = vld [vmem:[%s7000_s3 + $0x68] sm:$0xff] }
 0x5aa   : > { %v1650_v12 = vmul.f32 %v4285_v9, %v1636_v32  ;;  %v1635_v4 = vsel %vm1256_vm9, %v6090_v55, %v1630_v0  ;;  %v5203_v55 = vpack.c.bf16 %v1752_v47, %v1751_v18  ;;  %v2102_v32 = vld [vmem:[%s7000_s3 + $0x90] sm:$0xff]  ;;  %v2103_v0 = vld [vmem:[%s7000_s3 + $0x98] sm:$0xff]  ;;  %v4297_v18 = vld [vmem:[%s6999_s2 + $0xe] ss:$0 sm:$0xff] }
 0x5ab   : > { %v1649_v13 = vmul.f32 %v4285_v9, %v1635_v4  ;;  %v5230_v9 = vpack.c.bf16 %v2018_v63, %v2017_v54  ;;  %v2104_v4 = vld [vmem:[%s7000_s3 + $0xa0] sm:$0xff]  ;;  %v2459_v63 = vld [vmem:[%s7002_s5 + $0x48] sm:$0xff] }
 0x5ac   : > { %v1656_v14 = vadd.f32 %v4286_v48, %v1650_v12  ;;  %v5233_v12 = vpack.c.bf16 %v2103_v0, %v2102_v32  ;;  %v2458_v54 = vld [vmem:[%s7002_s5 + $0x40] sm:$0xff] }
 0x5ad   : > { %v1655_v21 = vadd.f32 %v4286_v48, %v1649_v13  ;;  %v2105_v13 = vld [vmem:[%s7000_s3 + $0xa8] sm:$0xff] }
 0x5ae   : > { %v1658_v15 = vmax.f32 %v1656_v14, 0.0  ;;  %v5236_v14 = vpack.c.bf16 %v2105_v13, %v2104_v4  ;;  %v4306_v4 = vld [vmem:[%s6999_s2 + $0x12] ss:$0 sm:$0xff] }
 0x5af   : > { %v1657_v5 = vmax.f32 %v1655_v21, 0.0  ;;  %v2106_v21 = vld [vmem:[%s7000_s3 + $0xb0] sm:$0xf] }
 0x5b1   : > { %4722 = vmatprep.mubr.msk.f32.mxu1 %vm970_vm7, %v1657_v5 }
 0x5b2   : > { %4723 = vmatmul.mubr.msk.f32.vlgmr.msra.gmra.mrb[2].mxu1 %vm970_vm7, %v1658_v15 }
 0x5b3   : > { %4731 = vmatprep.mubr.msk.f32.mxu1 %vm5569_vm10, %v5570_v23  ;;  %5204 = vmatpush3.bf16.msra.mxu1 %v5203_v55  ;;  %v4298_v55 = vld [vmem:[%s6999_s2 + $0xf] ss:$0 sm:$0xff] }
 0x5b4   : > { %4729 = vmatprep.subr.mxu1 %v5570_v23 }
 0x5b7   : > { %4730 = vmatpush3.msra.mxu1 %v1753_v24 }
 0x5b8   : > { %5232 = vmatprep.subr.bf16.mxu1 %v5568_v19 }
 0x685   : > { %v4724_v27 = vpop.f32.mrb[2].mxu1 }
 0x686   : > { %1741 = vst.msk [vmem:[#allocation2 + $0x8] sm:$0xff] %vm777_vm6, %v4724_v27  ;;  %v1731_v56 = vpop.f32.mrb[3].mxu1  ;;  %v2217_v27 = vld [vmem:[%s7001_s4 + $0x1f0] sm:$0xff] }
 0x687   : > { %1740 = vst.msk [vmem:[#allocation2] sm:$0xff] %vm777_vm6, %v1731_v56  ;;  %v2218_v56 = vld [vmem:[%s7001_s4 + $0x1f8] sm:$0xff] }
 0x68e   : > { %v1742_v30 = vld [vmem:[#allocation2] ss:$2 sm:$0xff]  ;;  %v1744_v31 = vld [vmem:[#allocation2 + $0x1] ss:$2 sm:$0xff] }
 0x68f   : > { %v1745_v57 = vadd.f32 %v1744_v31, %v1742_v30  ;;  %v5242_v30 = vpack.c.bf16 %v2218_v56, %v2217_v27  ;;  %v2219_v31 = vld [vmem:[%s7001_s4 + $0x200] sm:$0xff] }
 0x691   : > { %v6227_v38 = vmul.f32 0.5, %v1745_v57  ;;  %v2220_v57 = vld [vmem:[%s7001_s4 + $0x208] sm:$0xff] }
 0x693   : > { %v1758_v39 = vmul.f32 %v4289_v28, %v6227_v38  ;;  %v5245_v28 = vpack.c.bf16 %v2220_v57, %v2219_v31 }
 0x695   : > { %v1763_v11 = vadd.f32 %v4290_v6, %v1758_v39  ;;  %v4302_v6 = vld [vmem:[%s6999_s2 + $0x11] ss:$0 sm:$0xff] }
 0x697   : > { %v1764_v29 = vmax.f32 %v1763_v11, 0.0 }
 0x699   : > { %4732 = vmatmul.mubr.msk.f32.vlgmr.msra.gmra.mrb[4].mxu1 %vm777_vm6, %v1764_v29 }
 0x69a   : > { %4789 = vmatprep.mubr.msk.f32.mxu1 %vm5569_vm10, %v5570_v23  ;;  %5234 = vmatpush3.bf16.msra.mxu1 %v5233_v12 }
 0x69b   : > { %5235 = vmatprep.subr.bf16.mxu1 %v5568_v19 }
 0x69e   : > { %5237 = vmatpush3.bf16.msra.mxu1 %v5236_v14  ;;  %v4307_v14 = vld [vmem:[%s6999_s2 + $0x13] ss:$0 sm:$0xff] }
 0x69f   : > { %4787 = vmatprep.subr.mxu1 %v5570_v23 }
 0x6a2   : > { %4788 = vmatpush3.msk.msra.mxu1 %vm1263_vm8, %v2106_v21 }
 0x6a3   : > { %5238 = vmatprep.subr.bf16.mxu1 %v5568_v19 }
 0x76c   : > { %v1834_v43 = vpop.f32.mrb[4].mxu1 }
 0x76d   : > { %v1842_v25 = vmul.f32 %v4292_v1, %v1834_v43  ;;  %v4733_v44 = vpop.f32.mrb[5].mxu1  ;;  %v5248_v1 = vpack.c.bf16 %v2210_v41, %v2209_v8  ;;  %v2211_v43 = vld [vmem:[%s7001_s4 + $0x1c0] sm:$0xff]  ;;  %v2667_v41 = vld [vmem:[%s7001_s4 + $0x290] sm:$0xff] }
 0x76f   : > { %v1847_v7 = vadd.f32 %v4293_v16, %v1842_v25  ;;  %v2212_v25 = vld [vmem:[%s7001_s4 + $0x1c8] sm:$0xff] }
 0x770   : > { %v5251_v44 = vpack.c.bf16 %v2212_v25, %v2211_v43  ;;  %v4313_v43 = vld [vmem:[%s6999_s2 + $0x17] ss:$0 sm:$0xff] }
 0x771   : > { %v1848_v40 = vmax.f32 %v1847_v7, 0.0  ;;  %v5254_v7 = vpack.c.bf16 %v2214_v33, %v2213_v17  ;;  %v2657_v33 = vld [vmem:[%s7001_s4 + $0x240] sm:$0xff] }
 0x773   : > { %4747 = vmatmul.mubr.msk.f32.vlgmr.msra.gmra.mrb[6].mxu0 %vm970_vm7, %v1848_v40  ;;  %v1850_v52 = vrot.slane %v1848_v40, 7  ;;  %v2010_v10 = vrot.slane %v1848_v40, 1  ;;  %v2370_v40 = vld [vmem:[%s7001_s4 + $0x218] sm:$0xff] }
 0x774   : > { %5216 = vmatpush3.bf16.msra.mxu0 %v5215_v20  ;;  %4761 = vmatprep.mubr.msk.f32.mxu0 %vm5569_vm10, %v5570_v23  ;;  %v2369_v20 = vld [vmem:[%s7001_s4 + $0x210] sm:$0xff] }
 0x775   : > { %5217 = vmatprep.subr.bf16.mxu0 %v5568_v19  ;;  %v1852_v60 = vsel %vm436_vm5, 0.0, %v1850_v52  ;;  %v2012_v48 = vsel %vm561_vm2, %v2010_v10, 0.0  ;;  %v5257_v35 = vpack.c.bf16 %v2370_v40, %v2369_v20  ;;  %v5263_v52 = vpack.c.bf16 %v2374_v46, %v2373_v51  ;;  %v2460_v10 = vld [vmem:[%s7002_s5 + $0x50] sm:$0xff]  ;;  %v2817_v46 = vld [vmem:[%s7001_s4 + $0x2a0] sm:$0xff] }
 0x778   : > { %5219 = vmatpush3.bf16.msra.mxu0 %v5218_v45  ;;  %v2371_v45 = vld [vmem:[%s7001_s4 + $0x220] sm:$0xff] }
 0x779   : > { %5220 = vmatprep.subr.bf16.mxu0 %v5568_v19 }
 0x77c   : > { %5222 = vmatpush3.bf16.msra.mxu0 %v5221_v3  ;;  %v5260_v3 = vpack.c.bf16 %v2372_v50, %v2371_v45  ;;  %v2660_v45 = vld [vmem:[%s7001_s4 + $0x258] sm:$0xff] }
 0x77d   : > { %5223 = vmatprep.subr.bf16.mxu0 %v5568_v19 }
 0x77f   : > { %4762 = vmatmul.mubr.msk.f32.vlgmr.msra.gmra.mrb[6].mxu0 %vm970_vm7, %v1852_v60  ;;  %v2457_v60 = vld [vmem:[%s7002_s5 + $0x38] sm:$0xff] }
 0x780   : > { %5225 = vmatpush3.bf16.msra.mxu0 %v5224_v58  ;;  %4776 = vmatprep.mubr.msk.f32.mxu0 %vm5569_vm10, %v5570_v23 }
 0x781   : > { %5226 = vmatprep.subr.bf16.mxu0 %v5568_v19 }
 0x784   : > { %5228 = vmatpush3.bf16.msra.mxu0 %v5227_v61  ;;  %v5266_v61 = vpack.c.bf16 %v2457_v60, %v2456_v53  ;;  %v2819_v53 = vld [vmem:[%s7001_s4 + $0x2b0] sm:$0xff]  ;;  %v2820_v60 = vld [vmem:[%s7001_s4 + $0x2b8] sm:$0xff] }
 0x785   : > { %5229 = vmatprep.subr.bf16.mxu0 %v5568_v19 }
 0x788   : > { %5231 = vmatpush3.bf16.msra.mxu0 %v5230_v9  ;;  %v5269_v9 = vpack.c.bf16 %v2459_v63, %v2458_v54  ;;  %v5299_v54 = vpack.c.bf16 %v2820_v60, %v2819_v53  ;;  %v2821_v63 = vld [vmem:[%s7001_s4 + $0x2c0] sm:$0xff] }
 0x789   : > { %5265 = vmatprep.subr.bf16.mxu0 %v5568_v19  ;;  %v3260_v60 = vld [vmem:[%s7002_s5 + $0x60] sm:$0xff] }
 0x78b   : > { %4777 = vmatmul.mubr.msk.f32.vlgmr.msra.gmra.mrb[6].mxu0 %vm970_vm7, %v2012_v48  ;;  %v2461_v48 = vld [vmem:[%s7002_s5 + $0x58] sm:$0xff] }
 0x78c   : > { %4849 = vmatprep.mubr.msk.f32.mxu0 %vm5569_vm10, %v5570_v23  ;;  %5267 = vmatpush3.bf16.msra.mxu0 %v5266_v61  ;;  %v5272_v32 = vpack.c.bf16 %v2461_v48, %v2460_v10 }
 0x78d   : > { %5268 = vmatprep.subr.bf16.mxu0 %v5568_v19 }
 0x790   : > { %5270 = vmatpush3.bf16.msra.mxu0 %v5269_v9  ;;  %v2822_v9 = vld [vmem:[%s7001_s4 + $0x2c8] sm:$0xff] }
 0x791   : > { %5271 = vmatprep.subr.bf16.mxu0 %v5568_v19  ;;  %v5302_v10 = vpack.c.bf16 %v2822_v9, %v2821_v63  ;;  %v3262_v63 = vld [vmem:[%s7002_s5 + $0x70] sm:$0xff]  ;;  %v3263_v9 = vld [vmem:[%s7002_s5 + $0x78] sm:$0xff] }
 0x794   : > { %5273 = vmatpush3.bf16.msra.mxu0 %v5272_v32 }
 0x795   : > { %5274 = vmatprep.subr.bf16.mxu0 %v5568_v19 }
 0x85e   : > { %v2088_v5 = vpop.f32.mrb[6].mxu0 }
 0x85f   : > { %2094 = vrot.lane.b32.xlu0 %v2088_v5, %s5566_s9  ;;  %v4778_v15 = vpop.f32.mrb[7].mxu0 }
 0x8d1   : > { %v2095_v47 = vpop.permute.xlu0 %2094 }
 0x8d2   : > { %v6330_v24 = vsel %vm777_vm6, %v6227_v38, %v2095_v47  ;;  %v4301_v38 = vld [vmem:[%s6999_s2 + $0x10] ss:$0 sm:$0xff]  ;;  %v2555_v47 = vld [vmem:[%s7000_s3 + $0xc0] sm:$0xff] }
 0x8d3   : > { %v2111_v26 = vmul.f32 %v4297_v18, %v6330_v24 }
 0x8d5   : > { %v2116_v22 = vadd.f32 %v4298_v55, %v2111_v26  ;;  %v2556_v55 = vld [vmem:[%s7000_s3 + $0xc8] sm:$0xff] }
 0x8d6   : > { %v5275_v26 = vpack.c.bf16 %v2556_v55, %v2555_v47  ;;  %v4317_v47 = vld [vmem:[%s6999_s2 + $0x18] ss:$0 sm:$0xff] }
 0x8d7   : > { %v2117_v62 = vmax.f32 %v2116_v22, 0.0  ;;  %v2665_v22 = vld [vmem:[%s7001_s4 + $0x280] sm:$0xff] }
 0x8d9   : > { %4790 = vmatmul.mubr.msk.f32.vlgmr.msra.gmra.mrb[6].mxu1 %vm1256_vm9, %v2117_v62  ;;  %v2666_v62 = vld [vmem:[%s7001_s4 + $0x288] sm:$0xff] }
 0x8da   : > { %5240 = vmatpush3.bf16.msra.mxu1 %v5239_v49  ;;  %4804 = vmatprep.mubr.msk.f32.mxu1 %vm5569_vm10, %v5570_v23  ;;  %v5278_v49 = vpack.c.bf16 %v2664_v37, %v2663_v36  ;;  %v5281_v27 = vpack.c.bf16 %v2666_v62, %v2665_v22  ;;  %v3019_v37 = vld [vmem:[%s7001_s4 + $0x300] sm:$0xff]  ;;  %v3020_v22 = vld [vmem:[%s7001_s4 + $0x308] sm:$0xff] }
 0x8db   : > { %5241 = vmatprep.subr.bf16.mxu1 %v5568_v19  ;;  %v5311_v62 = vpack.c.bf16 %v3020_v22, %v3019_v37  ;;  %v3468_v37 = vld [vmem:[%s7001_s4 + $0x390] sm:$0xff]  ;;  %v3469_v22 = vld [vmem:[%s7001_s4 + $0x398] sm:$0xff] }
 0x8de   : > { %5243 = vmatpush3.bf16.msra.mxu1 %v5242_v30 }
 0x8df   : > { %5244 = vmatprep.subr.bf16.mxu1 %v5568_v19 }
 0x8e2   : > { %5246 = vmatpush3.bf16.msra.mxu1 %v5245_v28 }
 0x8e3   : > { %5247 = vmatprep.subr.bf16.mxu1 %v5568_v19 }
 0x9ac   : > { %v2190_v39 = vpop.f32.mrb[6].mxu1 }
 0x9ad   : > { %v2198_v11 = vmul.f32 %v4301_v38, %v2190_v39  ;;  %v4791_v29 = vpop.f32.mrb[7].mxu1  ;;  %v4309_v38 = vld [vmem:[%s6999_s2 + $0x14] ss:$0 sm:$0xff]  ;;  %v4310_v39 = vld [vmem:[%s6999_s2 + $0x15] ss:$0 sm:$0xff] }
 0x9af   : > { %v2203_v42 = vadd.f32 %v4302_v6, %v2198_v11 }
 0x9b1   : > { %v2204_v16 = vmax.f32 %v2203_v42, 0.0  ;;  %v2668_v42 = vld [vmem:[%s7001_s4 + $0x298] sm:$0xff] }
 0x9b3   : > { %4805 = vmatmul.mubr.msk.f32.vlgmr.msra.gmra.mrb[8].mxu1 %vm970_vm7, %v2204_v16  ;;  %v2206_v34 = vrot.slane %v2204_v16, 7  ;;  %v2366_v58 = vrot.slane %v2204_v16, 1  ;;  %v4312_v16 = vld [vmem:[%s6999_s2 + $0x16] ss:$0 sm:$0xff] }
 0x9b4   : > { %5249 = vmatpush3.bf16.msra.mxu1 %v5248_v1  ;;  %4819 = vmatprep.mubr.msk.f32.mxu1 %vm5569_vm10, %v5570_v23  ;;  %v5284_v1 = vpack.c.bf16 %v2668_v42, %v2667_v41  ;;  %v3013_v41 = vld [vmem:[%s7001_s4 + $0x2d0] sm:$0xff]  ;;  %v3014_v42 = vld [vmem:[%s7001_s4 + $0x2d8] sm:$0xff] }
 0x9b5   : > { %5250 = vmatprep.subr.bf16.mxu1 %v5568_v19  ;;  %v2208_v2 = vsel %vm436_vm5, 0.0, %v2206_v34  ;;  %v2368_v59 = vsel %vm561_vm2, %v2366_v58, 0.0 }
 0x9b8   : > { %5252 = vmatpush3.bf16.msra.mxu1 %v5251_v44 }
 0x9b9   : > { %5253 = vmatprep.subr.bf16.mxu1 %v5568_v19 }
 0x9bc   : > { %5255 = vmatpush3.bf16.msra.mxu1 %v5254_v7  ;;  %v2658_v7 = vld [vmem:[%s7001_s4 + $0x248] sm:$0xff] }
 0x9bd   : > { %5256 = vmatprep.subr.bf16.mxu1 %v5568_v19  ;;  %v5287_v40 = vpack.c.bf16 %v2658_v7, %v2657_v33  ;;  %v3017_v33 = vld [vmem:[%s7001_s4 + $0x2f0] sm:$0xff]  ;;  %v3018_v7 = vld [vmem:[%s7001_s4 + $0x2f8] sm:$0xff] }
 0x9bf   : > { %4820 = vmatmul.mubr.msk.f32.vlgmr.msra.gmra.mrb[8].mxu1 %vm970_vm7, %v2208_v2  ;;  %v2661_v2 = vld [vmem:[%s7001_s4 + $0x260] sm:$0xff] }
 0x9c0   : > { %5258 = vmatpush3.bf16.msra.mxu1 %v5257_v35  ;;  %4834 = vmatprep.mubr.msk.f32.mxu1 %vm5569_vm10, %v5570_v23  ;;  %v2659_v35 = vld [vmem:[%s7001_s4 + $0x250] sm:$0xff] }
 0x9c1   : > { %5259 = vmatprep.subr.bf16.mxu1 %v5568_v19  ;;  %v5290_v50 = vpack.c.bf16 %v2660_v45, %v2659_v35 }
 0x9c4   : > { %5261 = vmatpush3.bf16.msra.mxu1 %v5260_v3  ;;  %v2662_v3 = vld [vmem:[%s7001_s4 + $0x268] sm:$0xff] }
 0x9c5   : > { %5262 = vmatprep.subr.bf16.mxu1 %v5568_v19  ;;  %v5293_v51 = vpack.c.bf16 %v2662_v3, %v2661_v2  ;;  %v3176_v2 = vld [vmem:[%s7001_s4 + $0x348] sm:$0xff] }
 0x9c8   : > { %5264 = vmatpush3.bf16.msra.mxu1 %v5263_v52  ;;  %v2818_v52 = vld [vmem:[%s7001_s4 + $0x2a8] sm:$0xff] }
 0x9c9   : > { %5277 = vmatprep.subr.bf16.mxu1 %v5568_v19 }
 0x9cb   : > { %4835 = vmatmul.mubr.msk.f32.vlgmr.msra.gmra.mrb[8].mxu1 %vm970_vm7, %v2368_v59  ;;  %v5296_v59 = vpack.c.bf16 %v2818_v52, %v2817_v46  ;;  %v3177_v46 = vld [vmem:[%s7001_s4 + $0x350] sm:$0xff]  ;;  %v3178_v52 = vld [vmem:[%s7001_s4 + $0x358] sm:$0xff] }
 0x9cc   : > { %4873 = vmatprep.mubr.msk.f32.mxu1 %vm5569_vm10, %v5570_v23  ;;  %5279 = vmatpush3.bf16.msra.mxu1 %v5278_v49 }
 0x9cd   : > { %5280 = vmatprep.subr.bf16.mxu1 %v5568_v19 }
 0x9d0   : > { %5282 = vmatpush3.bf16.msra.mxu1 %v5281_v27 }
 0x9d1   : > { %5283 = vmatprep.subr.bf16.mxu1 %v5568_v19 }
 0x9d4   : > { %5285 = vmatpush3.bf16.msra.mxu1 %v5284_v1 }
 0x9d5   : > { %5286 = vmatprep.subr.bf16.mxu1 %v5568_v19 }
 0xa9e   : > { %v2444_v0 = vpop.f32.mrb[8].mxu1 }
 0xa9f   : > { %2450 = vrot.lane.b32.xlu1 %v2444_v0, %s5567_s13  ;;  %v4836_v12 = vpop.f32.mrb[9].mxu1  ;;  %v2906_v0 = vld [vmem:[%s7000_s3 + $0xf0] sm:$0xff] }
 0xaa0   : > { %v2907_v12 = vld [vmem:[%s7000_s3 + $0xf8] sm:$0xff] }
 0xb11   : > { %v2451_v13 = vpop.permute.xlu1 %2450 }
 0xb12   : > { %v2453_v21 = vsel %vm1256_vm9, %v6330_v24, %v2451_v13  ;;  %v2557_v24 = vld [vmem:[%s7000_s3 + $0xd0] sm:$0xff]  ;;  %v2908_v13 = vld [vmem:[%s7000_s3 + $0x100] sm:$0xff] }
 0xb13   : > { %v2466_v5 = vmul.f32 %v4306_v4, %v2453_v21  ;;  %v5305_v4 = vpack.c.bf16 %v2907_v12, %v2906_v0 }
 0xb15   : > { %v2471_v15 = vadd.f32 %v4307_v14, %v2466_v5  ;;  %v2909_v14 = vld [vmem:[%s7000_s3 + $0x108] sm:$0xff]  ;;  %v2910_v5 = vld [vmem:[%s7000_s3 + $0x110] sm:$0xf] }
 0xb16   : > { %v5308_v21 = vpack.c.bf16 %v2909_v14, %v2908_v13  ;;  %v4326_v13 = vld [vmem:[%s6999_s2 + $0x1c] ss:$0 sm:$0xff] }
 0xb17   : > { %v2472_v18 = vmax.f32 %v2471_v15, 0.0 }
 0xb19   : > { %4850 = vmatmul.mubr.msk.f32.vlgmr.msra.gmra.mrb[8].mxu0 %vm970_vm7, %v2472_v18 }
 0xb1a   : > { %4858 = vmatprep.mubr.msk.f32.mxu0 %vm5569_vm10, %v5570_v23  ;;  %5276 = vmatpush3.bf16.msra.mxu0 %v5275_v26  ;;  %v4318_v26 = vld [vmem:[%s6999_s2 + $0x19] ss:$0 sm:$0xff] }
 0xb1b   : > { %4856 = vmatprep.subr.mxu0 %v5570_v23 }
 0xb1e   : > { %4857 = vmatpush3.msra.mxu0 %v2557_v24 }
 0xb1f   : > { %5304 = vmatprep.subr.bf16.mxu0 %v5568_v19 }
 0xbec   : > { %v2542_v56 = vpop.f32.mrb[8].mxu0 }
 0xbed   : > { %2546 = vst.msk [vmem:[#allocation2] sm:$0xff] %vm777_vm6, %v2542_v56  ;;  %v4851_v30 = vpop.f32.mrb[9].mxu0  ;;  %v3021_v56 = vld [vmem:[%s7001_s4 + $0x310] sm:$0xff] }
 0xbee   : > { %v3022_v30 = vld [vmem:[%s7001_s4 + $0x318] sm:$0xff] }
 0xbf4   : > { %v2547_v31 = vld [vmem:[#allocation2] ss:$2 sm:$0xf]  ;;  %v2548_v57 = vld [vmem:[#allocation2 + $0x1] ss:$2 sm:$0xf] }
 0xbf5   : > { %v2549_v28 = vadd.f32 %v2548_v57, %v2547_v31  ;;  %v5314_v31 = vpack.c.bf16 %v3022_v30, %v3021_v56  ;;  %v3023_v57 = vld [vmem:[%s7001_s4 + $0x320] sm:$0xff] }
 0xbf7   : > { %v6478_v6 = vmul.f32 0.5, %v2549_v28  ;;  %v3024_v28 = vld [vmem:[%s7001_s4 + $0x328] sm:$0xff] }
 0xbf9   : > { %v2562_v11 = vmul.f32 %v4309_v38, %v6478_v6  ;;  %v5317_v38 = vpack.c.bf16 %v3024_v28, %v3023_v57 }
 0xbfb   : > { %v2567_v29 = vadd.f32 %v4310_v39, %v2562_v11  ;;  %v4322_v39 = vld [vmem:[%s6999_s2 + $0x1b] ss:$0 sm:$0xff] }
 0xbfd   : > { %v2568_v8 = vmax.f32 %v2567_v29, 0.0 }
 0xbff   : > { %4859 = vmatmul.mubr.msk.f32.vlgmr.msra.gmra.mrb[10].mxu0 %vm777_vm6, %v2568_v8 }
 0xc00   : > { %4916 = vmatprep.mubr.msk.f32.mxu0 %vm5569_vm10, %v5570_v23  ;;  %5306 = vmatpush3.bf16.msra.mxu0 %v5305_v4 }
 0xc01   : > { %5307 = vmatprep.subr.bf16.mxu0 %v5568_v19 }
 0xc04   : > { %5309 = vmatpush3.bf16.msra.mxu0 %v5308_v21  ;;  %v4327_v21 = vld [vmem:[%s6999_s2 + $0x1d] ss:$0 sm:$0xff] }
 0xc05   : > { %4914 = vmatprep.subr.mxu0 %v5570_v23 }
 0xc08   : > { %4915 = vmatpush3.msk.msra.mxu0 %vm1263_vm8, %v2910_v5 }
 0xc09   : > { %5310 = vmatprep.subr.bf16.mxu0 %v5568_v19 }
 0xcd2   : > { %v2638_v25 = vpop.f32.mrb[10].mxu0 }
 0xcd3   : > { %v2646_v44 = vmul.f32 %v4312_v16, %v2638_v25  ;;  %v4860_v17 = vpop.f32.mrb[11].mxu0  ;;  %v5320_v16 = vpack.c.bf16 %v3014_v42, %v3013_v41  ;;  %v3015_v25 = vld [vmem:[%s7001_s4 + $0x2e0] sm:$0xff]  ;;  %v3472_v42 = vld [vmem:[%s7001_s4 + $0x3b0] sm:$0xff] }
 0xcd5   : > { %v2651_v20 = vadd.f32 %v4313_v43, %v2646_v44  ;;  %v3016_v44 = vld [vmem:[%s7001_s4 + $0x2e8] sm:$0xff] }
 0xcd6   : > { %v5323_v17 = vpack.c.bf16 %v3016_v44, %v3015_v25  ;;  %v4333_v25 = vld [vmem:[%s6999_s2 + $0x21] ss:$0 sm:$0xff] }
 0xcd7   : > { %v2652_v34 = vmax.f32 %v2651_v20, 0.0  ;;  %v5326_v20 = vpack.c.bf16 %v3018_v7, %v3017_v33  ;;  %v3462_v7 = vld [vmem:[%s7001_s4 + $0x360] sm:$0xff] }
 0xcd9   : > { %4874 = vmatmul.mubr.msk.f32.vlgmr.msra.gmra.mrb[10].mxu1 %vm970_vm7, %v2652_v34  ;;  %v2654_v58 = vrot.slane %v2652_v34, 7  ;;  %v2814_v48 = vrot.slane %v2652_v34, 1  ;;  %v3174_v34 = vld [vmem:[%s7001_s4 + $0x338] sm:$0xff] }
 0xcda   : > { %5288 = vmatpush3.bf16.msra.mxu1 %v5287_v40  ;;  %4888 = vmatprep.mubr.msk.f32.mxu1 %vm5569_vm10, %v5570_v23  ;;  %v3173_v40 = vld [vmem:[%s7001_s4 + $0x330] sm:$0xff] }
 0xcdb   : > { %5289 = vmatprep.subr.bf16.mxu1 %v5568_v19  ;;  %v2656_v61 = vsel %vm436_vm5, 0.0, %v2654_v58  ;;  %v2816_v32 = vsel %vm292_vm0, %v2814_v48, 0.0  ;;  %v5329_v45 = vpack.c.bf16 %v3174_v34, %v3173_v40  ;;  %v5335_v58 = vpack.c.bf16 %v3178_v52, %v3177_v46  ;;  %v3264_v48 = vld [vmem:[%s7002_s5 + $0x80] sm:$0xff] }
 0xcdc   : > { %v3622_v52 = vld [vmem:[%s7001_s4 + $0x3c0] sm:$0xff] }
 0xcde   : > { %5291 = vmatpush3.bf16.msra.mxu1 %v5290_v50  ;;  %v3175_v50 = vld [vmem:[%s7001_s4 + $0x340] sm:$0xff] }
 0xcdf   : > { %5292 = vmatprep.subr.bf16.mxu1 %v5568_v19 }
 0xce2   : > { %5294 = vmatpush3.bf16.msra.mxu1 %v5293_v51  ;;  %v5332_v51 = vpack.c.bf16 %v3176_v2, %v3175_v50  ;;  %v3465_v50 = vld [vmem:[%s7001_s4 + $0x378] sm:$0xff] }
 0xce3   : > { %5295 = vmatprep.subr.bf16.mxu1 %v5568_v19 }
 0xce5   : > { %4889 = vmatmul.mubr.msk.f32.vlgmr.msra.gmra.mrb[10].mxu1 %vm970_vm7, %v2656_v61  ;;  %v3261_v61 = vld [vmem:[%s7002_s5 + $0x68] sm:$0xff] }
 0xce6   : > { %5297 = vmatpush3.bf16.msra.mxu1 %v5296_v59  ;;  %4903 = vmatprep.mubr.msk.f32.mxu1 %vm5569_vm10, %v5570_v23 }
 0xce7   : > { %5298 = vmatprep.subr.bf16.mxu1 %v5568_v19 }
 0xcea   : > { %5300 = vmatpush3.bf16.msra.mxu1 %v5299_v54  ;;  %v5338_v54 = vpack.c.bf16 %v3261_v61, %v3260_v60  ;;  %v3624_v60 = vld [vmem:[%s7001_s4 + $0x3d0] sm:$0xff]  ;;  %v3625_v61 = vld [vmem:[%s7001_s4 + $0x3d8] sm:$0xff] }
 0xceb   : > { %5301 = vmatprep.subr.bf16.mxu1 %v5568_v19 }
 0xcee   : > { %5303 = vmatpush3.bf16.msra.mxu1 %v5302_v10  ;;  %v5341_v10 = vpack.c.bf16 %v3263_v9, %v3262_v63  ;;  %v5371_v63 = vpack.c.bf16 %v3625_v61, %v3624_v60  ;;  %v3626_v9 = vld [vmem:[%s7001_s4 + $0x3e0] sm:$0xff]  ;;  %v4087_v61 = vld [vmem:[%s7003_s6 + $0x8] sm:$0xff] }
 0xcef   : > { %5337 = vmatprep.subr.bf16.mxu1 %v5568_v19 }
 0xcf1   : > { %4904 = vmatmul.mubr.msk.f32.vlgmr.msra.gmra.mrb[10].mxu1 %vm970_vm7, %v2816_v32  ;;  %v3265_v32 = vld [vmem:[%s7002_s5 + $0x88] sm:$0xff] }
 0xcf2   : > { %4976 = vmatprep.mubr.msk.f32.mxu1 %vm5569_vm10, %v5570_v23  ;;  %5339 = vmatpush3.bf16.msra.mxu1 %v5338_v54  ;;  %v5344_v0 = vpack.c.bf16 %v3265_v32, %v3264_v48 }
 0xcf3   : > { %5340 = vmatprep.subr.bf16.mxu1 %v5568_v19 }
 0xcf6   : > { %5342 = vmatpush3.bf16.msra.mxu1 %v5341_v10  ;;  %v3627_v10 = vld [vmem:[%s7001_s4 + $0x3e8] sm:$0xff] }
 0xcf7   : > { %5343 = vmatprep.subr.bf16.mxu1 %v5568_v19  ;;  %v5374_v48 = vpack.c.bf16 %v3627_v10, %v3626_v9  ;;  %v4088_v9 = vld [vmem:[%s7003_s6 + $0x10] sm:$0xff]  ;;  %v4089_v10 = vld [vmem:[%s7003_s6 + $0x18] sm:$0xff] }
 0xcfa   : > { %5345 = vmatpush3.bf16.msra.mxu1 %v5344_v0 }
 0xcfb   : > { %5346 = vmatprep.subr.bf16.mxu1 %v5568_v19 }
 0xdc4   : > { %v2892_v15 = vpop.f32.mrb[10].mxu1 }
 0xdc5   : > { %2898 = vrot.lane.b32.xlu0 %v2892_v15, %s5566_s9  ;;  %v4905_v18 = vpop.f32.mrb[11].mxu1 }
 0xe37   : > { %v2899_v55 = vpop.permute.xlu0 %2898 }
 0xe38   : > { %v6581_v24 = vsel %vm777_vm6, %v6478_v6, %v2899_v55  ;;  %v4321_v6 = vld [vmem:[%s6999_s2 + $0x1a] ss:$0 sm:$0xff]  ;;  %v3360_v55 = vld [vmem:[%s7000_s3 + $0x120] sm:$0xff] }
 0xe39   : > { %v2915_v36 = vmul.f32 %v4317_v47, %v6581_v24 }
 0xe3b   : > { %v2920_v49 = vadd.f32 %v4318_v26, %v2915_v36  ;;  %v3361_v26 = vld [vmem:[%s7000_s3 + $0x128] sm:$0xff] }
 0xe3c   : > { %v5347_v36 = vpack.c.bf16 %v3361_v26, %v3360_v55  ;;  %v4337_v55 = vld [vmem:[%s6999_s2 + $0x22] ss:$0 sm:$0xff] }
 0xe3d   : > { %v2921_v27 = vmax.f32 %v2920_v49, 0.0  ;;  %v3470_v49 = vld [vmem:[%s7001_s4 + $0x3a0] sm:$0xff] }
 0xe3f   : > { %4917 = vmatmul.mubr.msk.f32.vlgmr.msra.gmra.mrb[12].mxu0 %vm1256_vm9, %v2921_v27  ;;  %v3471_v27 = vld [vmem:[%s7001_s4 + $0x3a8] sm:$0xff] }
 0xe40   : > { %5312 = vmatpush3.bf16.msra.mxu0 %v5311_v62  ;;  %4931 = vmatprep.mubr.msk.f32.mxu0 %vm5569_vm10, %v5570_v23  ;;  %v5350_v62 = vpack.c.bf16 %v3469_v22, %v3468_v37  ;;  %v5353_v56 = vpack.c.bf16 %v3471_v27, %v3470_v49  ;;  %v3824_v22 = vld [vmem:[%s7001_s4 + $0x420] sm:$0xff]  ;;  %v3825_v49 = vld [vmem:[%s7001_s4 + $0x428] sm:$0xff] }
 0xe41   : > { %5313 = vmatprep.subr.bf16.mxu0 %v5568_v19  ;;  %v5383_v27 = vpack.c.bf16 %v3825_v49, %v3824_v22 }
 0xe44   : > { %5315 = vmatpush3.bf16.msra.mxu0 %v5314_v31 }
 0xe45   : > { %5316 = vmatprep.subr.bf16.mxu0 %v5568_v19 }
 0xe48   : > { %5318 = vmatpush3.bf16.msra.mxu0 %v5317_v38 }
 0xe49   : > { %5319 = vmatprep.subr.bf16.mxu0 %v5568_v19 }
 0xf12   : > { %v2994_v11 = vpop.f32.mrb[12].mxu0 }
 0xf13   : > { %v3002_v29 = vmul.f32 %v4321_v6, %v2994_v11  ;;  %v4918_v8 = vpop.f32.mrb[13].mxu0  ;;  %v4329_v6 = vld [vmem:[%s6999_s2 + $0x1e] ss:$0 sm:$0xff]  ;;  %v4330_v11 = vld [vmem:[%s6999_s2 + $0x1f] ss:$0 sm:$0xff] }
 0xf15   : > { %v3007_v1 = vadd.f32 %v4322_v39, %v3002_v29 }
 0xf17   : > { %v3008_v43 = vmax.f32 %v3007_v1, 0.0  ;;  %v3473_v1 = vld [vmem:[%s7001_s4 + $0x3b8] sm:$0xff] }
 0xf19   : > { %4932 = vmatmul.mubr.msk.f32.vlgmr.msra.gmra.mrb[14].mxu0 %vm970_vm7, %v3008_v43  ;;  %v3010_v35 = vrot.slane %v3008_v43, 7  ;;  %v3170_v59 = vrot.slane %v3008_v43, 1  ;;  %v4332_v43 = vld [vmem:[%s6999_s2 + $0x20] ss:$0 sm:$0xff] }
 0xf1a   : > { %5321 = vmatpush3.bf16.msra.mxu0 %v5320_v16  ;;  %4946 = vmatprep.mubr.msk.f32.mxu0 %vm5569_vm10, %v5570_v23  ;;  %v5356_v16 = vpack.c.bf16 %v3473_v1, %v3472_v42  ;;  %v3818_v42 = vld [vmem:[%s7001_s4 + $0x3f0] sm:$0xff]  ;;  %v3819_v1 = vld [vmem:[%s7001_s4 + $0x3f8] sm:$0xff] }
 0xf1b   : > { %5322 = vmatprep.subr.bf16.mxu0 %v5568_v19  ;;  %v3012_v3 = vsel %vm436_vm5, 0.0, %v3010_v35  ;;  %v3172_v53 = vsel %vm292_vm0, %v3170_v59, 0.0 }
 0xf1e   : > { %5324 = vmatpush3.bf16.msra.mxu0 %v5323_v17 }
 0xf1f   : > { %5325 = vmatprep.subr.bf16.mxu0 %v5568_v19 }
 0xf22   : > { %5327 = vmatpush3.bf16.msra.mxu0 %v5326_v20  ;;  %v3463_v20 = vld [vmem:[%s7001_s4 + $0x368] sm:$0xff] }
 0xf23   : > { %5328 = vmatprep.subr.bf16.mxu0 %v5568_v19  ;;  %v5359_v34 = vpack.c.bf16 %v3463_v20, %v3462_v7  ;;  %v3822_v7 = vld [vmem:[%s7001_s4 + $0x410] sm:$0xff]  ;;  %v3823_v20 = vld [vmem:[%s7001_s4 + $0x418] sm:$0xff] }
 0xf25   : > { %4947 = vmatmul.mubr.msk.f32.vlgmr.msra.gmra.mrb[14].mxu0 %vm970_vm7, %v3012_v3  ;;  %v3466_v3 = vld [vmem:[%s7001_s4 + $0x380] sm:$0xff] }
 0xf26   : > { %5330 = vmatpush3.bf16.msra.mxu0 %v5329_v45  ;;  %4961 = vmatprep.mubr.msk.f32.mxu0 %vm5569_vm10, %v5570_v23  ;;  %v3464_v45 = vld [vmem:[%s7001_s4 + $0x370] sm:$0xff] }
 0xf27   : > { %5331 = vmatprep.subr.bf16.mxu0 %v5568_v19  ;;  %v5362_v2 = vpack.c.bf16 %v3465_v50, %v3464_v45 }
 0xf2a   : > { %5333 = vmatpush3.bf16.msra.mxu0 %v5332_v51  ;;  %v3467_v51 = vld [vmem:[%s7001_s4 + $0x388] sm:$0xff] }
 0xf2b   : > { %5334 = vmatprep.subr.bf16.mxu0 %v5568_v19  ;;  %v5365_v46 = vpack.c.bf16 %v3467_v51, %v3466_v3  ;;  %v3981_v3 = vld [vmem:[%s7001_s4 + $0x468] sm:$0xff] }
 0xf2e   : > { %5336 = vmatpush3.bf16.msra.mxu0 %v5335_v58  ;;  %v3623_v58 = vld [vmem:[%s7001_s4 + $0x3c8] sm:$0xff] }
 0xf2f   : > { %5349 = vmatprep.subr.bf16.mxu0 %v5568_v19 }
 0xf31   : > { %4962 = vmatmul.mubr.msk.f32.vlgmr.msra.gmra.mrb[14].mxu0 %vm970_vm7, %v3172_v53  ;;  %v5368_v53 = vpack.c.bf16 %v3623_v58, %v3622_v52  ;;  %v3982_v52 = vld [vmem:[%s7001_s4 + $0x470] sm:$0xff]  ;;  %v3983_v58 = vld [vmem:[%s7001_s4 + $0x478] sm:$0xff] }
 0xf32   : > { %5000 = vmatprep.mubr.msk.f32.mxu0 %vm5569_vm10, %v5570_v23  ;;  %5351 = vmatpush3.bf16.msra.mxu0 %v5350_v62 }
 0xf33   : > { %5352 = vmatprep.subr.bf16.mxu0 %v5568_v19 }
 0xf36   : > { %5354 = vmatpush3.bf16.msra.mxu0 %v5353_v56 }
 0xf37   : > { %5355 = vmatprep.subr.bf16.mxu0 %v5568_v19 }
 0xf3a   : > { %5357 = vmatpush3.bf16.msra.mxu0 %v5356_v16 }
 0xf3b   : > { %5358 = vmatprep.subr.bf16.mxu0 %v5568_v19 }
0x1004   : > { %v3248_v12 = vpop.f32.mrb[14].mxu0 }
0x1005   : > { %3254 = vrot.lane.b32.xlu1 %v3248_v12, %s5567_s13  ;;  %v4963_v4 = vpop.f32.mrb[15].mxu0  ;;  %v3711_v12 = vld [vmem:[%s7000_s3 + $0x150] sm:$0xff] }
0x1006   : > { %v3712_v4 = vld [vmem:[%s7000_s3 + $0x158] sm:$0xff] }
0x1077   : > { %v3255_v14 = vpop.permute.xlu1 %3254 }
0x1078   : > { %v3257_v5 = vsel %vm1256_vm9, %v6581_v24, %v3255_v14  ;;  %v3362_v24 = vld [vmem:[%s7000_s3 + $0x130] sm:$0xff]  ;;  %v3713_v14 = vld [vmem:[%s7000_s3 + $0x160] sm:$0xff] }
0x1079   : > { %v3270_v15 = vmul.f32 %v4326_v13, %v3257_v5  ;;  %v5377_v13 = vpack.c.bf16 %v3712_v4, %v3711_v12  ;;  %v4091_v12 = vld [vmem:[%s7003_s6 + $0x28] sm:$0xff] }
0x107b   : > { %v3275_v18 = vadd.f32 %v4327_v21, %v3270_v15  ;;  %v3714_v21 = vld [vmem:[%s7000_s3 + $0x168] sm:$0xff]  ;;  %v3715_v15 = vld [vmem:[%s7000_s3 + $0x170] sm:$0xf] }
0x107c   : > { %v5380_v5 = vpack.c.bf16 %v3714_v21, %v3713_v14  ;;  %v4347_v21 = vld [vmem:[%s6999_s2 + $0x27] ss:$0 sm:$0xff] }
0x107d   : > { %v3276_v47 = vmax.f32 %v3275_v18, 0.0 }
0x107f   : > { %4977 = vmatmul.mubr.msk.f32.vlgmr.msra.gmra.mrb[12].mxu1 %vm970_vm7, %v3276_v47 }
0x1080   : > { %4985 = vmatprep.mubr.msk.f32.mxu1 %vm5569_vm10, %v5570_v23  ;;  %5348 = vmatpush3.bf16.msra.mxu1 %v5347_v36  ;;  %v4338_v36 = vld [vmem:[%s6999_s2 + $0x23] ss:$0 sm:$0xff] }
0x1081   : > { %4983 = vmatprep.subr.mxu1 %v5570_v23 }
0x1084   : > { %4984 = vmatpush3.msra.mxu1 %v3362_v24 }
0x1085   : > { %5376 = vmatprep.subr.bf16.mxu1 %v5568_v19 }
0x1152   : > { %v3346_v30 = vpop.f32.mrb[12].mxu1 }
0x1153   : > { %3351 = vst.msk [vmem:[#allocation2] sm:$0xf] %vm3350_vm11, %v3346_v30  ;;  %v4978_v31 = vpop.f32.mrb[13].mxu1  ;;  %v3826_v30 = vld [vmem:[%s7001_s4 + $0x430] sm:$0xff] }
0x1154   : > { %v3827_v31 = vld [vmem:[%s7001_s4 + $0x438] sm:$0xff] }
0x115a   : > { %v3352_v57 = vld [vmem:[#allocation2] ss:$2 sm:$0x3]  ;;  %v3353_v28 = vld [vmem:[#allocation2 + $0x1] ss:$2 sm:$0x3] }
0x115b   : > { %v3354_v38 = vadd.f32 %v3353_v28, %v3352_v57  ;;  %v5386_v57 = vpack.c.bf16 %v3827_v31, %v3826_v30  ;;  %v3828_v28 = vld [vmem:[%s7001_s4 + $0x440] sm:$0xff] }
0x115d   : > { %v6728_v39 = vmul.f32 0.5, %v3354_v38  ;;  %v3829_v38 = vld [vmem:[%s7001_s4 + $0x448] sm:$0xff] }
0x115f   : > { %v3367_v29 = vmul.f32 %v4329_v6, %v6728_v39  ;;  %v5389_v6 = vpack.c.bf16 %v3829_v38, %v3828_v28 }
0x1161   : > { %v3372_v8 = vadd.f32 %v4330_v11, %v3367_v29  ;;  %v4342_v11 = vld [vmem:[%s6999_s2 + $0x25] ss:$0 sm:$0xff] }
0x1163   : > { %v3373_v41 = vmax.f32 %v3372_v8, 0.0 }
0x1165   : > { %4986 = vmatmul.mubr.msk.f32.vlgmr.msra.gmra.mrb[14].mxu1 %vm777_vm6, %v3373_v41 }
0x1166   : > { %5043 = vmatprep.mubr.msk.f32.mxu1 %vm5569_vm10, %v5570_v23  ;;  %5378 = vmatpush3.bf16.msra.mxu1 %v5377_v13  ;;  %v4346_v13 = vld [vmem:[%s6999_s2 + $0x26] ss:$0 sm:$0xff] }
0x1167   : > { %5379 = vmatprep.subr.bf16.mxu1 %v5568_v19 }
0x116a   : > { %5381 = vmatpush3.bf16.msra.mxu1 %v5380_v5 }
0x116b   : > { %5041 = vmatprep.subr.mxu1 %v5570_v23 }
0x116e   : > { %5042 = vmatpush3.msk.msra.mxu1 %vm1263_vm8, %v3715_v15 }
0x116f   : > { %5382 = vmatprep.subr.bf16.mxu1 %v5568_v19 }
0x1238   : > { %v3443_v44 = vpop.f32.mrb[14].mxu1 }
0x1239   : > { %v3451_v17 = vmul.f32 %v4332_v43, %v3443_v44  ;;  %v4987_v33 = vpop.f32.mrb[15].mxu1  ;;  %v5392_v43 = vpack.c.bf16 %v3819_v1, %v3818_v42  ;;  %v3820_v44 = vld [vmem:[%s7001_s4 + $0x400] sm:$0xff] }
0x123b   : > { %v3456_v40 = vadd.f32 %v4333_v25, %v3451_v17  ;;  %v3821_v17 = vld [vmem:[%s7001_s4 + $0x408] sm:$0xff] }
0x123c   : > { %v5395_v33 = vpack.c.bf16 %v3821_v17, %v3820_v44 }
0x123d   : > { %v3457_v35 = vmax.f32 %v3456_v40, 0.0  ;;  %v5398_v40 = vpack.c.bf16 %v3823_v20, %v3822_v7 }
0x123f   : > { %5001 = vmatmul.mubr.msk.f32.vlgmr.msra.gmra.mrb[16].mxu0 %vm970_vm7, %v3457_v35  ;;  %v3459_v59 = vrot.slane %v3457_v35, 7  ;;  %v3619_v32 = vrot.slane %v3457_v35, 1  ;;  %v3979_v35 = vld [vmem:[%s7001_s4 + $0x458] sm:$0xff] }
0x1240   : > { %5360 = vmatpush3.bf16.msra.mxu0 %v5359_v34  ;;  %5015 = vmatprep.mubr.msk.f32.mxu0 %vm5569_vm10, %v5570_v23  ;;  %v3978_v34 = vld [vmem:[%s7001_s4 + $0x450] sm:$0xff] }
0x1241   : > { %5361 = vmatprep.subr.bf16.mxu0 %v5568_v19  ;;  %v3461_v54 = vsel %vm436_vm5, 0.0, %v3459_v59  ;;  %v3621_v0 = vsel %vm436_vm5, %v3619_v32, 0.0  ;;  %v5401_v50 = vpack.c.bf16 %v3979_v35, %v3978_v34  ;;  %v5407_v59 = vpack.c.bf16 %v3983_v58, %v3982_v52 }
0x1242   : > { %v5413_v32 = vpack.c.bf16 %v4089_v10, %v4088_v9 }
0x1244   : > { %5363 = vmatpush3.bf16.msra.mxu0 %v5362_v2  ;;  %v3980_v2 = vld [vmem:[%s7001_s4 + $0x460] sm:$0xff] }
0x1245   : > { %5364 = vmatprep.subr.bf16.mxu0 %v5568_v19 }
0x1248   : > { %5366 = vmatpush3.bf16.msra.mxu0 %v5365_v46  ;;  %v5404_v46 = vpack.c.bf16 %v3981_v3, %v3980_v2 }
0x1249   : > { %5367 = vmatprep.subr.bf16.mxu0 %v5568_v19 }
0x124b   : > { %5016 = vmatmul.mubr.msk.f32.vlgmr.msra.gmra.mrb[16].mxu0 %vm970_vm7, %v3461_v54 }
0x124c   : > { %5369 = vmatpush3.bf16.msra.mxu0 %v5368_v53  ;;  %5030 = vmatprep.mubr.msk.f32.mxu0 %vm5569_vm10, %v5570_v23 }
0x124d   : > { %5370 = vmatprep.subr.bf16.mxu0 %v5568_v19 }
0x1250   : > { %5372 = vmatpush3.bf16.msra.mxu0 %v5371_v63 }
0x1251   : > { %5373 = vmatprep.subr.bf16.mxu0 %v5568_v19 }
0x1254   : > { %5375 = vmatpush3.bf16.msra.mxu0 %v5374_v48 }
0x1255   : > { %5409 = vmatprep.subr.bf16.mxu0 %v5568_v19 }
0x1257   : > { %5031 = vmatmul.mubr.msk.f32.vlgmr.msra.gmra.mrb[16].mxu0 %vm970_vm7, %v3621_v0  ;;  %v4090_v0 = vld [vmem:[%s7003_s6 + $0x20] sm:$0xff] }
0x1258   : > { %5103 = vmatprep.mubr.msk.f32.mxu0 %vm5569_vm10, %v5570_v23  ;;  %v5416_v4 = vpack.c.bf16 %v4091_v12, %v4090_v0 }
0x132a   : > { %v3697_v18 = vpop.f32.mrb[16].mxu0 }
0x132b   : > { %3703 = vrot.lane.b32.xlu0 %v3697_v18, %s5566_s9  ;;  %v5032_v47 = vpop.f32.mrb[17].mxu0 }
0x139d   : > { %v3704_v26 = vpop.permute.xlu0 %3703 }
0x139e   : > { %v6831_v24 = vsel %vm777_vm6, %v6728_v39, %v3704_v26  ;;  %v4341_v39 = vld [vmem:[%s6999_s2 + $0x24] ss:$0 sm:$0xff] }
0x139f   : > { %v3720_v37 = vmul.f32 %v4337_v55, %v6831_v24 }
0x13a1   : > { %v3725_v62 = vadd.f32 %v4338_v36, %v3720_v37 }
0x13a3   : > { %v3726_v56 = vmax.f32 %v3725_v62, 0.0 }
0x13a5   : > { %5044 = vmatmul.mubr.msk.f32.vlgmr.msra.gmra.mrb[16].mxu1 %vm1256_vm9, %v3726_v56 }
0x13a6   : > { %5384 = vmatpush3.bf16.msra.mxu1 %v5383_v27  ;;  %5058 = vmatprep.mubr.msk.f32.mxu1 %vm5569_vm10, %v5570_v23  ;;  %v4092_v27 = vld [vmem:[%s7003_s6 + $0x30] sm:$0x1] }
0x13a7   : > { %5385 = vmatprep.subr.bf16.mxu1 %v5568_v19 }
0x13aa   : > { %5387 = vmatpush3.bf16.msra.mxu1 %v5386_v57 }
0x13ab   : > { %5388 = vmatprep.subr.bf16.mxu1 %v5568_v19 }
0x13ae   : > { %5390 = vmatpush3.bf16.msra.mxu1 %v5389_v6 }
0x13af   : > { %5391 = vmatprep.subr.bf16.mxu1 %v5568_v19 }
0x1478   : > { %v3799_v29 = vpop.f32.mrb[16].mxu1 }
0x1479   : > { %v3807_v8 = vmul.f32 %v4341_v39, %v3799_v29  ;;  %v5045_v41 = vpop.f32.mrb[17].mxu1 }
0x147b   : > { %v3812_v16 = vadd.f32 %v4342_v11, %v3807_v8 }
0x147d   : > { %v3813_v25 = vmax.f32 %v3812_v16, 0.0 }
0x147f   : > { %5059 = vmatmul.mubr.msk.f32.vlgmr.msra.gmra.mrb[18].mxu1 %vm970_vm7, %v3813_v25  ;;  %v3815_v45 = vrot.slane %v3813_v25, 7  ;;  %v3975_v53 = vrot.slane %v3813_v25, 1 }
0x1480   : > { %5393 = vmatpush3.bf16.msra.mxu1 %v5392_v43  ;;  %5073 = vmatprep.mubr.msk.f32.mxu1 %vm5569_vm10, %v5570_v23 }
0x1481   : > { %5394 = vmatprep.subr.bf16.mxu1 %v5568_v19  ;;  %v3817_v51 = vsel %vm436_vm5, 0.0, %v3815_v45  ;;  %v3977_v60 = vsel %vm436_vm5, %v3975_v53, 0.0 }
0x1484   : > { %5396 = vmatpush3.bf16.msra.mxu1 %v5395_v33 }
0x1485   : > { %5397 = vmatprep.subr.bf16.mxu1 %v5568_v19 }
0x1488   : > { %5399 = vmatpush3.bf16.msra.mxu1 %v5398_v40 }
0x1489   : > { %5400 = vmatprep.subr.bf16.mxu1 %v5568_v19 }
0x148b   : > { %5074 = vmatmul.mubr.msk.f32.vlgmr.msra.gmra.mrb[18].mxu1 %vm970_vm7, %v3817_v51 }
0x148c   : > { %5402 = vmatpush3.bf16.msra.mxu1 %v5401_v50  ;;  %5088 = vmatprep.mubr.msk.f32.mxu1 %vm5569_vm10, %v5570_v23  ;;  %v4086_v23 = vld [vmem:[%s7003_s6] sm:$0xff] }
0x148d   : > { %5403 = vmatprep.subr.bf16.mxu1 %v5568_v19  ;;  %v5410_v54 = vpack.c.bf16 %v4087_v61, %v4086_v23 }
0x148f   : > { %5411 = vmatpush3.bf16.msra.mxu0 %v5410_v54 }
0x1490   : > { %5405 = vmatpush3.bf16.msra.mxu1 %v5404_v46  ;;  %5412 = vmatprep.subr.bf16.mxu0 %v5568_v19 }
0x1491   : > { %5406 = vmatprep.subr.bf16.mxu1 %v5568_v19 }
0x1493   : > { %5414 = vmatpush3.bf16.msra.mxu0 %v5413_v32 }
0x1494   : > { %5408 = vmatpush3.bf16.msra.mxu1 %v5407_v59  ;;  %5415 = vmatprep.subr.bf16.mxu0 %v5568_v19 }
0x1497   : > { %5089 = vmatmul.mubr.msk.f32.vlgmr.msra.gmra.mrb[18].mxu1 %vm970_vm7, %v3977_v60  ;;  %5417 = vmatpush3.bf16.msra.mxu0 %v5416_v4 }
0x156a   : > { %v4053_v63 = vpop.f32.mrb[18].mxu1 }
0x156b   : > { %4059 = vrot.lane.b32.xlu1 %v4053_v63, %s5567_s13  ;;  %v5090_v48 = vpop.f32.mrb[19].mxu1  ;;  %s5507_s13 = scalar_lea.vmem %s5506_s23, 32 }
0x156c   : > { %p5509_p1 = scmp.lt.s32.totalorder %s5507_s13, %s5501_s22 }
0x156e   : > { %p5510_p2 = por %p5509_p1, %p5508_p0 }
0x1570   : > { %p5511_p3 = pnand %p5510_p2, %p5504_p13 }
0x15dd   : > { %v4060_v14 = vpop.permute.xlu1 %4059 }
0x15de   : > { %v4062_v19 = vsel %vm1256_vm9, %v6831_v24, %v4060_v14 }
0x15df   : > { %v4069_v5 = vmul.f32 %v4346_v13, %v4062_v19 }
0x15e1   : > { %v4074_v15 = vadd.f32 %v4347_v21, %v4069_v5 }
0x15e3   : > { %v4075_v18 = vmax.f32 %v4074_v15, 0.0 }
0x15e5   : > { %v4077_v47 = vsel %vm4076_vm12, %v4075_v18, 0.0 }
0x15e6   : > { %v4078_v55 = vrot.slane %v4077_v47, 4 }
0x15e8   : > { %v4079_v26 = vadd.f32 %v4078_v55, %v4077_v47 }
0x15ea   : > { %v4080_v36 = vrot.slane %v4079_v26, 2 }
0x15ec   : > { %v4081_v37 = vadd.f32 %v4080_v36, %v4079_v26 }
0x15ee   : > { %v4082_v22 = vrot.slane %v4081_v37, 1 }
0x15f0   : > { %v4083_v49 = vadd.f32 %v4082_v22, %v4081_v37 }
0x15f2   : > { %v4085_v62 = vmul.f32 0.5, %v4083_v49 }
0x15f4   : > { %5104 = vmatmul.mubr.msk.f32.vlgmr.msra.gmra.mrb[18].mxu0 %vm970_vm7, %v4085_v62 }
0x16c7   : > { %v4162_v24 = vpop.f32.mrb[18].mxu0 }
0x16c8   : > { %v4163_v56 = vadd.f32 %v4162_v24, %v4092_v27  ;;  %v5105_v30 = vpop.f32.mrb[19].mxu0 }
0x16ca   : > { %v4167_v31 = vsel %vm4166_vm13, %v4163_v56, -inf }
0x16cb   : > { %4168 = vmax.xlane.f32.xlu0 %v4167_v31 }
0x1758   : > { %v4169_v57 = vpop.xlane.xlu0 %4168 }
0x1759   : > { %v4170_v28 = vsub.f32 %v4163_v56, %v4169_v57 }
0x175b   : > { %v4171_v38 = vmul.f32 1.442695, %v4170_v28 }
0x175d   : > { %5497 = vpow2.f32 %v4171_v38 }
0x1767   : > { %v5498_v6 = vpop.eup %5497 }
0x1768   : > { %v4173_v39 = vsel %vm4166_vm13, %v5498_v6, 0.0 }
0x1769   : > { %4174 = vadd.xlane.f32.xlu1 %v4173_v39 }
0x17f6   : > { %v4175_v11 = vpop.xlane.xlu1 %4174 }
0x17f7   : > { %5499 = vrcp.f32 %v4175_v11 }
0x1801   : > { %v5500_v29 = vpop.eup %5499 }
0x1802   : > { %v4177_v8 = vmul.f32 %v5500_v29, %v5498_v6 }
0x1804   : > { %4178 = vst.msk [vmem:[%s270_s16] sm:$0x1] %vm4166_vm13, %v4177_v8 }
0x1805   : > { %5514 = shalt.err (!%p5511_p3)
}
0x1806   : > { %s5515_s9 = scalar_lea.hbm %s6954_s20, 16  ;;  %s5519_s14 = scalar_lea.hbm %s7004_s7, 32 }
0x1807   : > { %p5516_p4 = scmp.ne.s32.totalorder %s6954_s20, %s5515_s9  ;;  %p5520_p9 = scmp.lt.u32.totalorder %s6954_s20, %s7004_s7 }
0x1808   : > { %p5521_p10 = scmp.lt.u32.totalorder %s5519_s14, %s5515_s9  ;;  %p5523_p12 = scmp.lt.u32.totalorder %s5515_s9, %s6954_s20 }
0x1809   : > { %p5517_p7 = pnand %p5516_p4, %p5650_p5 }
0x180a   : > { %p5522_p11 = por %p5521_p10, %p5520_p9 }
0x180b   : > { %p5518_p8 = pneg %p5517_p7 }
0x180c   : > { %p5524_p13 = por %p5523_p12, %p5522_p11 }
0x180e   : > { %p5525_p0 = pnand %p5524_p13, %p5518_p8 }
0x1810   : > { %5528 = shalt.err (!%p5525_p0)
}
0x1811   : > { %5450 = dma.vmem_to_hbm [thread:$0]  (%p5650_p5), %s6956_s17, 16, %s6954_s20, %s4180_s21  }
0x1812 PF: > { %p5456_p1 = scmp.ge.s32.totalorder %s5563_s27, 2  ;;  %s4204_s18 = sand.u32 1, %s5551_s24  }
0x1813   : > { %s4205_s19 = scalar_lea.sflag [#allocation4], %s4204_s18 }
0x1814   : > { %p5453_p2 = pnand %p5456_p1, %p5654_p6 }
0x1816   : > { %5546 = dma.done.wait (!%p5453_p2), %s4205_s19, 16  }
0x1817   : > { %5548 = vsyncadd (!%p5453_p2), %s4205_s19, 4294967280  ;;  %p17_p3 = scmp.ge.s32.totalorder %s5637_s30, 4   ;;  %s7007_s24 = smov %s5555_s25 }
0x1818   : > { %s7008_s25 = smov %s5559_s26  ;;  %s7009_s26 = smov %s5648_s10 }
0x1819   : > { %s7010_s27 = smov %s5637_s30  ;;  %19 = sbr.rel (!%p17_p3) target bundleno = 3 (0x3), region = 87 }
0x1820   :  { %4209 = vsyncpa [#allocation4], 1 }
0x1821   :  { %4211 = vsyncpa [#allocation4 + $0x1], 1 }

</bundles_post_ra>
